<compile_context>
chip_gen: v6e
topology: v6e:2x2x1
jax: 0.10.0
libtpu: 0.0.40
codegen_flags: <defaults>
</compile_context>

<pallas_src>
import functools

import jax
import jax.numpy as jnp
import numpy as np
from jax.experimental import pallas as pl
from jax.experimental.pallas import tpu as pltpu

# ---------------------------------------------------------------------------
# Model hyperparameters (small, consistent with the module's __init__)
# ---------------------------------------------------------------------------
BATCH = 4         # number of graphs (grid axis)
N = 32            # number of nodes per graph
INPUT_DIM = 16    # input_dim
OUTPUT_DIM = 32   # output_dim (hidden size of GatedGraphConv / GRUCell)
MAX_ETYPES = 2    # max_edge_types
NUM_STEPS = 8     # num_steps
READ_OUT = "sum"  # 'sum' or 'mean'
NUM_EDGES = 64    # edges per graph
OUT_PAD = 128     # classifier output padded to a full lane tile


# ---------------------------------------------------------------------------
# Pallas kernel: full GGNN forward for one graph (one grid step), VMEM-resident.
# ---------------------------------------------------------------------------
def ggnn_kernel(
    x_ref, adj_ref,
    wlin_ref, blin_ref,
    we_ref, be_ref,
    wi_ref, bi_ref,
    wh_ref, bh_ref,
    wcls_ref, bcls_ref,
    out_ref,
    *, num_steps, n_etypes, hidden_dim, read_out,
):
    f32 = jnp.float32
    bf16 = jnp.bfloat16
    D = hidden_dim

    x = x_ref[...]                      # (N, INPUT_DIM) bf16
    n_nodes = x.shape[0]

    # --- hoisted constants (loaded / broadcast once, reused by all steps) ---
    adj = [adj_ref[t] for t in range(n_etypes)]          # each (N, N), bf16
    we = we_ref[...]                                      # (D, T*D) bf16
    wi = wi_ref[...]                                      # (D, 3D) bf16
    wh = wh_ref[...]                                      # (D, 3D) bf16
    be_b = jnp.broadcast_to(be_ref[...], (n_nodes, n_etypes * D))   # f32
    bi_b = jnp.broadcast_to(bi_ref[...], (n_nodes, 3 * D))          # f32
    bh_b = jnp.broadcast_to(bh_ref[...], (n_nodes, 3 * D))          # f32

    # --- input projection (dropout = identity in eval mode) ---
    h = jnp.dot(x, wlin_ref[...], preferred_element_type=f32) + blin_ref[...]

    # --- GatedGraphConv: num_steps rounds of typed message passing + GRUCell ---
    for _ in range(num_steps):
        hb = h.astype(bf16)

        # fused per-edge-type source transform: one (N,D)x(D,T*D) matmul
        m = jnp.dot(hb, we, preferred_element_type=f32) + be_b
        mb = m.astype(bf16)

        # aggregate over incoming edges, one adjacency matmul per edge type
        a = jnp.dot(adj[0], mb[:, :D], preferred_element_type=f32)
        for t in range(1, n_etypes):
            a = a + jnp.dot(adj[t], mb[:, t * D:(t + 1) * D],
                            preferred_element_type=f32)
        ab = a.astype(bf16)

        # fused GRU gates: 2 matmuls instead of 6
        gi = jnp.dot(ab, wi, preferred_element_type=f32) + bi_b   # (N, 3D)
        gh = jnp.dot(hb, wh, preferred_element_type=f32) + bh_b   # (N, 3D)

        r = jax.nn.sigmoid(gi[:, :D] + gh[:, :D])
        z = jax.nn.sigmoid(gi[:, D:2 * D] + gh[:, D:2 * D])
        n = jnp.tanh(gi[:, 2 * D:] + r * gh[:, 2 * D:])
        h = (1.0 - z) * n + z * h

    # --- readout (sum / mean over nodes) folded onto the MXU, then classifier ---
    scale = 1.0 if read_out == "sum" else 1.0 / n_nodes
    ones_row = jnp.full((1, n_nodes), scale, dtype=bf16)
    feats = jnp.dot(ones_row, h.astype(bf16), preferred_element_type=f32)  # (1, D)

    # classifier with lane-dense (padded) output: (1, 128); wrapper slices [:2]
    out_ref[...] = (
        jnp.dot(feats.astype(bf16), wcls_ref[...], preferred_element_type=f32)
        + bcls_ref[...]
    )


def ggnn_forward(x_bf16, adj_bf16, packed):
    B, n_nodes, in_dim = x_bf16.shape
    kernel = functools.partial(
        ggnn_kernel,
        num_steps=NUM_STEPS,
        n_etypes=MAX_ETYPES,
        hidden_dim=OUTPUT_DIM,
        read_out=READ_OUT,
    )
    full = pl.BlockSpec(memory_space=pltpu.MemorySpace.VMEM)  # whole array, resident
    in_specs = [
        pl.BlockSpec((None, n_nodes, in_dim), lambda b: (b, 0, 0)),
        pl.BlockSpec((None, MAX_ETYPES, n_nodes, n_nodes), lambda b: (b, 0, 0, 0)),
        full, full,   # wlin, blin
        full, full,   # we_cat, be_cat
        full, full,   # wi_cat, bi_cat
        full, full,   # wh_cat, bh_cat
        full, full,   # wcls_pad, bcls_pad
    ]
    out = pl.pallas_call(
        kernel,
        out_shape=jax.ShapeDtypeStruct((B, 1, OUT_PAD), jnp.float32),
        grid=(B,),
        in_specs=in_specs,
        out_specs=pl.BlockSpec((None, 1, OUT_PAD), lambda b: (b, 0, 0)),
        compiler_params=pltpu.CompilerParams(dimension_semantics=("parallel",)),
    )(
        x_bf16, adj_bf16,
        packed["wlin"], packed["blin"],
        packed["we_cat"], packed["be_cat"],
        packed["wi_cat"], packed["bi_cat"],
        packed["wh_cat"], packed["bh_cat"],
        packed["wcls_pad"], packed["bcls_pad"],
    )
    return out[:, 0, :2]   # (B, 2) logits


# ---------------------------------------------------------------------------
# Pure-JAX reference mirroring the kernel's mixed precision (bf16 dot inputs,
# f32 accumulation) for a correctness check.
# ---------------------------------------------------------------------------
def ggnn_reference(x, adj, p):
    bf16 = jnp.bfloat16

    def dot(a_, b_):
        return jnp.dot(a_.astype(bf16), b_.astype(bf16),
                       preferred_element_type=jnp.float32)

    def single(xg, adjg):
        h = dot(xg, p["wlin"]) + p["blin"]
        for _ in range(NUM_STEPS):
            a = jnp.zeros_like(h)
            for t in range(MAX_ETYPES):
                a = a + dot(adjg[t], dot(h, p["we"][t]) + p["be"][t])
            r = jax.nn.sigmoid(dot(a, p["wir"]) + p["bir"] + dot(h, p["whr"]) + p["bhr"])
            z = jax.nn.sigmoid(dot(a, p["wiz"]) + p["biz"] + dot(h, p["whz"]) + p["bhz"])
            n = jnp.tanh(dot(a, p["win"]) + p["bin"] + r * (dot(h, p["whn"]) + p["bhn"]))
            h = (1.0 - z) * n + z * h
        if READ_OUT == "sum":
            ones_row = jnp.ones((1, h.shape[0]), jnp.float32)
        else:
            ones_row = jnp.full((1, h.shape[0]), 1.0 / h.shape[0], jnp.float32)
        feats = dot(ones_row, h)
        return dot(feats, p["wcls"]) + p["bcls"]

    return jnp.concatenate([single(x[b], adj[b]) for b in range(x.shape[0])], axis=0)


# ---------------------------------------------------------------------------
# Deterministic parameter / input construction + host-side weight packing
# ---------------------------------------------------------------------------
def make_params(key):
    D = OUTPUT_DIM
    keys = jax.random.split(key, 24)
    k = iter(keys)

    def rnd(shape, scale=0.1):
        return (scale * jax.random.normal(next(k), shape)).astype(jnp.float32)

    raw = {
        # nn.Linear(input_dim, output_dim), stored pre-transposed for x @ W
        "wlin": rnd((INPUT_DIM, D)),
        "blin": rnd((1, D)),
        # per-edge-type linears of GatedGraphConv
        "we": rnd((MAX_ETYPES, D, D)),
        "be": rnd((MAX_ETYPES, 1, D)),
        # GRUCell weights, split into r/z/n pieces, pre-transposed
        "wir": rnd((D, D)), "wiz": rnd((D, D)), "win": rnd((D, D)),
        "whr": rnd((D, D)), "whz": rnd((D, D)), "whn": rnd((D, D)),
        "bir": rnd((1, D)), "biz": rnd((1, D)), "bin": rnd((1, D)),
        "bhr": rnd((1, D)), "bhz": rnd((1, D)), "bhn": rnd((1, D)),
        # classifier: nn.Linear(output_dim, 2)
        "wcls": rnd((D, 2)),
        "bcls": rnd((1, 2)),
    }
    return raw, pack_params(raw)


def pack_params(p):
    bf16 = jnp.bfloat16
    D = OUTPUT_DIM
    wcls_pad = jnp.zeros((D, OUT_PAD), jnp.float32).at[:, :2].set(p["wcls"])
    bcls_pad = jnp.zeros((1, OUT_PAD), jnp.float32).at[:, :2].set(p["bcls"])
    return {
        "wlin": p["wlin"].astype(bf16),
        "blin": p["blin"],                                                   # f32
        "we_cat": jnp.concatenate([p["we"][t] for t in range(MAX_ETYPES)],
                                  axis=1).astype(bf16),                      # (D, T*D)
        "be_cat": jnp.concatenate([p["be"][t] for t in range(MAX_ETYPES)],
                                  axis=1),                                   # (1, T*D) f32
        "wi_cat": jnp.concatenate([p["wir"], p["wiz"], p["win"]], axis=1).astype(bf16),
        "bi_cat": jnp.concatenate([p["bir"], p["biz"], p["bin"]], axis=1),   # f32
        "wh_cat": jnp.concatenate([p["whr"], p["whz"], p["whn"]], axis=1).astype(bf16),
        "bh_cat": jnp.concatenate([p["bhr"], p["bhz"], p["bhn"]], axis=1),   # f32
        "wcls_pad": wcls_pad.astype(bf16),
        "bcls_pad": bcls_pad,                                                # f32
    }


def make_graphs(key, batch):
    xs, adjs = [], []
    for kb in jax.random.split(key, batch):
        k1, k2, k3, k4 = jax.random.split(kb, 4)
        x = jax.random.normal(k1, (N, INPUT_DIM), dtype=jnp.float32)
        src = jax.random.randint(k2, (NUM_EDGES,), 0, N)
        dst = jax.random.randint(k3, (NUM_EDGES,), 0, N)
        etype = jax.random.randint(k4, (NUM_EDGES,), 0, MAX_ETYPES)
        # dense per-etype adjacency: adj[t, dst, src] = multiplicity of edge
        adj = jnp.zeros((MAX_ETYPES, N, N), jnp.float32).at[etype, dst, src].add(1.0)
        xs.append(x)
        adjs.append(adj)
    return jnp.stack(xs), jnp.stack(adjs)


if __name__ == "__main__":
    root = jax.random.PRNGKey(0)
    k_params, k_graph = jax.random.split(root)
    raw_params, packed_params = make_params(k_params)
    x, adj = make_graphs(k_graph, BATCH)           # (B, N, IN), (B, T, N, N) f32

    # bf16 copies for the kernel (weights packed/cast in pack_params)
    x_bf16 = x.astype(jnp.bfloat16)
    adj_bf16 = adj.astype(jnp.bfloat16)            # small integer counts: exact

    out = ggnn_forward(x_bf16, adj_bf16, packed_params)
    out = jax.block_until_ready(out)

    ref = jax.block_until_ready(ggnn_reference(x, adj, raw_params))
    np.testing.assert_allclose(np.asarray(out), np.asarray(ref), rtol=1e-2, atol=1e-2)

    print("KERNEL_OK")
</pallas_src>

<mosaic_0001>
module attributes {stable_mosaic.version = 11 : i64} {
  func.func @ggnn_kernel(%arg0: i32, %arg1: memref<1x32x16xbf16, #tpu.memory_space<vmem>>, %arg2: memref<1x2x32x32xbf16, #tpu.memory_space<vmem>>, %arg3: memref<16x32xbf16, #tpu.memory_space<vmem>>, %arg4: memref<1x32xf32, #tpu.memory_space<vmem>>, %arg5: memref<32x64xbf16, #tpu.memory_space<vmem>>, %arg6: memref<1x64xf32, #tpu.memory_space<vmem>>, %arg7: memref<32x96xbf16, #tpu.memory_space<vmem>>, %arg8: memref<1x96xf32, #tpu.memory_space<vmem>>, %arg9: memref<32x96xbf16, #tpu.memory_space<vmem>>, %arg10: memref<1x96xf32, #tpu.memory_space<vmem>>, %arg11: memref<32x128xbf16, #tpu.memory_space<vmem>>, %arg12: memref<1x128xf32, #tpu.memory_space<vmem>>, %arg13: memref<1x1x128xf32, #tpu.memory_space<vmem>>) attributes {dimension_semantics = [#tpu.dimension_semantics<parallel>], iteration_bounds = array<i64: 4>, scalar_prefetch = 0 : i64, scratch_operands = 0 : i64, tpu.core_type = #tpu.core_type<tc>, window_params = [{transform_indices = @transform_0, window_bounds = array<i64: 1, 32, 16>}, {transform_indices = @transform_1, window_bounds = array<i64: 1, 2, 32, 32>}, {pipeline_mode = #tpu.pipeline_mode<synchronous>, transform_indices = @transform_2, window_bounds = array<i64: 16, 32>}, {pipeline_mode = #tpu.pipeline_mode<synchronous>, transform_indices = @transform_3, window_bounds = array<i64: 1, 32>}, {pipeline_mode = #tpu.pipeline_mode<synchronous>, transform_indices = @transform_4, window_bounds = array<i64: 32, 64>}, {pipeline_mode = #tpu.pipeline_mode<synchronous>, transform_indices = @transform_5, window_bounds = array<i64: 1, 64>}, {pipeline_mode = #tpu.pipeline_mode<synchronous>, transform_indices = @transform_6, window_bounds = array<i64: 32, 96>}, {pipeline_mode = #tpu.pipeline_mode<synchronous>, transform_indices = @transform_7, window_bounds = array<i64: 1, 96>}, {pipeline_mode = #tpu.pipeline_mode<synchronous>, transform_indices = @transform_8, window_bounds = array<i64: 32, 96>}, {pipeline_mode = #tpu.pipeline_mode<synchronous>, transform_indices = @transform_9, window_bounds = array<i64: 1, 96>}, {pipeline_mode = #tpu.pipeline_mode<synchronous>, transform_indices = @transform_10, window_bounds = array<i64: 32, 128>}, {pipeline_mode = #tpu.pipeline_mode<synchronous>, transform_indices = @transform_11, window_bounds = array<i64: 1, 128>}, {transform_indices = @transform_12, window_bounds = array<i64: 1, 1, 128>}]} {
    %c0 = arith.constant 0 : index
    %c0_0 = arith.constant 0 : index
    %c0_1 = arith.constant 0 : index
    %0 = vector.load %arg1[%c0, %c0_0, %c0_1] : memref<1x32x16xbf16, #tpu.memory_space<vmem>>, vector<1x32x16xbf16>
    %1 = vector.shape_cast %0 : vector<1x32x16xbf16> to vector<32x16xbf16>
    %c0_2 = arith.constant 0 : index
    %c0_3 = arith.constant 0 : index
    %c0_4 = arith.constant 0 : index
    %c0_5 = arith.constant 0 : index
    %2 = vector.load %arg2[%c0_2, %c0_3, %c0_4, %c0_5] : memref<1x2x32x32xbf16, #tpu.memory_space<vmem>>, vector<1x1x32x32xbf16>
    %3 = vector.shape_cast %2 : vector<1x1x32x32xbf16> to vector<32x32xbf16>
    %c0_6 = arith.constant 0 : index
    %c1 = arith.constant 1 : index
    %c0_7 = arith.constant 0 : index
    %c0_8 = arith.constant 0 : index
    %4 = vector.load %arg2[%c0_6, %c1, %c0_7, %c0_8] : memref<1x2x32x32xbf16, #tpu.memory_space<vmem>>, vector<1x1x32x32xbf16>
    %5 = vector.shape_cast %4 : vector<1x1x32x32xbf16> to vector<32x32xbf16>
    %c0_9 = arith.constant 0 : index
    %c0_10 = arith.constant 0 : index
    %6 = vector.load %arg5[%c0_9, %c0_10] : memref<32x64xbf16, #tpu.memory_space<vmem>>, vector<32x64xbf16>
    %c0_11 = arith.constant 0 : index
    %c0_12 = arith.constant 0 : index
    %7 = vector.load %arg7[%c0_11, %c0_12] : memref<32x96xbf16, #tpu.memory_space<vmem>>, vector<32x96xbf16>
    %c0_13 = arith.constant 0 : index
    %c0_14 = arith.constant 0 : index
    %8 = vector.load %arg9[%c0_13, %c0_14] : memref<32x96xbf16, #tpu.memory_space<vmem>>, vector<32x96xbf16>
    %c0_15 = arith.constant 0 : index
    %c0_16 = arith.constant 0 : index
    %9 = vector.load %arg6[%c0_15, %c0_16] : memref<1x64xf32, #tpu.memory_space<vmem>>, vector<1x64xf32>
    %10 = vector.shape_cast %9 : vector<1x64xf32> to vector<1x64xf32>
    %11 = vector.broadcast %10 : vector<1x64xf32> to vector<32x64xf32>
    %c0_17 = arith.constant 0 : index
    %c0_18 = arith.constant 0 : index
    %12 = vector.load %arg8[%c0_17, %c0_18] : memref<1x96xf32, #tpu.memory_space<vmem>>, vector<1x96xf32>
    %13 = vector.shape_cast %12 : vector<1x96xf32> to vector<1x96xf32>
    %14 = vector.broadcast %13 : vector<1x96xf32> to vector<32x96xf32>
    %c0_19 = arith.constant 0 : index
    %c0_20 = arith.constant 0 : index
    %15 = vector.load %arg10[%c0_19, %c0_20] : memref<1x96xf32, #tpu.memory_space<vmem>>, vector<1x96xf32>
    %16 = vector.shape_cast %15 : vector<1x96xf32> to vector<1x96xf32>
    %17 = vector.broadcast %16 : vector<1x96xf32> to vector<32x96xf32>
    %c0_21 = arith.constant 0 : index
    %c0_22 = arith.constant 0 : index
    %18 = vector.load %arg3[%c0_21, %c0_22] : memref<16x32xbf16, #tpu.memory_space<vmem>>, vector<16x32xbf16>
    %cst = arith.constant dense<0.000000e+00> : vector<32x32xf32>
    %19 = tpu.matmul %1, %18, %cst {dimension_numbers = #tpu.dot_dimension_numbers<[1], [0], [0], [1], [0, 0, 1, 1], [], []>} : vector<32x16xbf16>, vector<16x32xbf16>, vector<32x32xf32> -> vector<32x32xf32>
    %c0_23 = arith.constant 0 : index
    %c0_24 = arith.constant 0 : index
    %20 = vector.load %arg4[%c0_23, %c0_24] : memref<1x32xf32, #tpu.memory_space<vmem>>, vector<1x32xf32>
    %21 = vector.broadcast %20 : vector<1x32xf32> to vector<32x32xf32>
    %22 = arith.addf %19, %21 : vector<32x32xf32>
    %23 = arith.truncf %22 : vector<32x32xf32> to vector<32x32xbf16>
    %cst_25 = arith.constant dense<0.000000e+00> : vector<32x64xf32>
    %24 = tpu.matmul %23, %6, %cst_25 {dimension_numbers = #tpu.dot_dimension_numbers<[1], [0], [0], [1], [0, 0, 1, 1], [], []>} : vector<32x32xbf16>, vector<32x64xbf16>, vector<32x64xf32> -> vector<32x64xf32>
    %25 = arith.addf %24, %11 : vector<32x64xf32>
    %26 = arith.truncf %25 : vector<32x64xf32> to vector<32x64xbf16>
    %27 = vector.extract_strided_slice %26 {offsets = [0, 0], sizes = [32, 32], strides = [1, 1]} : vector<32x64xbf16> to vector<32x32xbf16>
    %cst_26 = arith.constant dense<0.000000e+00> : vector<32x32xf32>
    %28 = tpu.matmul %3, %27, %cst_26 {dimension_numbers = #tpu.dot_dimension_numbers<[1], [0], [0], [1], [0, 0, 1, 1], [], []>} : vector<32x32xbf16>, vector<32x32xbf16>, vector<32x32xf32> -> vector<32x32xf32>
    %29 = vector.extract_strided_slice %26 {offsets = [0, 32], sizes = [32, 32], strides = [1, 1]} : vector<32x64xbf16> to vector<32x32xbf16>
    %cst_27 = arith.constant dense<0.000000e+00> : vector<32x32xf32>
    %30 = tpu.matmul %5, %29, %cst_27 {dimension_numbers = #tpu.dot_dimension_numbers<[1], [0], [0], [1], [0, 0, 1, 1], [], []>} : vector<32x32xbf16>, vector<32x32xbf16>, vector<32x32xf32> -> vector<32x32xf32>
    %31 = arith.addf %28, %30 : vector<32x32xf32>
    %32 = arith.truncf %31 : vector<32x32xf32> to vector<32x32xbf16>
    %cst_28 = arith.constant dense<0.000000e+00> : vector<32x96xf32>
    %33 = tpu.matmul %32, %7, %cst_28 {dimension_numbers = #tpu.dot_dimension_numbers<[1], [0], [0], [1], [0, 0, 1, 1], [], []>} : vector<32x32xbf16>, vector<32x96xbf16>, vector<32x96xf32> -> vector<32x96xf32>
    %34 = arith.addf %33, %14 : vector<32x96xf32>
    %cst_29 = arith.constant dense<0.000000e+00> : vector<32x96xf32>
    %35 = tpu.matmul %23, %8, %cst_29 {dimension_numbers = #tpu.dot_dimension_numbers<[1], [0], [0], [1], [0, 0, 1, 1], [], []>} : vector<32x32xbf16>, vector<32x96xbf16>, vector<32x96xf32> -> vector<32x96xf32>
    %36 = arith.addf %35, %17 : vector<32x96xf32>
    %37 = vector.extract_strided_slice %34 {offsets = [0, 0], sizes = [32, 32], strides = [1, 1]} : vector<32x96xf32> to vector<32x32xf32>
    %38 = vector.extract_strided_slice %36 {offsets = [0, 0], sizes = [32, 32], strides = [1, 1]} : vector<32x96xf32> to vector<32x32xf32>
    %39 = arith.addf %37, %38 : vector<32x32xf32>
    %40 = arith.negf %39 : vector<32x32xf32>
    %41 = math.exp %40 : vector<32x32xf32>
    %cst_30 = arith.constant 1.000000e+00 : f32
    %42 = vector.broadcast %cst_30 : f32 to vector<32x32xf32>
    %43 = arith.addf %42, %41 : vector<32x32xf32>
    %44 = arith.divf %42, %43 : vector<32x32xf32>
    %45 = vector.extract_strided_slice %34 {offsets = [0, 32], sizes = [32, 32], strides = [1, 1]} : vector<32x96xf32> to vector<32x32xf32>
    %46 = vector.extract_strided_slice %36 {offsets = [0, 32], sizes = [32, 32], strides = [1, 1]} : vector<32x96xf32> to vector<32x32xf32>
    %47 = arith.addf %45, %46 : vector<32x32xf32>
    %48 = arith.negf %47 : vector<32x32xf32>
    %49 = math.exp %48 : vector<32x32xf32>
    %cst_31 = arith.constant 1.000000e+00 : f32
    %50 = vector.broadcast %cst_31 : f32 to vector<32x32xf32>
    %51 = arith.addf %50, %49 : vector<32x32xf32>
    %52 = arith.divf %50, %51 : vector<32x32xf32>
    %53 = vector.extract_strided_slice %34 {offsets = [0, 64], sizes = [32, 32], strides = [1, 1]} : vector<32x96xf32> to vector<32x32xf32>
    %54 = vector.extract_strided_slice %36 {offsets = [0, 64], sizes = [32, 32], strides = [1, 1]} : vector<32x96xf32> to vector<32x32xf32>
    %55 = arith.mulf %44, %54 : vector<32x32xf32>
    %56 = arith.addf %53, %55 : vector<32x32xf32>
    %57 = math.tanh %56 : vector<32x32xf32>
    %cst_32 = arith.constant 1.000000e+00 : f32
    %58 = vector.broadcast %cst_32 : f32 to vector<32x32xf32>
    %59 = arith.subf %58, %52 : vector<32x32xf32>
    %60 = arith.mulf %59, %57 : vector<32x32xf32>
    %61 = arith.mulf %52, %22 : vector<32x32xf32>
    %62 = arith.addf %60, %61 : vector<32x32xf32>
    %63 = arith.truncf %62 : vector<32x32xf32> to vector<32x32xbf16>
    %cst_33 = arith.constant dense<0.000000e+00> : vector<32x64xf32>
    %64 = tpu.matmul %63, %6, %cst_33 {dimension_numbers = #tpu.dot_dimension_numbers<[1], [0], [0], [1], [0, 0, 1, 1], [], []>} : vector<32x32xbf16>, vector<32x64xbf16>, vector<32x64xf32> -> vector<32x64xf32>
    %65 = arith.addf %64, %11 : vector<32x64xf32>
    %66 = arith.truncf %65 : vector<32x64xf32> to vector<32x64xbf16>
    %67 = vector.extract_strided_slice %66 {offsets = [0, 0], sizes = [32, 32], strides = [1, 1]} : vector<32x64xbf16> to vector<32x32xbf16>
    %cst_34 = arith.constant dense<0.000000e+00> : vector<32x32xf32>
    %68 = tpu.matmul %3, %67, %cst_34 {dimension_numbers = #tpu.dot_dimension_numbers<[1], [0], [0], [1], [0, 0, 1, 1], [], []>} : vector<32x32xbf16>, vector<32x32xbf16>, vector<32x32xf32> -> vector<32x32xf32>
    %69 = vector.extract_strided_slice %66 {offsets = [0, 32], sizes = [32, 32], strides = [1, 1]} : vector<32x64xbf16> to vector<32x32xbf16>
    %cst_35 = arith.constant dense<0.000000e+00> : vector<32x32xf32>
    %70 = tpu.matmul %5, %69, %cst_35 {dimension_numbers = #tpu.dot_dimension_numbers<[1], [0], [0], [1], [0, 0, 1, 1], [], []>} : vector<32x32xbf16>, vector<32x32xbf16>, vector<32x32xf32> -> vector<32x32xf32>
    %71 = arith.addf %68, %70 : vector<32x32xf32>
    %72 = arith.truncf %71 : vector<32x32xf32> to vector<32x32xbf16>
    %cst_36 = arith.constant dense<0.000000e+00> : vector<32x96xf32>
    %73 = tpu.matmul %72, %7, %cst_36 {dimension_numbers = #tpu.dot_dimension_numbers<[1], [0], [0], [1], [0, 0, 1, 1], [], []>} : vector<32x32xbf16>, vector<32x96xbf16>, vector<32x96xf32> -> vector<32x96xf32>
    %74 = arith.addf %73, %14 : vector<32x96xf32>
    %cst_37 = arith.constant dense<0.000000e+00> : vector<32x96xf32>
    %75 = tpu.matmul %63, %8, %cst_37 {dimension_numbers = #tpu.dot_dimension_numbers<[1], [0], [0], [1], [0, 0, 1, 1], [], []>} : vector<32x32xbf16>, vector<32x96xbf16>, vector<32x96xf32> -> vector<32x96xf32>
    %76 = arith.addf %75, %17 : vector<32x96xf32>
    %77 = vector.extract_strided_slice %74 {offsets = [0, 0], sizes = [32, 32], strides = [1, 1]} : vector<32x96xf32> to vector<32x32xf32>
    %78 = vector.extract_strided_slice %76 {offsets = [0, 0], sizes = [32, 32], strides = [1, 1]} : vector<32x96xf32> to vector<32x32xf32>
    %79 = arith.addf %77, %78 : vector<32x32xf32>
    %80 = arith.negf %79 : vector<32x32xf32>
    %81 = math.exp %80 : vector<32x32xf32>
    %cst_38 = arith.constant 1.000000e+00 : f32
    %82 = vector.broadcast %cst_38 : f32 to vector<32x32xf32>
    %83 = arith.addf %82, %81 : vector<32x32xf32>
    %84 = arith.divf %82, %83 : vector<32x32xf32>
    %85 = vector.extract_strided_slice %74 {offsets = [0, 32], sizes = [32, 32], strides = [1, 1]} : vector<32x96xf32> to vector<32x32xf32>
    %86 = vector.extract_strided_slice %76 {offsets = [0, 32], sizes = [32, 32], strides = [1, 1]} : vector<32x96xf32> to vector<32x32xf32>
    %87 = arith.addf %85, %86 : vector<32x32xf32>
    %88 = arith.negf %87 : vector<32x32xf32>
    %89 = math.exp %88 : vector<32x32xf32>
    %cst_39 = arith.constant 1.000000e+00 : f32
    %90 = vector.broadcast %cst_39 : f32 to vector<32x32xf32>
    %91 = arith.addf %90, %89 : vector<32x32xf32>
    %92 = arith.divf %90, %91 : vector<32x32xf32>
    %93 = vector.extract_strided_slice %74 {offsets = [0, 64], sizes = [32, 32], strides = [1, 1]} : vector<32x96xf32> to vector<32x32xf32>
    %94 = vector.extract_strided_slice %76 {offsets = [0, 64], sizes = [32, 32], strides = [1, 1]} : vector<32x96xf32> to vector<32x32xf32>
    %95 = arith.mulf %84, %94 : vector<32x32xf32>
    %96 = arith.addf %93, %95 : vector<32x32xf32>
    %97 = math.tanh %96 : vector<32x32xf32>
    %cst_40 = arith.constant 1.000000e+00 : f32
    %98 = vector.broadcast %cst_40 : f32 to vector<32x32xf32>
    %99 = arith.subf %98, %92 : vector<32x32xf32>
    %100 = arith.mulf %99, %97 : vector<32x32xf32>
    %101 = arith.mulf %92, %62 : vector<32x32xf32>
    %102 = arith.addf %100, %101 : vector<32x32xf32>
    %103 = arith.truncf %102 : vector<32x32xf32> to vector<32x32xbf16>
    %cst_41 = arith.constant dense<0.000000e+00> : vector<32x64xf32>
    %104 = tpu.matmul %103, %6, %cst_41 {dimension_numbers = #tpu.dot_dimension_numbers<[1], [0], [0], [1], [0, 0, 1, 1], [], []>} : vector<32x32xbf16>, vector<32x64xbf16>, vector<32x64xf32> -> vector<32x64xf32>
    %105 = arith.addf %104, %11 : vector<32x64xf32>
    %106 = arith.truncf %105 : vector<32x64xf32> to vector<32x64xbf16>
    %107 = vector.extract_strided_slice %106 {offsets = [0, 0], sizes = [32, 32], strides = [1, 1]} : vector<32x64xbf16> to vector<32x32xbf16>
    %cst_42 = arith.constant dense<0.000000e+00> : vector<32x32xf32>
    %108 = tpu.matmul %3, %107, %cst_42 {dimension_numbers = #tpu.dot_dimension_numbers<[1], [0], [0], [1], [0, 0, 1, 1], [], []>} : vector<32x32xbf16>, vector<32x32xbf16>, vector<32x32xf32> -> vector<32x32xf32>
    %109 = vector.extract_strided_slice %106 {offsets = [0, 32], sizes = [32, 32], strides = [1, 1]} : vector<32x64xbf16> to vector<32x32xbf16>
    %cst_43 = arith.constant dense<0.000000e+00> : vector<32x32xf32>
    %110 = tpu.matmul %5, %109, %cst_43 {dimension_numbers = #tpu.dot_dimension_numbers<[1], [0], [0], [1], [0, 0, 1, 1], [], []>} : vector<32x32xbf16>, vector<32x32xbf16>, vector<32x32xf32> -> vector<32x32xf32>
    %111 = arith.addf %108, %110 : vector<32x32xf32>
    %112 = arith.truncf %111 : vector<32x32xf32> to vector<32x32xbf16>
    %cst_44 = arith.constant dense<0.000000e+00> : vector<32x96xf32>
    %113 = tpu.matmul %112, %7, %cst_44 {dimension_numbers = #tpu.dot_dimension_numbers<[1], [0], [0], [1], [0, 0, 1, 1], [], []>} : vector<32x32xbf16>, vector<32x96xbf16>, vector<32x96xf32> -> vector<32x96xf32>
    %114 = arith.addf %113, %14 : vector<32x96xf32>
    %cst_45 = arith.constant dense<0.000000e+00> : vector<32x96xf32>
    %115 = tpu.matmul %103, %8, %cst_45 {dimension_numbers = #tpu.dot_dimension_numbers<[1], [0], [0], [1], [0, 0, 1, 1], [], []>} : vector<32x32xbf16>, vector<32x96xbf16>, vector<32x96xf32> -> vector<32x96xf32>
    %116 = arith.addf %115, %17 : vector<32x96xf32>
    %117 = vector.extract_strided_slice %114 {offsets = [0, 0], sizes = [32, 32], strides = [1, 1]} : vector<32x96xf32> to vector<32x32xf32>
    %118 = vector.extract_strided_slice %116 {offsets = [0, 0], sizes = [32, 32], strides = [1, 1]} : vector<32x96xf32> to vector<32x32xf32>
    %119 = arith.addf %117, %118 : vector<32x32xf32>
    %120 = arith.negf %119 : vector<32x32xf32>
    %121 = math.exp %120 : vector<32x32xf32>
    %cst_46 = arith.constant 1.000000e+00 : f32
    %122 = vector.broadcast %cst_46 : f32 to vector<32x32xf32>
    %123 = arith.addf %122, %121 : vector<32x32xf32>
    %124 = arith.divf %122, %123 : vector<32x32xf32>
    %125 = vector.extract_strided_slice %114 {offsets = [0, 32], sizes = [32, 32], strides = [1, 1]} : vector<32x96xf32> to vector<32x32xf32>
    %126 = vector.extract_strided_slice %116 {offsets = [0, 32], sizes = [32, 32], strides = [1, 1]} : vector<32x96xf32> to vector<32x32xf32>
    %127 = arith.addf %125, %126 : vector<32x32xf32>
    %128 = arith.negf %127 : vector<32x32xf32>
    %129 = math.exp %128 : vector<32x32xf32>
    %cst_47 = arith.constant 1.000000e+00 : f32
    %130 = vector.broadcast %cst_47 : f32 to vector<32x32xf32>
    %131 = arith.addf %130, %129 : vector<32x32xf32>
    %132 = arith.divf %130, %131 : vector<32x32xf32>
    %133 = vector.extract_strided_slice %114 {offsets = [0, 64], sizes = [32, 32], strides = [1, 1]} : vector<32x96xf32> to vector<32x32xf32>
    %134 = vector.extract_strided_slice %116 {offsets = [0, 64], sizes = [32, 32], strides = [1, 1]} : vector<32x96xf32> to vector<32x32xf32>
    %135 = arith.mulf %124, %134 : vector<32x32xf32>
    %136 = arith.addf %133, %135 : vector<32x32xf32>
    %137 = math.tanh %136 : vector<32x32xf32>
    %cst_48 = arith.constant 1.000000e+00 : f32
    %138 = vector.broadcast %cst_48 : f32 to vector<32x32xf32>
    %139 = arith.subf %138, %132 : vector<32x32xf32>
    %140 = arith.mulf %139, %137 : vector<32x32xf32>
    %141 = arith.mulf %132, %102 : vector<32x32xf32>
    %142 = arith.addf %140, %141 : vector<32x32xf32>
    %143 = arith.truncf %142 : vector<32x32xf32> to vector<32x32xbf16>
    %cst_49 = arith.constant dense<0.000000e+00> : vector<32x64xf32>
    %144 = tpu.matmul %143, %6, %cst_49 {dimension_numbers = #tpu.dot_dimension_numbers<[1], [0], [0], [1], [0, 0, 1, 1], [], []>} : vector<32x32xbf16>, vector<32x64xbf16>, vector<32x64xf32> -> vector<32x64xf32>
    %145 = arith.addf %144, %11 : vector<32x64xf32>
    %146 = arith.truncf %145 : vector<32x64xf32> to vector<32x64xbf16>
    %147 = vector.extract_strided_slice %146 {offsets = [0, 0], sizes = [32, 32], strides = [1, 1]} : vector<32x64xbf16> to vector<32x32xbf16>
    %cst_50 = arith.constant dense<0.000000e+00> : vector<32x32xf32>
    %148 = tpu.matmul %3, %147, %cst_50 {dimension_numbers = #tpu.dot_dimension_numbers<[1], [0], [0], [1], [0, 0, 1, 1], [], []>} : vector<32x32xbf16>, vector<32x32xbf16>, vector<32x32xf32> -> vector<32x32xf32>
    %149 = vector.extract_strided_slice %146 {offsets = [0, 32], sizes = [32, 32], strides = [1, 1]} : vector<32x64xbf16> to vector<32x32xbf16>
    %cst_51 = arith.constant dense<0.000000e+00> : vector<32x32xf32>
    %150 = tpu.matmul %5, %149, %cst_51 {dimension_numbers = #tpu.dot_dimension_numbers<[1], [0], [0], [1], [0, 0, 1, 1], [], []>} : vector<32x32xbf16>, vector<32x32xbf16>, vector<32x32xf32> -> vector<32x32xf32>
    %151 = arith.addf %148, %150 : vector<32x32xf32>
    %152 = arith.truncf %151 : vector<32x32xf32> to vector<32x32xbf16>
    %cst_52 = arith.constant dense<0.000000e+00> : vector<32x96xf32>
    %153 = tpu.matmul %152, %7, %cst_52 {dimension_numbers = #tpu.dot_dimension_numbers<[1], [0], [0], [1], [0, 0, 1, 1], [], []>} : vector<32x32xbf16>, vector<32x96xbf16>, vector<32x96xf32> -> vector<32x96xf32>
    %154 = arith.addf %153, %14 : vector<32x96xf32>
    %cst_53 = arith.constant dense<0.000000e+00> : vector<32x96xf32>
    %155 = tpu.matmul %143, %8, %cst_53 {dimension_numbers = #tpu.dot_dimension_numbers<[1], [0], [0], [1], [0, 0, 1, 1], [], []>} : vector<32x32xbf16>, vector<32x96xbf16>, vector<32x96xf32> -> vector<32x96xf32>
    %156 = arith.addf %155, %17 : vector<32x96xf32>
    %157 = vector.extract_strided_slice %154 {offsets = [0, 0], sizes = [32, 32], strides = [1, 1]} : vector<32x96xf32> to vector<32x32xf32>
    %158 = vector.extract_strided_slice %156 {offsets = [0, 0], sizes = [32, 32], strides = [1, 1]} : vector<32x96xf32> to vector<32x32xf32>
    %159 = arith.addf %157, %158 : vector<32x32xf32>
    %160 = arith.negf %159 : vector<32x32xf32>
    %161 = math.exp %160 : vector<32x32xf32>
    %cst_54 = arith.constant 1.000000e+00 : f32
    %162 = vector.broadcast %cst_54 : f32 to vector<32x32xf32>
    %163 = arith.addf %162, %161 : vector<32x32xf32>
    %164 = arith.divf %162, %163 : vector<32x32xf32>
    %165 = vector.extract_strided_slice %154 {offsets = [0, 32], sizes = [32, 32], strides = [1, 1]} : vector<32x96xf32> to vector<32x32xf32>
    %166 = vector.extract_strided_slice %156 {offsets = [0, 32], sizes = [32, 32], strides = [1, 1]} : vector<32x96xf32> to vector<32x32xf32>
    %167 = arith.addf %165, %166 : vector<32x32xf32>
    %168 = arith.negf %167 : vector<32x32xf32>
    %169 = math.exp %168 : vector<32x32xf32>
    %cst_55 = arith.constant 1.000000e+00 : f32
    %170 = vector.broadcast %cst_55 : f32 to vector<32x32xf32>
    %171 = arith.addf %170, %169 : vector<32x32xf32>
    %172 = arith.divf %170, %171 : vector<32x32xf32>
    %173 = vector.extract_strided_slice %154 {offsets = [0, 64], sizes = [32, 32], strides = [1, 1]} : vector<32x96xf32> to vector<32x32xf32>
    %174 = vector.extract_strided_slice %156 {offsets = [0, 64], sizes = [32, 32], strides = [1, 1]} : vector<32x96xf32> to vector<32x32xf32>
    %175 = arith.mulf %164, %174 : vector<32x32xf32>
    %176 = arith.addf %173, %175 : vector<32x32xf32>
    %177 = math.tanh %176 : vector<32x32xf32>
    %cst_56 = arith.constant 1.000000e+00 : f32
    %178 = vector.broadcast %cst_56 : f32 to vector<32x32xf32>
    %179 = arith.subf %178, %172 : vector<32x32xf32>
    %180 = arith.mulf %179, %177 : vector<32x32xf32>
    %181 = arith.mulf %172, %142 : vector<32x32xf32>
    %182 = arith.addf %180, %181 : vector<32x32xf32>
    %183 = arith.truncf %182 : vector<32x32xf32> to vector<32x32xbf16>
    %cst_57 = arith.constant dense<0.000000e+00> : vector<32x64xf32>
    %184 = tpu.matmul %183, %6, %cst_57 {dimension_numbers = #tpu.dot_dimension_numbers<[1], [0], [0], [1], [0, 0, 1, 1], [], []>} : vector<32x32xbf16>, vector<32x64xbf16>, vector<32x64xf32> -> vector<32x64xf32>
    %185 = arith.addf %184, %11 : vector<32x64xf32>
    %186 = arith.truncf %185 : vector<32x64xf32> to vector<32x64xbf16>
    %187 = vector.extract_strided_slice %186 {offsets = [0, 0], sizes = [32, 32], strides = [1, 1]} : vector<32x64xbf16> to vector<32x32xbf16>
    %cst_58 = arith.constant dense<0.000000e+00> : vector<32x32xf32>
    %188 = tpu.matmul %3, %187, %cst_58 {dimension_numbers = #tpu.dot_dimension_numbers<[1], [0], [0], [1], [0, 0, 1, 1], [], []>} : vector<32x32xbf16>, vector<32x32xbf16>, vector<32x32xf32> -> vector<32x32xf32>
    %189 = vector.extract_strided_slice %186 {offsets = [0, 32], sizes = [32, 32], strides = [1, 1]} : vector<32x64xbf16> to vector<32x32xbf16>
    %cst_59 = arith.constant dense<0.000000e+00> : vector<32x32xf32>
    %190 = tpu.matmul %5, %189, %cst_59 {dimension_numbers = #tpu.dot_dimension_numbers<[1], [0], [0], [1], [0, 0, 1, 1], [], []>} : vector<32x32xbf16>, vector<32x32xbf16>, vector<32x32xf32> -> vector<32x32xf32>
    %191 = arith.addf %188, %190 : vector<32x32xf32>
    %192 = arith.truncf %191 : vector<32x32xf32> to vector<32x32xbf16>
    %cst_60 = arith.constant dense<0.000000e+00> : vector<32x96xf32>
    %193 = tpu.matmul %192, %7, %cst_60 {dimension_numbers = #tpu.dot_dimension_numbers<[1], [0], [0], [1], [0, 0, 1, 1], [], []>} : vector<32x32xbf16>, vector<32x96xbf16>, vector<32x96xf32> -> vector<32x96xf32>
    %194 = arith.addf %193, %14 : vector<32x96xf32>
    %cst_61 = arith.constant dense<0.000000e+00> : vector<32x96xf32>
    %195 = tpu.matmul %183, %8, %cst_61 {dimension_numbers = #tpu.dot_dimension_numbers<[1], [0], [0], [1], [0, 0, 1, 1], [], []>} : vector<32x32xbf16>, vector<32x96xbf16>, vector<32x96xf32> -> vector<32x96xf32>
    %196 = arith.addf %195, %17 : vector<32x96xf32>
    %197 = vector.extract_strided_slice %194 {offsets = [0, 0], sizes = [32, 32], strides = [1, 1]} : vector<32x96xf32> to vector<32x32xf32>
    %198 = vector.extract_strided_slice %196 {offsets = [0, 0], sizes = [32, 32], strides = [1, 1]} : vector<32x96xf32> to vector<32x32xf32>
    %199 = arith.addf %197, %198 : vector<32x32xf32>
    %200 = arith.negf %199 : vector<32x32xf32>
    %201 = math.exp %200 : vector<32x32xf32>
    %cst_62 = arith.constant 1.000000e+00 : f32
    %202 = vector.broadcast %cst_62 : f32 to vector<32x32xf32>
    %203 = arith.addf %202, %201 : vector<32x32xf32>
    %204 = arith.divf %202, %203 : vector<32x32xf32>
    %205 = vector.extract_strided_slice %194 {offsets = [0, 32], sizes = [32, 32], strides = [1, 1]} : vector<32x96xf32> to vector<32x32xf32>
    %206 = vector.extract_strided_slice %196 {offsets = [0, 32], sizes = [32, 32], strides = [1, 1]} : vector<32x96xf32> to vector<32x32xf32>
    %207 = arith.addf %205, %206 : vector<32x32xf32>
    %208 = arith.negf %207 : vector<32x32xf32>
    %209 = math.exp %208 : vector<32x32xf32>
    %cst_63 = arith.constant 1.000000e+00 : f32
    %210 = vector.broadcast %cst_63 : f32 to vector<32x32xf32>
    %211 = arith.addf %210, %209 : vector<32x32xf32>
    %212 = arith.divf %210, %211 : vector<32x32xf32>
    %213 = vector.extract_strided_slice %194 {offsets = [0, 64], sizes = [32, 32], strides = [1, 1]} : vector<32x96xf32> to vector<32x32xf32>
    %214 = vector.extract_strided_slice %196 {offsets = [0, 64], sizes = [32, 32], strides = [1, 1]} : vector<32x96xf32> to vector<32x32xf32>
    %215 = arith.mulf %204, %214 : vector<32x32xf32>
    %216 = arith.addf %213, %215 : vector<32x32xf32>
    %217 = math.tanh %216 : vector<32x32xf32>
    %cst_64 = arith.constant 1.000000e+00 : f32
    %218 = vector.broadcast %cst_64 : f32 to vector<32x32xf32>
    %219 = arith.subf %218, %212 : vector<32x32xf32>
    %220 = arith.mulf %219, %217 : vector<32x32xf32>
    %221 = arith.mulf %212, %182 : vector<32x32xf32>
    %222 = arith.addf %220, %221 : vector<32x32xf32>
    %223 = arith.truncf %222 : vector<32x32xf32> to vector<32x32xbf16>
    %cst_65 = arith.constant dense<0.000000e+00> : vector<32x64xf32>
    %224 = tpu.matmul %223, %6, %cst_65 {dimension_numbers = #tpu.dot_dimension_numbers<[1], [0], [0], [1], [0, 0, 1, 1], [], []>} : vector<32x32xbf16>, vector<32x64xbf16>, vector<32x64xf32> -> vector<32x64xf32>
    %225 = arith.addf %224, %11 : vector<32x64xf32>
    %226 = arith.truncf %225 : vector<32x64xf32> to vector<32x64xbf16>
    %227 = vector.extract_strided_slice %226 {offsets = [0, 0], sizes = [32, 32], strides = [1, 1]} : vector<32x64xbf16> to vector<32x32xbf16>
    %cst_66 = arith.constant dense<0.000000e+00> : vector<32x32xf32>
    %228 = tpu.matmul %3, %227, %cst_66 {dimension_numbers = #tpu.dot_dimension_numbers<[1], [0], [0], [1], [0, 0, 1, 1], [], []>} : vector<32x32xbf16>, vector<32x32xbf16>, vector<32x32xf32> -> vector<32x32xf32>
    %229 = vector.extract_strided_slice %226 {offsets = [0, 32], sizes = [32, 32], strides = [1, 1]} : vector<32x64xbf16> to vector<32x32xbf16>
    %cst_67 = arith.constant dense<0.000000e+00> : vector<32x32xf32>
    %230 = tpu.matmul %5, %229, %cst_67 {dimension_numbers = #tpu.dot_dimension_numbers<[1], [0], [0], [1], [0, 0, 1, 1], [], []>} : vector<32x32xbf16>, vector<32x32xbf16>, vector<32x32xf32> -> vector<32x32xf32>
    %231 = arith.addf %228, %230 : vector<32x32xf32>
    %232 = arith.truncf %231 : vector<32x32xf32> to vector<32x32xbf16>
    %cst_68 = arith.constant dense<0.000000e+00> : vector<32x96xf32>
    %233 = tpu.matmul %232, %7, %cst_68 {dimension_numbers = #tpu.dot_dimension_numbers<[1], [0], [0], [1], [0, 0, 1, 1], [], []>} : vector<32x32xbf16>, vector<32x96xbf16>, vector<32x96xf32> -> vector<32x96xf32>
    %234 = arith.addf %233, %14 : vector<32x96xf32>
    %cst_69 = arith.constant dense<0.000000e+00> : vector<32x96xf32>
    %235 = tpu.matmul %223, %8, %cst_69 {dimension_numbers = #tpu.dot_dimension_numbers<[1], [0], [0], [1], [0, 0, 1, 1], [], []>} : vector<32x32xbf16>, vector<32x96xbf16>, vector<32x96xf32> -> vector<32x96xf32>
    %236 = arith.addf %235, %17 : vector<32x96xf32>
    %237 = vector.extract_strided_slice %234 {offsets = [0, 0], sizes = [32, 32], strides = [1, 1]} : vector<32x96xf32> to vector<32x32xf32>
    %238 = vector.extract_strided_slice %236 {offsets = [0, 0], sizes = [32, 32], strides = [1, 1]} : vector<32x96xf32> to vector<32x32xf32>
    %239 = arith.addf %237, %238 : vector<32x32xf32>
    %240 = arith.negf %239 : vector<32x32xf32>
    %241 = math.exp %240 : vector<32x32xf32>
    %cst_70 = arith.constant 1.000000e+00 : f32
    %242 = vector.broadcast %cst_70 : f32 to vector<32x32xf32>
    %243 = arith.addf %242, %241 : vector<32x32xf32>
    %244 = arith.divf %242, %243 : vector<32x32xf32>
    %245 = vector.extract_strided_slice %234 {offsets = [0, 32], sizes = [32, 32], strides = [1, 1]} : vector<32x96xf32> to vector<32x32xf32>
    %246 = vector.extract_strided_slice %236 {offsets = [0, 32], sizes = [32, 32], strides = [1, 1]} : vector<32x96xf32> to vector<32x32xf32>
    %247 = arith.addf %245, %246 : vector<32x32xf32>
    %248 = arith.negf %247 : vector<32x32xf32>
    %249 = math.exp %248 : vector<32x32xf32>
    %cst_71 = arith.constant 1.000000e+00 : f32
    %250 = vector.broadcast %cst_71 : f32 to vector<32x32xf32>
    %251 = arith.addf %250, %249 : vector<32x32xf32>
    %252 = arith.divf %250, %251 : vector<32x32xf32>
    %253 = vector.extract_strided_slice %234 {offsets = [0, 64], sizes = [32, 32], strides = [1, 1]} : vector<32x96xf32> to vector<32x32xf32>
    %254 = vector.extract_strided_slice %236 {offsets = [0, 64], sizes = [32, 32], strides = [1, 1]} : vector<32x96xf32> to vector<32x32xf32>
    %255 = arith.mulf %244, %254 : vector<32x32xf32>
    %256 = arith.addf %253, %255 : vector<32x32xf32>
    %257 = math.tanh %256 : vector<32x32xf32>
    %cst_72 = arith.constant 1.000000e+00 : f32
    %258 = vector.broadcast %cst_72 : f32 to vector<32x32xf32>
    %259 = arith.subf %258, %252 : vector<32x32xf32>
    %260 = arith.mulf %259, %257 : vector<32x32xf32>
    %261 = arith.mulf %252, %222 : vector<32x32xf32>
    %262 = arith.addf %260, %261 : vector<32x32xf32>
    %263 = arith.truncf %262 : vector<32x32xf32> to vector<32x32xbf16>
    %cst_73 = arith.constant dense<0.000000e+00> : vector<32x64xf32>
    %264 = tpu.matmul %263, %6, %cst_73 {dimension_numbers = #tpu.dot_dimension_numbers<[1], [0], [0], [1], [0, 0, 1, 1], [], []>} : vector<32x32xbf16>, vector<32x64xbf16>, vector<32x64xf32> -> vector<32x64xf32>
    %265 = arith.addf %264, %11 : vector<32x64xf32>
    %266 = arith.truncf %265 : vector<32x64xf32> to vector<32x64xbf16>
    %267 = vector.extract_strided_slice %266 {offsets = [0, 0], sizes = [32, 32], strides = [1, 1]} : vector<32x64xbf16> to vector<32x32xbf16>
    %cst_74 = arith.constant dense<0.000000e+00> : vector<32x32xf32>
    %268 = tpu.matmul %3, %267, %cst_74 {dimension_numbers = #tpu.dot_dimension_numbers<[1], [0], [0], [1], [0, 0, 1, 1], [], []>} : vector<32x32xbf16>, vector<32x32xbf16>, vector<32x32xf32> -> vector<32x32xf32>
    %269 = vector.extract_strided_slice %266 {offsets = [0, 32], sizes = [32, 32], strides = [1, 1]} : vector<32x64xbf16> to vector<32x32xbf16>
    %cst_75 = arith.constant dense<0.000000e+00> : vector<32x32xf32>
    %270 = tpu.matmul %5, %269, %cst_75 {dimension_numbers = #tpu.dot_dimension_numbers<[1], [0], [0], [1], [0, 0, 1, 1], [], []>} : vector<32x32xbf16>, vector<32x32xbf16>, vector<32x32xf32> -> vector<32x32xf32>
    %271 = arith.addf %268, %270 : vector<32x32xf32>
    %272 = arith.truncf %271 : vector<32x32xf32> to vector<32x32xbf16>
    %cst_76 = arith.constant dense<0.000000e+00> : vector<32x96xf32>
    %273 = tpu.matmul %272, %7, %cst_76 {dimension_numbers = #tpu.dot_dimension_numbers<[1], [0], [0], [1], [0, 0, 1, 1], [], []>} : vector<32x32xbf16>, vector<32x96xbf16>, vector<32x96xf32> -> vector<32x96xf32>
    %274 = arith.addf %273, %14 : vector<32x96xf32>
    %cst_77 = arith.constant dense<0.000000e+00> : vector<32x96xf32>
    %275 = tpu.matmul %263, %8, %cst_77 {dimension_numbers = #tpu.dot_dimension_numbers<[1], [0], [0], [1], [0, 0, 1, 1], [], []>} : vector<32x32xbf16>, vector<32x96xbf16>, vector<32x96xf32> -> vector<32x96xf32>
    %276 = arith.addf %275, %17 : vector<32x96xf32>
    %277 = vector.extract_strided_slice %274 {offsets = [0, 0], sizes = [32, 32], strides = [1, 1]} : vector<32x96xf32> to vector<32x32xf32>
    %278 = vector.extract_strided_slice %276 {offsets = [0, 0], sizes = [32, 32], strides = [1, 1]} : vector<32x96xf32> to vector<32x32xf32>
    %279 = arith.addf %277, %278 : vector<32x32xf32>
    %280 = arith.negf %279 : vector<32x32xf32>
    %281 = math.exp %280 : vector<32x32xf32>
    %cst_78 = arith.constant 1.000000e+00 : f32
    %282 = vector.broadcast %cst_78 : f32 to vector<32x32xf32>
    %283 = arith.addf %282, %281 : vector<32x32xf32>
    %284 = arith.divf %282, %283 : vector<32x32xf32>
    %285 = vector.extract_strided_slice %274 {offsets = [0, 32], sizes = [32, 32], strides = [1, 1]} : vector<32x96xf32> to vector<32x32xf32>
    %286 = vector.extract_strided_slice %276 {offsets = [0, 32], sizes = [32, 32], strides = [1, 1]} : vector<32x96xf32> to vector<32x32xf32>
    %287 = arith.addf %285, %286 : vector<32x32xf32>
    %288 = arith.negf %287 : vector<32x32xf32>
    %289 = math.exp %288 : vector<32x32xf32>
    %cst_79 = arith.constant 1.000000e+00 : f32
    %290 = vector.broadcast %cst_79 : f32 to vector<32x32xf32>
    %291 = arith.addf %290, %289 : vector<32x32xf32>
    %292 = arith.divf %290, %291 : vector<32x32xf32>
    %293 = vector.extract_strided_slice %274 {offsets = [0, 64], sizes = [32, 32], strides = [1, 1]} : vector<32x96xf32> to vector<32x32xf32>
    %294 = vector.extract_strided_slice %276 {offsets = [0, 64], sizes = [32, 32], strides = [1, 1]} : vector<32x96xf32> to vector<32x32xf32>
    %295 = arith.mulf %284, %294 : vector<32x32xf32>
    %296 = arith.addf %293, %295 : vector<32x32xf32>
    %297 = math.tanh %296 : vector<32x32xf32>
    %cst_80 = arith.constant 1.000000e+00 : f32
    %298 = vector.broadcast %cst_80 : f32 to vector<32x32xf32>
    %299 = arith.subf %298, %292 : vector<32x32xf32>
    %300 = arith.mulf %299, %297 : vector<32x32xf32>
    %301 = arith.mulf %292, %262 : vector<32x32xf32>
    %302 = arith.addf %300, %301 : vector<32x32xf32>
    %303 = arith.truncf %302 : vector<32x32xf32> to vector<32x32xbf16>
    %cst_81 = arith.constant dense<0.000000e+00> : vector<32x64xf32>
    %304 = tpu.matmul %303, %6, %cst_81 {dimension_numbers = #tpu.dot_dimension_numbers<[1], [0], [0], [1], [0, 0, 1, 1], [], []>} : vector<32x32xbf16>, vector<32x64xbf16>, vector<32x64xf32> -> vector<32x64xf32>
    %305 = arith.addf %304, %11 : vector<32x64xf32>
    %306 = arith.truncf %305 : vector<32x64xf32> to vector<32x64xbf16>
    %307 = vector.extract_strided_slice %306 {offsets = [0, 0], sizes = [32, 32], strides = [1, 1]} : vector<32x64xbf16> to vector<32x32xbf16>
    %cst_82 = arith.constant dense<0.000000e+00> : vector<32x32xf32>
    %308 = tpu.matmul %3, %307, %cst_82 {dimension_numbers = #tpu.dot_dimension_numbers<[1], [0], [0], [1], [0, 0, 1, 1], [], []>} : vector<32x32xbf16>, vector<32x32xbf16>, vector<32x32xf32> -> vector<32x32xf32>
    %309 = vector.extract_strided_slice %306 {offsets = [0, 32], sizes = [32, 32], strides = [1, 1]} : vector<32x64xbf16> to vector<32x32xbf16>
    %cst_83 = arith.constant dense<0.000000e+00> : vector<32x32xf32>
    %310 = tpu.matmul %5, %309, %cst_83 {dimension_numbers = #tpu.dot_dimension_numbers<[1], [0], [0], [1], [0, 0, 1, 1], [], []>} : vector<32x32xbf16>, vector<32x32xbf16>, vector<32x32xf32> -> vector<32x32xf32>
    %311 = arith.addf %308, %310 : vector<32x32xf32>
    %312 = arith.truncf %311 : vector<32x32xf32> to vector<32x32xbf16>
    %cst_84 = arith.constant dense<0.000000e+00> : vector<32x96xf32>
    %313 = tpu.matmul %312, %7, %cst_84 {dimension_numbers = #tpu.dot_dimension_numbers<[1], [0], [0], [1], [0, 0, 1, 1], [], []>} : vector<32x32xbf16>, vector<32x96xbf16>, vector<32x96xf32> -> vector<32x96xf32>
    %314 = arith.addf %313, %14 : vector<32x96xf32>
    %cst_85 = arith.constant dense<0.000000e+00> : vector<32x96xf32>
    %315 = tpu.matmul %303, %8, %cst_85 {dimension_numbers = #tpu.dot_dimension_numbers<[1], [0], [0], [1], [0, 0, 1, 1], [], []>} : vector<32x32xbf16>, vector<32x96xbf16>, vector<32x96xf32> -> vector<32x96xf32>
    %316 = arith.addf %315, %17 : vector<32x96xf32>
    %317 = vector.extract_strided_slice %314 {offsets = [0, 0], sizes = [32, 32], strides = [1, 1]} : vector<32x96xf32> to vector<32x32xf32>
    %318 = vector.extract_strided_slice %316 {offsets = [0, 0], sizes = [32, 32], strides = [1, 1]} : vector<32x96xf32> to vector<32x32xf32>
    %319 = arith.addf %317, %318 : vector<32x32xf32>
    %320 = arith.negf %319 : vector<32x32xf32>
    %321 = math.exp %320 : vector<32x32xf32>
    %cst_86 = arith.constant 1.000000e+00 : f32
    %322 = vector.broadcast %cst_86 : f32 to vector<32x32xf32>
    %323 = arith.addf %322, %321 : vector<32x32xf32>
    %324 = arith.divf %322, %323 : vector<32x32xf32>
    %325 = vector.extract_strided_slice %314 {offsets = [0, 32], sizes = [32, 32], strides = [1, 1]} : vector<32x96xf32> to vector<32x32xf32>
    %326 = vector.extract_strided_slice %316 {offsets = [0, 32], sizes = [32, 32], strides = [1, 1]} : vector<32x96xf32> to vector<32x32xf32>
    %327 = arith.addf %325, %326 : vector<32x32xf32>
    %328 = arith.negf %327 : vector<32x32xf32>
    %329 = math.exp %328 : vector<32x32xf32>
    %cst_87 = arith.constant 1.000000e+00 : f32
    %330 = vector.broadcast %cst_87 : f32 to vector<32x32xf32>
    %331 = arith.addf %330, %329 : vector<32x32xf32>
    %332 = arith.divf %330, %331 : vector<32x32xf32>
    %333 = vector.extract_strided_slice %314 {offsets = [0, 64], sizes = [32, 32], strides = [1, 1]} : vector<32x96xf32> to vector<32x32xf32>
    %334 = vector.extract_strided_slice %316 {offsets = [0, 64], sizes = [32, 32], strides = [1, 1]} : vector<32x96xf32> to vector<32x32xf32>
    %335 = arith.mulf %324, %334 : vector<32x32xf32>
    %336 = arith.addf %333, %335 : vector<32x32xf32>
    %337 = math.tanh %336 : vector<32x32xf32>
    %cst_88 = arith.constant 1.000000e+00 : f32
    %338 = vector.broadcast %cst_88 : f32 to vector<32x32xf32>
    %339 = arith.subf %338, %332 : vector<32x32xf32>
    %340 = arith.mulf %339, %337 : vector<32x32xf32>
    %341 = arith.mulf %332, %302 : vector<32x32xf32>
    %342 = arith.addf %340, %341 : vector<32x32xf32>
    %cst_89 = arith.constant 1.000000e+00 : bf16
    %343 = vector.broadcast %cst_89 : bf16 to vector<1x32xbf16>
    %344 = arith.truncf %342 : vector<32x32xf32> to vector<32x32xbf16>
    %cst_90 = arith.constant dense<0.000000e+00> : vector<1x32xf32>
    %345 = tpu.matmul %343, %344, %cst_90 {dimension_numbers = #tpu.dot_dimension_numbers<[1], [0], [0], [1], [0, 0, 1, 1], [], []>} : vector<1x32xbf16>, vector<32x32xbf16>, vector<1x32xf32> -> vector<1x32xf32>
    %346 = arith.truncf %345 : vector<1x32xf32> to vector<1x32xbf16>
    %c0_91 = arith.constant 0 : index
    %c0_92 = arith.constant 0 : index
    %347 = vector.load %arg11[%c0_91, %c0_92] : memref<32x128xbf16, #tpu.memory_space<vmem>>, vector<32x128xbf16>
    %cst_93 = arith.constant dense<0.000000e+00> : vector<1x128xf32>
    %348 = tpu.matmul %346, %347, %cst_93 {dimension_numbers = #tpu.dot_dimension_numbers<[1], [0], [0], [1], [0, 0, 1, 1], [], []>} : vector<1x32xbf16>, vector<32x128xbf16>, vector<1x128xf32> -> vector<1x128xf32>
    %c0_94 = arith.constant 0 : index
    %c0_95 = arith.constant 0 : index
    %349 = vector.load %arg12[%c0_94, %c0_95] : memref<1x128xf32, #tpu.memory_space<vmem>>, vector<1x128xf32>
    %350 = arith.addf %348, %349 : vector<1x128xf32>
    %c0_96 = arith.constant 0 : index
    %c0_97 = arith.constant 0 : index
    %c0_98 = arith.constant 0 : index
    %351 = vector.load %arg13[%c0_96, %c0_97, %c0_98] : memref<1x1x128xf32, #tpu.memory_space<vmem>>, vector<1x1x128xf32>
    %352 = vector.shape_cast %351 : vector<1x1x128xf32> to vector<1x128xf32>
    %353 = vector.shape_cast %350 : vector<1x128xf32> to vector<1x1x128xf32>
    tpu.vector_store %arg13[%c0_96, %c0_97, %c0_98], %353 {strides = array<i32>} : memref<1x1x128xf32, #tpu.memory_space<vmem>>, vector<1x1x128xf32>,
    return
  }
  func.func @transform_0(%arg0: i32) -> (i32, i32, i32) {
    %c0_i32 = arith.constant 0 : i32
    %c0_i32_0 = arith.constant 0 : i32
    %c0_i32_1 = arith.constant 0 : i32
    return %arg0, %c0_i32, %c0_i32_0 : i32, i32, i32
  }
  func.func @transform_1(%arg0: i32) -> (i32, i32, i32, i32) {
    %c0_i32 = arith.constant 0 : i32
    %c0_i32_0 = arith.constant 0 : i32
    %c0_i32_1 = arith.constant 0 : i32
    %c0_i32_2 = arith.constant 0 : i32
    return %arg0, %c0_i32, %c0_i32_0, %c0_i32_1 : i32, i32, i32, i32
  }
  func.func @transform_2(%arg0: i32) -> (i32, i32) {
    %c0_i32 = arith.constant 0 : i32
    %c0_i32_0 = arith.constant 0 : i32
    %c0_i32_1 = arith.constant 0 : i32
    return %c0_i32, %c0_i32_0 : i32, i32
  }
  func.func @transform_3(%arg0: i32) -> (i32, i32) {
    %c0_i32 = arith.constant 0 : i32
    %c0_i32_0 = arith.constant 0 : i32
    %c0_i32_1 = arith.constant 0 : i32
    return %c0_i32, %c0_i32_0 : i32, i32
  }
  func.func @transform_4(%arg0: i32) -> (i32, i32) {
    %c0_i32 = arith.constant 0 : i32
    %c0_i32_0 = arith.constant 0 : i32
    %c0_i32_1 = arith.constant 0 : i32
    return %c0_i32, %c0_i32_0 : i32, i32
  }
  func.func @transform_5(%arg0: i32) -> (i32, i32) {
    %c0_i32 = arith.constant 0 : i32
    %c0_i32_0 = arith.constant 0 : i32
    %c0_i32_1 = arith.constant 0 : i32
    return %c0_i32, %c0_i32_0 : i32, i32
  }
  func.func @transform_6(%arg0: i32) -> (i32, i32) {
    %c0_i32 = arith.constant 0 : i32
    %c0_i32_0 = arith.constant 0 : i32
    %c0_i32_1 = arith.constant 0 : i32
    return %c0_i32, %c0_i32_0 : i32, i32
  }
  func.func @transform_7(%arg0: i32) -> (i32, i32) {
    %c0_i32 = arith.constant 0 : i32
    %c0_i32_0 = arith.constant 0 : i32
    %c0_i32_1 = arith.constant 0 : i32
    return %c0_i32, %c0_i32_0 : i32, i32
  }
  func.func @transform_8(%arg0: i32) -> (i32, i32) {
    %c0_i32 = arith.constant 0 : i32
    %c0_i32_0 = arith.constant 0 : i32
    %c0_i32_1 = arith.constant 0 : i32
    return %c0_i32, %c0_i32_0 : i32, i32
  }
  func.func @transform_9(%arg0: i32) -> (i32, i32) {
    %c0_i32 = arith.constant 0 : i32
    %c0_i32_0 = arith.constant 0 : i32
    %c0_i32_1 = arith.constant 0 : i32
    return %c0_i32, %c0_i32_0 : i32, i32
  }
  func.func @transform_10(%arg0: i32) -> (i32, i32) {
    %c0_i32 = arith.constant 0 : i32
    %c0_i32_0 = arith.constant 0 : i32
    %c0_i32_1 = arith.constant 0 : i32
    return %c0_i32, %c0_i32_0 : i32, i32
  }
  func.func @transform_11(%arg0: i32) -> (i32, i32) {
    %c0_i32 = arith.constant 0 : i32
    %c0_i32_0 = arith.constant 0 : i32
    %c0_i32_1 = arith.constant 0 : i32
    return %c0_i32, %c0_i32_0 : i32, i32
  }
  func.func @transform_12(%arg0: i32) -> (i32, i32, i32) {
    %c0_i32 = arith.constant 0 : i32
    %c0_i32_0 = arith.constant 0 : i32
    %c0_i32_1 = arith.constant 0 : i32
    return %arg0, %c0_i32, %c0_i32_0 : i32, i32, i32
  }
}

</mosaic_0001>

<bundles_post_ra>
// kernel: tpu_custom_call.1
= control target key start
LH: loop header
LB: loop body
LE: loop exit
PB: predicated region body
PF: predicated region fallthrough
CT: control target
= control target key end

     0   :  { %17 = vsyncpa [#allocation3], 0  ;;  %s5878_s0 = inlined_call_operand.vmem [shape: bf16[4,32,16], index: 0, kind: input, shape index: {}]   ;;  %s5879_s1 = inlined_call_operand.hbm [shape: bf16[4,2,32,32], index: 1, kind: input, shape index: {}]   ;;  %s5880_s2 = inlined_call_operand.vmem [shape: bf16[16,32], index: 2, kind: input, shape index: {}]   ;;  %s5881_s3 = inlined_call_operand.vmem [shape: f32[1,32], index: 3, kind: input, shape index: {}]   ;;  %s5882_s4 = inlined_call_operand.vmem [shape: bf16[32,64], index: 4, kind: input, shape index: {}]   ;;  %s5883_s5 = inlined_call_operand.vmem [shape: f32[1,64], index: 5, kind: input, shape index: {}]   ;;  %s5884_s6 = inlined_call_operand.vmem [shape: bf16[32,96], index: 6, kind: input, shape index: {}]   ;;  %s5885_s7 = inlined_call_operand.vmem [shape: f32[1,96], index: 7, kind: input, shape index: {}]   ;;  %s5886_s8 = inlined_call_operand.vmem [shape: bf16[32,96], index: 8, kind: input, shape index: {}]   ;;  %s5887_s9 = inlined_call_operand.vmem [shape: f32[1,96], index: 9, kind: input, shape index: {}]   ;;  %s5888_s10 = inlined_call_operand.vmem [shape: bf16[32,128], index: 10, kind: input, shape index: {}]   ;;  %s5889_s11 = inlined_call_operand.vmem [shape: f32[1,128], index: 11, kind: input, shape index: {}]   ;;  %s5890_s12 = inlined_call_operand.hbm [shape: f32[4,1,128], index: 12, kind: output, shape index: {}]  }
   0x1   :  { %19 = vsyncpa [#allocation3 + $0x1], 0 }
   0x2   :  { %20 = vsyncpa [#allocation4], 0 }
   0x3   :  { %22 = vsyncpa [#allocation4 + $0x1], 0  ;;  %s5028_s21 = smov 0   ;;  %s5030_s22 = smov 0  }
   0x4   :  { %s5032_s23 = smov 0   ;;  %s5034_s24 = smov 0  }
   0x5 LB: > { %5898 = sst [smem:[#allocation8_spill]] %s4939_s21  ;;  %s5049_s25 = sadd.s32 4294967295, %s4951_s24   ;;  %s4951_s24 = sphi %s5034_s24, %s5913_s24   ;;  %s4947_s23 = sphi %s5032_s23, %s5915_s23   ;;  %s4943_s22 = sphi %s5030_s22, %s5917_s22   ;;  %s4939_s21 = sphi %s5028_s21, %s5916_s21  }
   0x6   : > { %5899 = sst [smem:[#allocation9_spill]] %s4947_s23  ;;  %s3913_s26 = sadd.s32 4294967294, %s4951_s24  }
   0x7   : > { %s5053_s27 = sadd.s32 1, %s4951_s24   ;;  %s61_s28 = sadd.s32 1, %s4947_s23 }
   0x8   : > { %5900 = sst [smem:[#allocation10_spill]] %s5053_s27  ;;  %s58_s29 = ssub.s32 %s4951_s24, %s5053_s27 }
   0x9   : > { %p68_p0 = scmp.ne.s32.totalorder %s4947_s23, %s4943_s22  ;;  %p59_p1 = scmp.eq.s32.totalorder %s58_s29, 0 }
   0xa   : > { %p69_p2 = scmp.eq.s32.totalorder %s4951_s24, 0  ;;  %p74_p3 = scmp.ne.s32.totalorder %s4943_s22, %s4939_s21 }
   0xb   : > { %p75_p4 = scmp.eq.s32.totalorder %s5049_s25, 0  ;;  %p308_p7 = scmp.eq.s32.totalorder %s5049_s25, 3 }
   0xc   : > { %s5065_s30 = scalar_select %p59_p1, %s4947_s23, %s61_s28  }
   0xd   : > { %p5067_p5 = por %p69_p2, %p68_p0  ;;  %p5071_p6 = por %p75_p4, %p74_p3 }
   0xe   : > { %5901 = sst [smem:[#allocation11_spill]] %s5065_s30  ;;  %p314_p8 = scmp.eq.s32.totalorder %s3913_s26, 3 }
   0xf   : > { %s5903_s14 = scalar_select %p5071_p6, 1, 0 }
  0x10   : > { %p4590_p9 = scmp.lt.s32.totalorder %s4951_s24, 4  ;;  %p5077_p10 = por %p308_p7, %p68_p0 }
  0x11   : > { %p5081_p11 = por %p314_p8, %p74_p3  ;;  %s372_s17 = sand.u32 1, %s4947_s23  }
  0x12   : > { %s5904_s15 = scalar_select %p5077_p10, 1, 0 }
  0x13   : > { %s5905_s16 = scalar_select %p5081_p11, 1, 0 }
  0x14   : > { %s4065_s18 = sshll.u32 %s4951_s24, 9  ;;  %s3916_s19 = sshll.u32 %s372_s17, 5 }
  0x15   : > { %5906 = sst [smem:[#allocation12_spill]] %s5905_s16  ;;  %s5090_s29 = scalar_lea.hbm %s5879_s1, %s4065_s18 }
  0x16   : > { %s376_s26 = scalar_lea.vmem [#allocation2], %s3916_s19  ;;  %p5094_p12 = pnand %p4590_p9, %p5067_p5 }
  0x17   : > { %s383_s30 = sshll.u32 %s376_s26, 4  ;;  %s5100_s23 = scalar_lea.sflag [#allocation3], %s372_s17  ;;  %s5098_s30 = int_to_ptr.vmem [resolvable:$true] %s383_s30 }
  0x18   : > { %s4859_s16 = scalar_lea.hbm %s5090_s29, 512  ;;  %p4861_p0 = pneg %p5094_p12 }
  0x19   : > { %p4860_p13 = scmp.ne.s32.totalorder %s5090_s29, %s4859_s16  ;;  %s4864_s19 = scalar_lea.hbm %s5879_s1, 2048 }
  0x1a   : > { %p4865_p3 = scmp.lt.s32.totalorder %s5090_s29, %s5879_s1  ;;  %p4866_p4 = scmp.lt.s32.totalorder %s4864_s19, %s4859_s16 }
  0x1b   : > { %p4862_p1 = pnand %p4861_p0, %p4860_p13 }
  0x1c   : > { %p4867_p5 = por %p4866_p4, %p4865_p3 }
  0x1d   : > { %p4863_p2 = pneg %p4862_p1 }
  0x1f   : > { %p4868_p7 = pnand %p4867_p5, %p4863_p2 }
  0x21   : > { %4871 = shalt.err (!%p4868_p7)
}
  0x22   : > { %s4872_s17 = scalar_lea.vmem %s5098_s30, 512  ;;  %s4953_s26 = smov [#allocation2]  }
  0x23   : > { %p4873_p8 = scmp.ne.s32.totalorder %s5098_s30, %s4872_s17  ;;  %s4877_s21 = sshll.u32 %s4953_s26, 4  ;;  %s4878_s21 = int_to_ptr.vmem [resolvable:$false] %s4877_s21 }
  0x24   : > { %s4879_s18 = scalar_lea.vmem %s4878_s21, 1024  ;;  %p4880_p1 = scmp.lt.s32.totalorder %s5098_s30, %s4878_s21 }
  0x25   : > { %p4875_p9 = pnand %p4873_p8, %p4861_p0  ;;  %p4881_p11 = scmp.lt.s32.totalorder %s4879_s18, %s4872_s17 }
  0x27   : > { %p4876_p13 = pneg %p4875_p9  ;;  %p4882_p10 = por %p4881_p11, %p4880_p1 }
  0x29   : > { %p4883_p6 = pnand %p4882_p10, %p4876_p13 }
  0x2b   : > { %4886 = shalt.err (!%p4883_p6)
}
  0x2c   : > { %s4954_s16 = smov 64   ;;  %s4955_s20 = smov 4  }
  0x2d   : > { %4585 = dma.hbm_to_vmem [thread:$0]  (!%p5094_p12), %s5090_s29, 512, %s5098_s30, %s5100_s23, %s4954_s16, %s4954_s16, %s4955_s20  }
  0x2e   : > { %p3919_p0 = scmp.ge.s32.totalorder %s4951_s24, 1  ;;  %p391_p2 = scmp.lt.s32.totalorder %s4951_s24, 5 }
  0x30   : > { %p392_p3 = pnand %p3919_p0, %p391_p2 }
  0x31   : > { %s5124_s21 = sand.u32 (!%p392_p3), 1, %s4943_s22   ;;  %p5908_p6 = scmp.ne.s32.totalorder (!%p392_p3), %s5903_s14, 0 }
  0x32   : > { %395 = sbr.rel (%p392_p3) target bundleno = 9769 (0x2629), region = 68  ;;  %s3920_s19 = sshll.u32 (!%p392_p3), %s5124_s21, 5 }
  0x33   : > { %s398_s13 = scalar_lea.sflag (!%p392_p3), [#allocation3], %s5124_s21  ;;  %s5128_s28 = scalar_lea.vmem (!%p392_p3), [#allocation2], %s3920_s19 }
  0x37   : > { %4930 = dma.done.wait (%p5908_p6), %s398_s13, 512  }
  0x38   : > { %4932 = vsyncadd (%p5908_p6), %s398_s13, 4294966784  ;;  %p446_p10 = scmp.lt.s32.totalorder %s5049_s25, 3  ;;  %v4632_v0 = vld [vmem:[%s5880_s2] sm:$0xff]   ;;  %vm524_vm0 = vcmask 130048   ;;  %v5145_v3 = vld [vmem:[%s5882_s4 + $0x8] sm:$0xff]   ;;  %vm594_vm1 = vcmask 261120  }
  0x39   : > { %4236 = vmatprep.subr.bf16.mxu0 %v4632_v0  ;;  %4242 = vmatprep.subr.bf16.mxu1 %v5145_v3  ;;  %v5152_v4 = vld [vmem:[%s5882_s4] sm:$0xff]   ;;  %v5179_v18 = vld [vmem:[%s5128_s28 + $0x10] sm:$0xff]   ;;  %s4956_s29 = smov 96   ;;  %v5196_v29 = vld [vmem:[%s5886_s8 + $0x8] sm:$0xff]   ;;  %s4957_s30 = smov 64   ;;  %vm4960_vm2 = vmmov 0  }
  0x3a   : > { %s447_s23 = scalar_select %p446_p10, %s5049_s25, 3  ;;  %4237 = vmatpush3.bf16.msra.mxu0 %v4632_v0  ;;  %4243 = vmatpush3.bf16.msra.mxu1 %v5145_v3  ;;  %v3930_v8 = vld [vmem:[%s5881_s3] ss:$0 sm:$0xff]  ;;  %v5200_v30 = vld [vmem:[%s5128_s28 + $0x8] sm:$0xff]   ;;  %v5218_v34 = vld [vmem:[%s5128_s28 + $0x18] sm:$0xff]  }
  0x3b   : > { %4244 = vmatprep.subr.bf16.mxu1 %v5152_v4  ;;  %v5174_v16 = vld [vmem:[%s5128_s28] sm:$0xff]   ;;  %v5225_v35 = vld [vmem:[%s5884_s6 + $0x8] sm:$0xff]   ;;  %s4958_s18 = smov 32   ;;  %s4062_s20 = sshll.u32 %s5049_s25, 4 }
  0x3c   : > { %s4066_s27 = sshll.u32 %s447_s23, 4  ;;  %v5184_v19 = vld [vmem:[%s5883_s5] ss:$0 sm:$0xff]  ;;  %s445_s19 = scalar_lea.vmem [#allocation5], %s5124_s21 }
  0x3d   : > { %s450_s17 = scalar_lea.vmem %s5878_s0, %s4066_s27  ;;  %v5206_v31 = vld [vmem:[%s5886_s8] sm:$0xff]   ;;  %s3835_s13 = sshll.u32 %s445_s19, 4  ;;  %s5838_s13 = int_to_ptr.vmem [resolvable:$true] %s3835_s13 }
  0x3e   : > { %v4633_v1 = vld [vmem:[%s450_s17] sm:$0xff]   ;;  %v4634_v2 = vld [vmem:[%s450_s17 + $0x8] sm:$0xff]   ;;  %4245 = vmatpush3.bf16.msra.mxu1 %v5152_v4  ;;  %s5836_s17 = scalar_lea.hbm %s5890_s12, %s4062_s20  ;;  %s3823_s26 = scalar_lea.sflag [#allocation4], %s5124_s21 }
  0x3f   : > { %4238 = vmatprep.mubr.msk.bf16.mxu0 %vm524_vm0, %v4633_v1  ;;  %v5232_v36 = vld [vmem:[%s5884_s6] sm:$0xff]   ;;  %p5909_p12 = scmp.ne.s32.totalorder %s5904_s15, 0  ;;  %s4962_s25 = smov [#allocation5]  }
  0x40   : > { %4239 = vmatmul.mubr.msk.bf16.vlgmr.msra.gmra.mxu0 %vm524_vm0, %v4634_v2  ;;  %v5240_v41 = vld [vmem:[%s5887_s9] ss:$0 sm:$0xff] }
  0x41   : > { %4254 = vmatprep.mubr.msk.bf16.mxu0 %vm594_vm1, %v5179_v18  ;;  %v5258_v60 = vld [vmem:[%s5885_s7] ss:$0 sm:$0xff] }
 0x100   : > { %v4240_v5 = vpop.f32.mrf.mxu0 }
 0x101   : > { %v5165_v13 = vadd.f32 %v4240_v5, %v3930_v8 }
 0x102   : > { %v565_v6 = vpop.f32.mrf.mxu0 }
 0x103   : > { %v5161_v11 = vadd.f32 %v3930_v8, %v565_v6 }
 0x104   : > { %v4241_v7 = vpop.f32.mrf.mxu0 }
 0x105   : > { %v5159_v9 = vadd.f32 %v4241_v7, %v3930_v8 }
 0x106   : > { %v568_v10 = vpop.f32.mrf.mxu0 }
 0x107   : > { %v5163_v12 = vadd.f32 %v3930_v8, %v568_v10  ;;  %v581_v15 = vpack.c.bf16 %v5159_v9, %v5165_v13 }
 0x109   : > { %v580_v14 = vpack.c.bf16 %v5163_v12, %v5161_v11 }
 0x10b   : > { %4246 = vmatprep.mubr.msk.bf16.mxu1 %vm594_vm1, %v580_v14 }
 0x10c   : > { %4247 = vmatmul.mubr.msk.bf16.vlgmr.msra.gmra.mxu1 %vm594_vm1, %v581_v15 }
 0x10d   : > { %4262 = vmatprep.mubr.msk.bf16.mxu1 %vm594_vm1, %v5174_v16 }
 0x1cc   : > { %v4248_v17 = vpop.f32.mrf.mxu1 }
 0x1cd   : > { %v644_v22 = vadd.f32 %v4248_v17, %v5184_v19 }
 0x1ce   : > { %v635_v20 = vpop.f32.mrf.mxu1 }
 0x1cf   : > { %v636_v25 = vadd.f32 %v5184_v19, %v635_v20 }
 0x1d0   : > { %v4249_v21 = vpop.f32.mrf.mxu1 }
 0x1d1   : > { %v647_v23 = vadd.f32 %v4249_v21, %v5184_v19 }
 0x1d2   : > { %v638_v24 = vpop.f32.mrf.mxu1 }
 0x1d3   : > { %v651_v26 = vpack.c.bf16 %v647_v23, %v644_v22  ;;  %v639_v27 = vadd.f32 %v5184_v19, %v638_v24 }
 0x1d5   : > { %v650_v28 = vpack.c.bf16 %v639_v27, %v636_v25  ;;  %666 = vrot.lane.b32.xlu0 %v651_v26, %s4956_s29  ;;  %4258 = vmatprep.subr.bf16.mxu1 %v651_v26 }
 0x1d6   : > { %4259 = vmatpush3.bf16.msra.mxu1 %v651_v26 }
 0x1d7   : > { %4260 = vmatprep.subr.bf16.mxu1 %v650_v28 }
 0x1d9   : > { %664 = vrot.lane.b32.xlu0 %v650_v28, %s4956_s29 }
 0x1da   : > { %4261 = vmatpush3.bf16.msra.mxu1 %v650_v28 }
 0x1db   : > { %4274 = vmatprep.subr.bf16.mxu1 %v5196_v29 }
 0x1dd   : > { %4263 = vmatmul.mubr.msk.bf16.vlgmr.msra.gmra.mxu1 %vm594_vm1, %v5200_v30 }
 0x1de   : > { %4275 = vmatpush3.bf16.msra.mxu1 %v5196_v29  ;;  %4278 = vmatprep.mubr.msk.bf16.mxu1 %vm594_vm1, %v580_v14 }
 0x1df   : > { %4276 = vmatprep.subr.bf16.mxu1 %v5206_v31 }
 0x1e2   : > { %4277 = vmatpush3.bf16.msra.mxu1 %v5206_v31 }
 0x1e5   : > { %4279 = vmatmul.mubr.msk.bf16.vlgmr.msra.gmra.mxu1 %vm594_vm1, %v581_v15 }
 0x1e6   : > { %4294 = vmatprep.mubr.msk.bf16.mxu1 %vm594_vm1, %v5179_v18 }
 0x247   : > { %v667_v32 = vpop.permute.xlu0 %666 }
 0x248   : > { %4250 = vmatprep.subr.bf16.mxu0 %v667_v32 }
 0x249   : > { %4251 = vmatpush3.bf16.msra.mxu0 %v667_v32 }
 0x24b   : > { %v665_v33 = vpop.permute.xlu0 %664 }
 0x24c   : > { %4252 = vmatprep.subr.bf16.mxu0 %v665_v33 }
 0x24d   : > { %4253 = vmatpush3.bf16.msra.mxu0 %v665_v33 }
 0x24e   : > { %4266 = vmatprep.subr.bf16.mxu0 %v5225_v35 }
 0x250   : > { %4255 = vmatmul.mubr.msk.bf16.vlgmr.msra.gmra.mxu0 %vm594_vm1, %v5218_v34 }
 0x251   : > { %4267 = vmatpush3.bf16.msra.mxu0 %v5225_v35 }
 0x252   : > { %4268 = vmatprep.subr.bf16.mxu0 %v5232_v36 }
 0x255   : > { %4269 = vmatpush3.bf16.msra.mxu0 %v5232_v36 }
 0x256   : > { %4282 = vmatprep.subr.bf16.mxu0 %v5145_v3 }
 0x29d   : > { %v4264_v37 = vpop.f32.mrf.mxu1 }
 0x29f   : > { %v775_v38 = vpop.f32.mrf.mxu1 }
 0x2a1   : > { %v4265_v39 = vpop.f32.mrf.mxu1 }
 0x2a3   : > { %v778_v40 = vpop.f32.mrf.mxu1 }
 0x2a5   : > { %v4280_v42 = vpop.f32.mrf.mxu1 }
 0x2a6   : > { %v914_v43 = vadd.f32 %v4280_v42, %v5240_v41 }
 0x2a7   : > { %v905_v44 = vpop.f32.mrf.mxu1 }
 0x2a8   : > { %v906_v45 = vadd.f32 %v5240_v41, %v905_v44  ;;  %956 = vrot.lane.b32.xlu0 %v914_v43, %s4957_s30 }
 0x2a9   : > { %v4281_v46 = vpop.f32.mrf.mxu1 }
 0x2aa   : > { %952 = vrot.lane.b32.xlu1 %v906_v45, %s4957_s30  ;;  %v917_v49 = vadd.f32 %v4281_v46, %v5240_v41 }
 0x2ab   : > { %v908_v47 = vpop.f32.mrf.mxu1 }
 0x2ac   : > { %v909_v48 = vadd.f32 %v5240_v41, %v908_v47 }
 0x2ae   : > { %954 = vrot.lane.b32.xlu1 %v909_v48, %s4957_s30 }
 0x2b2   : > { %958 = vrot.lane.b32.xlu1 %v917_v49, %s4957_s30 }
 0x310   : > { %v4256_v50 = vpop.f32.mrf.mxu0 }
 0x311   : > { %v784_v57 = vadd.f32 %v4264_v37, %v4256_v50 }
 0x312   : > { %v710_v51 = vpop.f32.mrf.mxu0 }
 0x313   : > { %v776_v55 = vadd.f32 %v775_v38, %v710_v51 }
 0x314   : > { %v4257_v52 = vpop.f32.mrf.mxu0 }
 0x315   : > { %v787_v53 = vadd.f32 %v4265_v39, %v4257_v52 }
 0x316   : > { %v713_v54 = vpop.f32.mrf.mxu0 }
 0x317   : > { %v779_v56 = vadd.f32 %v778_v40, %v713_v54  ;;  %v791_v59 = vpack.c.bf16 %v787_v53, %v784_v57 }
 0x319   : > { %v790_v58 = vpack.c.bf16 %v779_v56, %v776_v55 }
 0x31b   : > { %4270 = vmatprep.mubr.msk.bf16.mxu0 %vm594_vm1, %v790_v58 }
 0x31c   : > { %4271 = vmatmul.mubr.msk.bf16.vlgmr.msra.gmra.mxu0 %vm594_vm1, %v791_v59  ;;  %v953_v33 = vpop.permute.xlu1 %952 }
 0x31d   : > { %4283 = vmatpush3.bf16.msra.mxu0 %v5145_v3 }
 0x31e   : > { %4284 = vmatprep.subr.bf16.mxu0 %v5152_v4 }
 0x320   : > { %v955_v40 = vpop.permute.xlu1 %954 }
 0x321   : > { %4285 = vmatpush3.bf16.msra.mxu0 %v5152_v4 }
 0x324   : > { %v959_v47 = vpop.permute.xlu1 %958 }
 0x3dc   : > { %v4272_v61 = vpop.f32.mrf.mxu0 }
 0x3dd   : > { %v853_v62 = vadd.f32 %v4272_v61, %v5258_v60 }
 0x3de   : > { %v844_v63 = vpop.f32.mrf.mxu0 }
 0x3df   : > { %v922_v0 = vadd.f32 %v914_v43, %v853_v62  ;;  %v845_v1 = vadd.f32 %v5258_v60, %v844_v63  ;;  %v957_v43 = vpop.permute.xlu0 %956 }
 0x3e0   : > { %v4273_v2 = vpop.f32.mrf.mxu0 }
 0x3e1   : > { %v3958_v5 = vmul.f32 -1.442695, %v922_v0  ;;  %v920_v6 = vadd.f32 %v906_v45, %v845_v1  ;;  %v856_v7 = vadd.f32 %v4273_v2, %v5258_v60 }
 0x3e2   : > { %v847_v8 = vpop.f32.mrf.mxu0 }
 0x3e3   : > { %4647 = vpow2.f32 %v3958_v5  ;;  %v3956_v10 = vmul.f32 -1.442695, %v920_v6  ;;  %v923_v14 = vadd.f32 %v917_v49, %v856_v7  ;;  %v848_v15 = vadd.f32 %v5258_v60, %v847_v8 }
 0x3e5   : > { %4649 = vpow2.f32 %v3956_v10  ;;  %v3959_v17 = vmul.f32 -1.442695, %v923_v14  ;;  %v921_v20 = vadd.f32 %v909_v48, %v848_v15 }
 0x3e7   : > { %4651 = vpow2.f32 %v3959_v17  ;;  %v3957_v21 = vmul.f32 -1.442695, %v921_v20 }
 0x3e9   : > { %4653 = vpow2.f32 %v3957_v21 }
 0x3f0   : > { %v4648_v22 = vpop.eup %4647 }
 0x3f1   : > { %v938_v24 = vadd.f32 1.0, %v4648_v22 }
 0x3f2   : > { %v4650_v23 = vpop.eup %4649 }
 0x3f3   : > { %v936_v25 = vadd.f32 1.0, %v4650_v23 }
 0x3f4   : > { %v4652_v26 = vpop.eup %4651 }
 0x3f5   : > { %4655 = vrcp.f32 %v936_v25  ;;  %v939_v28 = vadd.f32 1.0, %v4652_v26 }
 0x3f6   : > { %v4654_v27 = vpop.eup %4653  ;;  %4657 = vrcp.f32 %v938_v24 }
 0x3f7   : > { %v937_v32 = vadd.f32 1.0, %v4654_v27 }
 0x3f9   : > { %4659 = vrcp.f32 %v937_v32 }
 0x3fa   : > { %4661 = vrcp.f32 %v939_v28 }
 0x402   : > { %v4656_v37 = vpop.eup %4655 }
 0x403   : > { %v964_v38 = vmul.f32 %v4656_v37, %v953_v33  ;;  %v4658_v39 = vpop.eup %4657  ;;  %v992_v0 = vsub.f32 1.0, %v4656_v37 }
 0x404   : > { %v966_v45 = vmul.f32 %v4658_v39, %v957_v43 }
 0x405   : > { %972 = vrot.lane.b32.xlu0 %v964_v38, %s4957_s30 }
 0x406   : > { %v4660_v42 = vpop.eup %4659 }
 0x407   : > { %v965_v44 = vmul.f32 %v4660_v42, %v955_v40  ;;  %v4662_v46 = vpop.eup %4661  ;;  %v993_v5 = vsub.f32 1.0, %v4660_v42 }
 0x408   : > { %v967_v48 = vmul.f32 %v4662_v46, %v959_v47  ;;  %v995_v17 = vsub.f32 1.0, %v4662_v46 }
 0x409   : > { %974 = vrot.lane.b32.xlu1 %v965_v44, %s4957_s30  ;;  %976 = vrot.lane.b32.xlu0 %v966_v45, %s4957_s30 }
 0x40d   : > { %978 = vrot.lane.b32.xlu1 %v967_v48, %s4957_s30  ;;  %1020 = vrot.lane.b32.xlu0 %v5161_v11, %s4958_s18 }
 0x411   : > { %1022 = vrot.lane.b32.xlu1 %v5163_v12, %s4958_s18 }
 0x477   : > { %v973_v49 = vpop.permute.xlu0 %972 }
 0x478   : > { %v984_v53 = vadd.f32 %v973_v49, %v845_v1 }
 0x47b   : > { %v975_v50 = vpop.permute.xlu1 %974  ;;  %v977_v51 = vpop.permute.xlu0 %976 }
 0x47c   : > { %v986_v52 = vadd.f32 %v977_v51, %v853_v62  ;;  %v985_v56 = vadd.f32 %v975_v50, %v848_v15  ;;  %v994_v15 = vsub.f32 1.0, %v4658_v39 }
 0x47e   : > { %4663 = vtanh.f32 %v986_v52 }
 0x47f   : > { %v979_v54 = vpop.permute.xlu1 %978  ;;  %v1021_v12 = vpop.permute.xlu0 %1020 }
 0x480   : > { %v987_v55 = vadd.f32 %v979_v54, %v856_v7  ;;  %v1032_v7 = vmul.f32 %v4656_v37, %v1021_v12 }
 0x482   : > { %4665 = vtanh.f32 %v987_v55 }
 0x483   : > { %4667 = vtanh.f32 %v984_v53  ;;  %v1023_v61 = vpop.permute.xlu1 %1022 }
 0x484   : > { %4669 = vtanh.f32 %v985_v56  ;;  %v1033_v8 = vmul.f32 %v4660_v42, %v1023_v61 }
 0x48b   : > { %v4664_v57 = vpop.eup %4663 }
 0x48c   : > { %1004 = vrot.lane.b32.xlu0 %v4664_v57, %s4956_s29 }
 0x48f   : > { %v4666_v58 = vpop.eup %4665 }
 0x490   : > { %v4668_v59 = vpop.eup %4667  ;;  %1006 = vrot.lane.b32.xlu1 %v4666_v58, %s4956_s29 }
 0x491   : > { %1000 = vrot.lane.b32.xlu0 %v4668_v59, %s4956_s29  ;;  %v4670_v11 = vpop.eup %4669 }
 0x494   : > { %1002 = vrot.lane.b32.xlu1 %v4670_v11, %s4956_s29 }
 0x495   : > { %1024 = vrot.lane.b32.xlu0 %v5165_v13, %s4958_s18 }
 0x498   : > { %1026 = vrot.lane.b32.xlu1 %v5159_v9, %s4958_s18  ;;  %s4891_s18 = sshll.u32 %s4962_s25, 4  ;;  %s4892_s18 = int_to_ptr.vmem [resolvable:$false] %s4891_s18 }
 0x499   : > { %s4893_s14 = scalar_lea.vmem %s4892_s18, 32  ;;  %p4894_p7 = scmp.lt.s32.totalorder %s5838_s13, %s4892_s18 }
 0x4fe   : > { %v1005_v62 = vpop.permute.xlu0 %1004 }
 0x4ff   : > { %v1014_v22 = vmul.f32 %v1005_v62, %v994_v15 }
 0x502   : > { %v1007_v63 = vpop.permute.xlu1 %1006 }
 0x503   : > { %v1001_v1 = vpop.permute.xlu0 %1000  ;;  %v1015_v23 = vmul.f32 %v1007_v63, %v995_v17 }
 0x504   : > { %v1012_v2 = vmul.f32 %v1001_v1, %v992_v0 }
 0x506   : > { %v1003_v6 = vpop.permute.xlu1 %1002  ;;  %v5276_v20 = vadd.f32 %v1032_v7, %v1012_v2 }
 0x507   : > { %v1013_v10 = vmul.f32 %v1003_v6, %v993_v5  ;;  %v1025_v14 = vpop.permute.xlu0 %1024 }
 0x508   : > { %v1034_v9 = vmul.f32 %v4658_v39, %v1025_v14 }
 0x509   : > { %v5278_v13 = vadd.f32 %v1033_v8, %v1013_v10 }
 0x50a   : > { %v1027_v21 = vpop.permute.xlu1 %1026  ;;  %v5282_v26 = vadd.f32 %v1034_v9, %v1014_v22 }
 0x50b   : > { %v1035_v24 = vmul.f32 %v4662_v46, %v1027_v21  ;;  %v1040_v25 = vpack.c.bf16 %v5278_v13, %v5276_v20 }
 0x50d   : > { %v5284_v27 = vadd.f32 %v1035_v24, %v1015_v23  ;;  %1044 = vrot.lane.b32.xlu0 %v1040_v25, %s4956_s29 }
 0x50f   : > { %v1041_v28 = vpack.c.bf16 %v5284_v27, %v5282_v26 }
 0x511   : > { %1046 = vrot.lane.b32.xlu1 %v1041_v28, %s4956_s29 }
 0x57f   : > { %v1045_v32 = vpop.permute.xlu0 %1044 }
 0x580   : > { %4286 = vmatprep.mubr.msk.bf16.mxu0 %vm594_vm1, %v1045_v32 }
 0x583   : > { %v1047_v33 = vpop.permute.xlu1 %1046 }
 0x584   : > { %4287 = vmatmul.mubr.msk.bf16.vlgmr.msra.gmra.mxu0 %vm594_vm1, %v1047_v33 }
 0x585   : > { %4302 = vmatprep.mubr.msk.bf16.mxu0 %vm594_vm1, %v5174_v16 }
 0x644   : > { %v4288_v37 = vpop.f32.mrf.mxu0 }
 0x645   : > { %v1097_v40 = vadd.f32 %v4288_v37, %v5184_v19 }
 0x646   : > { %v1088_v38 = vpop.f32.mrf.mxu0 }
 0x647   : > { %v1089_v44 = vadd.f32 %v5184_v19, %v1088_v38 }
 0x648   : > { %v4289_v39 = vpop.f32.mrf.mxu0 }
 0x649   : > { %v1100_v42 = vadd.f32 %v4289_v39, %v5184_v19 }
 0x64a   : > { %v1091_v43 = vpop.f32.mrf.mxu0 }
 0x64b   : > { %v1104_v45 = vpack.c.bf16 %v1100_v42, %v1097_v40  ;;  %v1092_v46 = vadd.f32 %v5184_v19, %v1091_v43 }
 0x64d   : > { %v1103_v47 = vpack.c.bf16 %v1092_v46, %v1089_v44  ;;  %1109 = vrot.lane.b32.xlu0 %v1104_v45, %s4956_s29  ;;  %4298 = vmatprep.subr.bf16.mxu0 %v1104_v45 }
 0x64e   : > { %4299 = vmatpush3.bf16.msra.mxu0 %v1104_v45 }
 0x64f   : > { %1107 = vrot.lane.b32.xlu1 %v1103_v47, %s4956_s29  ;;  %4300 = vmatprep.subr.bf16.mxu0 %v1103_v47 }
 0x652   : > { %4301 = vmatpush3.bf16.msra.mxu0 %v1103_v47 }
 0x653   : > { %4314 = vmatprep.subr.bf16.mxu0 %v5196_v29 }
 0x655   : > { %4303 = vmatmul.mubr.msk.bf16.vlgmr.msra.gmra.mxu0 %vm594_vm1, %v5200_v30 }
 0x656   : > { %4315 = vmatpush3.bf16.msra.mxu0 %v5196_v29  ;;  %4318 = vmatprep.mubr.msk.bf16.mxu0 %vm594_vm1, %v1045_v32 }
 0x657   : > { %4316 = vmatprep.subr.bf16.mxu0 %v5206_v31 }
 0x65a   : > { %4317 = vmatpush3.bf16.msra.mxu0 %v5206_v31 }
 0x65d   : > { %4319 = vmatmul.mubr.msk.bf16.vlgmr.msra.gmra.mxu0 %vm594_vm1, %v1047_v33 }
 0x65e   : > { %4334 = vmatprep.mubr.msk.bf16.mxu0 %vm594_vm1, %v5179_v18 }
 0x6bf   : > { %v1110_v48 = vpop.permute.xlu0 %1109 }
 0x6c0   : > { %4290 = vmatprep.subr.bf16.mxu1 %v1110_v48 }
 0x6c1   : > { %4291 = vmatpush3.bf16.msra.mxu1 %v1110_v48  ;;  %v1108_v49 = vpop.permute.xlu1 %1107 }
 0x6c2   : > { %4292 = vmatprep.subr.bf16.mxu1 %v1108_v49 }
 0x6c5   : > { %4293 = vmatpush3.bf16.msra.mxu1 %v1108_v49 }
 0x6c6   : > { %4306 = vmatprep.subr.bf16.mxu1 %v5225_v35 }
 0x6c8   : > { %4295 = vmatmul.mubr.msk.bf16.vlgmr.msra.gmra.mxu1 %vm594_vm1, %v5218_v34 }
 0x6c9   : > { %4307 = vmatpush3.bf16.msra.mxu1 %v5225_v35 }
 0x6ca   : > { %4308 = vmatprep.subr.bf16.mxu1 %v5232_v36 }
 0x6cd   : > { %4309 = vmatpush3.bf16.msra.mxu1 %v5232_v36 }
 0x6ce   : > { %4322 = vmatprep.subr.bf16.mxu1 %v5145_v3 }
 0x715   : > { %v4304_v50 = vpop.f32.mrf.mxu0 }
 0x717   : > { %v1196_v51 = vpop.f32.mrf.mxu0 }
 0x719   : > { %v4305_v52 = vpop.f32.mrf.mxu0 }
 0x71b   : > { %v1199_v53 = vpop.f32.mrf.mxu0 }
 0x71d   : > { %v4320_v54 = vpop.f32.mrf.mxu0 }
 0x71e   : > { %v1311_v59 = vadd.f32 %v4320_v54, %v5240_v41 }
 0x71f   : > { %v1302_v55 = vpop.f32.mrf.mxu0 }
 0x720   : > { %v1303_v56 = vadd.f32 %v5240_v41, %v1302_v55 }
 0x721   : > { %v4321_v57 = vpop.f32.mrf.mxu0 }
 0x722   : > { %1349 = vrot.lane.b32.xlu0 %v1303_v56, %s4957_s30  ;;  %v1314_v12 = vadd.f32 %v4321_v57, %v5240_v41 }
 0x723   : > { %v1305_v58 = vpop.f32.mrf.mxu0 }
 0x724   : > { %v1306_v11 = vadd.f32 %v5240_v41, %v1305_v58 }
 0x726   : > { %1351 = vrot.lane.b32.xlu1 %v1306_v11, %s4957_s30  ;;  %1353 = vrot.lane.b32.xlu0 %v1311_v59, %s4957_s30 }
 0x72a   : > { %1355 = vrot.lane.b32.xlu1 %v1314_v12, %s4957_s30 }
 0x788   : > { %v4296_v61 = vpop.f32.mrf.mxu1 }
 0x789   : > { %v1205_v6 = vadd.f32 %v4304_v50, %v4296_v61 }
 0x78a   : > { %v1147_v62 = vpop.f32.mrf.mxu1 }
 0x78b   : > { %v1197_v2 = vadd.f32 %v1196_v51, %v1147_v62 }
 0x78c   : > { %v4297_v63 = vpop.f32.mrf.mxu1 }
 0x78d   : > { %v1208_v0 = vadd.f32 %v4305_v52, %v4297_v63 }
 0x78e   : > { %v1150_v1 = vpop.f32.mrf.mxu1 }
 0x78f   : > { %v1200_v5 = vadd.f32 %v1199_v53, %v1150_v1  ;;  %v1212_v8 = vpack.c.bf16 %v1208_v0, %v1205_v6 }
 0x791   : > { %v1211_v7 = vpack.c.bf16 %v1200_v5, %v1197_v2 }
 0x793   : > { %4310 = vmatprep.mubr.msk.bf16.mxu1 %vm594_vm1, %v1211_v7 }
 0x794   : > { %4311 = vmatmul.mubr.msk.bf16.vlgmr.msra.gmra.mxu1 %vm594_vm1, %v1212_v8  ;;  %v1350_v49 = vpop.permute.xlu0 %1349 }
 0x795   : > { %4323 = vmatpush3.bf16.msra.mxu1 %v5145_v3 }
 0x796   : > { %4324 = vmatprep.subr.bf16.mxu1 %v5152_v4 }
 0x798   : > { %v1352_v53 = vpop.permute.xlu1 %1351  ;;  %v1354_v55 = vpop.permute.xlu0 %1353 }
 0x799   : > { %4325 = vmatpush3.bf16.msra.mxu1 %v5152_v4 }
 0x854   : > { %v4312_v10 = vpop.f32.mrf.mxu1 }
 0x855   : > { %v1262_v14 = vadd.f32 %v4312_v10, %v5258_v60 }
 0x856   : > { %v1253_v15 = vpop.f32.mrf.mxu1 }
 0x857   : > { %v1319_v17 = vadd.f32 %v1311_v59, %v1262_v14  ;;  %v1254_v9 = vadd.f32 %v5258_v60, %v1253_v15  ;;  %v1356_v59 = vpop.permute.xlu1 %1355 }
 0x858   : > { %v4313_v21 = vpop.f32.mrf.mxu1 }
 0x859   : > { %v3972_v22 = vmul.f32 -1.442695, %v1319_v17  ;;  %v1317_v23 = vadd.f32 %v1303_v56, %v1254_v9  ;;  %v1265_v24 = vadd.f32 %v4313_v21, %v5258_v60 }
 0x85a   : > { %v1256_v25 = vpop.f32.mrf.mxu1 }
 0x85b   : > { %4671 = vpow2.f32 %v3972_v22  ;;  %v3970_v28 = vmul.f32 -1.442695, %v1317_v23  ;;  %v1320_v32 = vadd.f32 %v1314_v12, %v1265_v24  ;;  %v1257_v33 = vadd.f32 %v5258_v60, %v1256_v25 }
 0x85d   : > { %4673 = vpow2.f32 %v3970_v28  ;;  %v3973_v37 = vmul.f32 -1.442695, %v1320_v32  ;;  %v1318_v38 = vadd.f32 %v1306_v11, %v1257_v33 }
 0x85f   : > { %4675 = vpow2.f32 %v3973_v37  ;;  %v3971_v39 = vmul.f32 -1.442695, %v1318_v38 }
 0x861   : > { %4677 = vpow2.f32 %v3971_v39 }
 0x868   : > { %v4672_v40 = vpop.eup %4671 }
 0x869   : > { %v1335_v43 = vadd.f32 1.0, %v4672_v40 }
 0x86a   : > { %v4674_v42 = vpop.eup %4673 }
 0x86b   : > { %v1333_v44 = vadd.f32 1.0, %v4674_v42 }
 0x86c   : > { %v4676_v45 = vpop.eup %4675 }
 0x86d   : > { %4679 = vrcp.f32 %v1333_v44  ;;  %v1336_v47 = vadd.f32 1.0, %v4676_v45 }
 0x86e   : > { %v4678_v46 = vpop.eup %4677  ;;  %4681 = vrcp.f32 %v1335_v43 }
 0x86f   : > { %v1334_v48 = vadd.f32 1.0, %v4678_v46 }
 0x871   : > { %4683 = vrcp.f32 %v1334_v48 }
 0x872   : > { %4685 = vrcp.f32 %v1336_v47 }
 0x87a   : > { %v4680_v50 = vpop.eup %4679 }
 0x87b   : > { %v1361_v51 = vmul.f32 %v4680_v50, %v1350_v49  ;;  %v4682_v52 = vpop.eup %4681  ;;  %v1389_v17 = vsub.f32 1.0, %v4680_v50  ;;  %v1413_v22 = vmul.f32 %v4680_v50, %v5276_v20 }
 0x87c   : > { %v1363_v57 = vmul.f32 %v4682_v52, %v1354_v55  ;;  %v1391_v25 = vsub.f32 1.0, %v4682_v52  ;;  %v1415_v40 = vmul.f32 %v4682_v52, %v5282_v26 }
 0x87d   : > { %1369 = vrot.lane.b32.xlu0 %v1361_v51, %s4957_s30 }
 0x87e   : > { %v4684_v54 = vpop.eup %4683 }
 0x87f   : > { %v1362_v56 = vmul.f32 %v4684_v54, %v1352_v53  ;;  %v4686_v58 = vpop.eup %4685  ;;  %v1414_v23 = vmul.f32 %v4684_v54, %v5278_v13 }
 0x880   : > { %v1364_v11 = vmul.f32 %v4686_v58, %v1356_v59  ;;  %v1392_v38 = vsub.f32 1.0, %v4686_v58  ;;  %v1416_v42 = vmul.f32 %v4686_v58, %v5284_v27 }
 0x881   : > { %1371 = vrot.lane.b32.xlu1 %v1362_v56, %s4957_s30  ;;  %1373 = vrot.lane.b32.xlu0 %v1363_v57, %s4957_s30 }
 0x885   : > { %1375 = vrot.lane.b32.xlu1 %v1364_v11, %s4957_s30 }
 0x8ef   : > { %v1370_v12 = vpop.permute.xlu0 %1369 }
 0x8f0   : > { %v1381_v61 = vadd.f32 %v1370_v12, %v1254_v9  ;;  %v1390_v9 = vsub.f32 1.0, %v4684_v54 }
 0x8f2   : > { %4687 = vtanh.f32 %v1381_v61 }
 0x8f3   : > { %v1372_v62 = vpop.permute.xlu1 %1371  ;;  %v1374_v63 = vpop.permute.xlu0 %1373 }
 0x8f4   : > { %v1382_v0 = vadd.f32 %v1372_v62, %v1257_v33  ;;  %v1383_v1 = vadd.f32 %v1374_v63, %v1262_v14 }
 0x8f6   : > { %4689 = vtanh.f32 %v1382_v0 }
 0x8f7   : > { %4691 = vtanh.f32 %v1383_v1  ;;  %v1376_v2 = vpop.permute.xlu1 %1375 }
 0x8f8   : > { %v1384_v5 = vadd.f32 %v1376_v2, %v1265_v24 }
 0x8fa   : > { %4693 = vtanh.f32 %v1384_v5 }
 0x8ff   : > { %v4688_v6 = vpop.eup %4687 }
 0x900   : > { %1397 = vrot.lane.b32.xlu0 %v4688_v6, %s4956_s29 }
 0x903   : > { %v4690_v7 = vpop.eup %4689 }
 0x904   : > { %v4692_v8 = vpop.eup %4691  ;;  %1399 = vrot.lane.b32.xlu1 %v4690_v7, %s4956_s29 }
 0x905   : > { %1401 = vrot.lane.b32.xlu0 %v4692_v8, %s4956_s29 }
 0x907   : > { %v4694_v10 = vpop.eup %4693 }
 0x908   : > { %1403 = vrot.lane.b32.xlu1 %v4694_v10, %s4956_s29 }
 0x972   : > { %v1398_v15 = vpop.permute.xlu0 %1397 }
 0x973   : > { %v1409_v14 = vmul.f32 %v1398_v15, %v1389_v17 }
 0x975   : > { %v5344_v32 = vadd.f32 %v1413_v22, %v1409_v14 }
 0x976   : > { %v1400_v21 = vpop.permute.xlu1 %1399 }
 0x977   : > { %v1410_v24 = vmul.f32 %v1400_v21, %v1390_v9  ;;  %v1402_v28 = vpop.permute.xlu0 %1401 }
 0x978   : > { %v1411_v37 = vmul.f32 %v1402_v28, %v1391_v25 }
 0x979   : > { %v5346_v33 = vadd.f32 %v1414_v23, %v1410_v24 }
 0x97a   : > { %v1404_v39 = vpop.permute.xlu1 %1403  ;;  %v5352_v44 = vadd.f32 %v1415_v40, %v1411_v37 }
 0x97b   : > { %v1412_v43 = vmul.f32 %v1404_v39, %v1392_v38  ;;  %v1421_v20 = vpack.c.bf16 %v5346_v33, %v5344_v32 }
 0x97d   : > { %v5354_v13 = vadd.f32 %v1416_v42, %v1412_v43  ;;  %1425 = vrot.lane.b32.xlu0 %v1421_v20, %s4956_s29 }
 0x97f   : > { %v1422_v45 = vpack.c.bf16 %v5354_v13, %v5352_v44 }
 0x981   : > { %1427 = vrot.lane.b32.xlu1 %v1422_v45, %s4956_s29 }
 0x9ef   : > { %v1426_v46 = vpop.permute.xlu0 %1425 }
 0x9f0   : > { %4326 = vmatprep.mubr.msk.bf16.mxu1 %vm594_vm1, %v1426_v46 }
 0x9f3   : > { %v1428_v26 = vpop.permute.xlu1 %1427 }
 0x9f4   : > { %4327 = vmatmul.mubr.msk.bf16.vlgmr.msra.gmra.mxu1 %vm594_vm1, %v1428_v26 }
 0x9f5   : > { %4342 = vmatprep.mubr.msk.bf16.mxu1 %vm594_vm1, %v5174_v16 }
 0xab4   : > { %v4328_v27 = vpop.f32.mrf.mxu1 }
 0xab5   : > { %v1478_v49 = vadd.f32 %v4328_v27, %v5184_v19 }
 0xab6   : > { %v1469_v47 = vpop.f32.mrf.mxu1 }
 0xab7   : > { %v1470_v52 = vadd.f32 %v5184_v19, %v1469_v47 }
 0xab8   : > { %v4329_v48 = vpop.f32.mrf.mxu1 }
 0xab9   : > { %v1481_v50 = vadd.f32 %v4329_v48, %v5184_v19 }
 0xaba   : > { %v1472_v51 = vpop.f32.mrf.mxu1 }
 0xabb   : > { %v1485_v53 = vpack.c.bf16 %v1481_v50, %v1478_v49  ;;  %v1473_v54 = vadd.f32 %v5184_v19, %v1472_v51 }
 0xabd   : > { %v1484_v55 = vpack.c.bf16 %v1473_v54, %v1470_v52  ;;  %1490 = vrot.lane.b32.xlu0 %v1485_v53, %s4956_s29  ;;  %4338 = vmatprep.subr.bf16.mxu1 %v1485_v53 }
 0xabe   : > { %4339 = vmatpush3.bf16.msra.mxu1 %v1485_v53 }
 0xabf   : > { %1488 = vrot.lane.b32.xlu1 %v1484_v55, %s4956_s29  ;;  %4340 = vmatprep.subr.bf16.mxu1 %v1484_v55 }
 0xac2   : > { %4341 = vmatpush3.bf16.msra.mxu1 %v1484_v55 }
 0xac3   : > { %4354 = vmatprep.subr.bf16.mxu1 %v5196_v29 }
 0xac5   : > { %4343 = vmatmul.mubr.msk.bf16.vlgmr.msra.gmra.mxu1 %vm594_vm1, %v5200_v30 }
 0xac6   : > { %4355 = vmatpush3.bf16.msra.mxu1 %v5196_v29  ;;  %4358 = vmatprep.mubr.msk.bf16.mxu1 %vm594_vm1, %v1426_v46 }
 0xac7   : > { %4356 = vmatprep.subr.bf16.mxu1 %v5206_v31 }
 0xaca   : > { %4357 = vmatpush3.bf16.msra.mxu1 %v5206_v31 }
 0xacd   : > { %4359 = vmatmul.mubr.msk.bf16.vlgmr.msra.gmra.mxu1 %vm594_vm1, %v1428_v26 }
 0xace   : > { %4374 = vmatprep.mubr.msk.bf16.mxu1 %vm594_vm1, %v5179_v18 }
 0xb2f   : > { %v1491_v16 = vpop.permute.xlu0 %1490 }
 0xb30   : > { %4330 = vmatprep.subr.bf16.mxu0 %v1491_v16 }
 0xb31   : > { %4331 = vmatpush3.bf16.msra.mxu0 %v1491_v16  ;;  %v1489_v19 = vpop.permute.xlu1 %1488 }
 0xb32   : > { %4332 = vmatprep.subr.bf16.mxu0 %v1489_v19 }
 0xb35   : > { %4333 = vmatpush3.bf16.msra.mxu0 %v1489_v19 }
 0xb36   : > { %4346 = vmatprep.subr.bf16.mxu0 %v5225_v35 }
 0xb38   : > { %4335 = vmatmul.mubr.msk.bf16.vlgmr.msra.gmra.mxu0 %vm594_vm1, %v5218_v34 }
 0xb39   : > { %4347 = vmatpush3.bf16.msra.mxu0 %v5225_v35 }
 0xb3a   : > { %4348 = vmatprep.subr.bf16.mxu0 %v5232_v36 }
 0xb3d   : > { %4349 = vmatpush3.bf16.msra.mxu0 %v5232_v36 }
 0xb3e   : > { %4362 = vmatprep.subr.bf16.mxu0 %v5145_v3 }
 0xb85   : > { %v4344_v18 = vpop.f32.mrf.mxu1 }
 0xb87   : > { %v1577_v29 = vpop.f32.mrf.mxu1 }
 0xb89   : > { %v4345_v56 = vpop.f32.mrf.mxu1 }
 0xb8b   : > { %v1580_v57 = vpop.f32.mrf.mxu1 }
 0xb8d   : > { %v4360_v58 = vpop.f32.mrf.mxu1 }
 0xb8e   : > { %v1692_v62 = vadd.f32 %v4360_v58, %v5240_v41 }
 0xb8f   : > { %v1683_v59 = vpop.f32.mrf.mxu1 }
 0xb90   : > { %v1684_v11 = vadd.f32 %v5240_v41, %v1683_v59 }
 0xb91   : > { %v4361_v12 = vpop.f32.mrf.mxu1 }
 0xb92   : > { %1730 = vrot.lane.b32.xlu0 %v1684_v11, %s4957_s30  ;;  %v1695_v0 = vadd.f32 %v4361_v12, %v5240_v41 }
 0xb93   : > { %v1686_v61 = vpop.f32.mrf.mxu1 }
 0xb94   : > { %v1687_v63 = vadd.f32 %v5240_v41, %v1686_v61 }
 0xb96   : > { %1732 = vrot.lane.b32.xlu1 %v1687_v63, %s4957_s30  ;;  %1734 = vrot.lane.b32.xlu0 %v1692_v62, %s4957_s30 }
 0xb9a   : > { %1736 = vrot.lane.b32.xlu1 %v1695_v0, %s4957_s30 }
 0xbf8   : > { %v4336_v1 = vpop.f32.mrf.mxu0 }
 0xbf9   : > { %v1586_v15 = vadd.f32 %v4344_v18, %v4336_v1 }
 0xbfa   : > { %v1528_v2 = vpop.f32.mrf.mxu0 }
 0xbfb   : > { %v1578_v8 = vadd.f32 %v1577_v29, %v1528_v2 }
 0xbfc   : > { %v4337_v5 = vpop.f32.mrf.mxu0 }
 0xbfd   : > { %v1589_v6 = vadd.f32 %v4345_v56, %v4337_v5 }
 0xbfe   : > { %v1531_v7 = vpop.f32.mrf.mxu0 }
 0xbff   : > { %v1581_v10 = vadd.f32 %v1580_v57, %v1531_v7  ;;  %v1593_v14 = vpack.c.bf16 %v1589_v6, %v1586_v15 }
 0xc01   : > { %v1592_v17 = vpack.c.bf16 %v1581_v10, %v1578_v8 }
 0xc03   : > { %4350 = vmatprep.mubr.msk.bf16.mxu0 %vm594_vm1, %v1592_v17 }
 0xc04   : > { %4351 = vmatmul.mubr.msk.bf16.vlgmr.msra.gmra.mxu0 %vm594_vm1, %v1593_v14  ;;  %v1731_v51 = vpop.permute.xlu0 %1730 }
 0xc05   : > { %4363 = vmatpush3.bf16.msra.mxu0 %v5145_v3 }
 0xc06   : > { %4364 = vmatprep.subr.bf16.mxu0 %v5152_v4 }
 0xc08   : > { %v1733_v55 = vpop.permute.xlu1 %1732  ;;  %v1735_v19 = vpop.permute.xlu0 %1734 }
 0xc09   : > { %4365 = vmatpush3.bf16.msra.mxu0 %v5152_v4 }
 0xc0c   : > { %v1737_v57 = vpop.permute.xlu1 %1736 }
 0xcc4   : > { %v4352_v9 = vpop.f32.mrf.mxu0 }
 0xcc5   : > { %v1643_v21 = vadd.f32 %v4352_v9, %v5258_v60 }
 0xcc6   : > { %v1634_v22 = vpop.f32.mrf.mxu0 }
 0xcc7   : > { %v1700_v23 = vadd.f32 %v1692_v62, %v1643_v21  ;;  %v1635_v24 = vadd.f32 %v5258_v60, %v1634_v22 }
 0xcc8   : > { %v4353_v25 = vpop.f32.mrf.mxu0 }
 0xcc9   : > { %v3986_v28 = vmul.f32 -1.442695, %v1700_v23  ;;  %v1698_v37 = vadd.f32 %v1684_v11, %v1635_v24  ;;  %v1646_v38 = vadd.f32 %v4353_v25, %v5258_v60 }
 0xcca   : > { %v1637_v39 = vpop.f32.mrf.mxu0 }
 0xccb   : > { %4695 = vpow2.f32 %v3986_v28  ;;  %v3984_v40 = vmul.f32 -1.442695, %v1698_v37  ;;  %v1701_v3 = vadd.f32 %v1695_v0, %v1646_v38  ;;  %v1638_v42 = vadd.f32 %v5258_v60, %v1637_v39 }
 0xccd   : > { %4697 = vpow2.f32 %v3984_v40  ;;  %v3987_v4 = vmul.f32 -1.442695, %v1701_v3  ;;  %v1699_v43 = vadd.f32 %v1687_v63, %v1638_v42 }
 0xccf   : > { %4699 = vpow2.f32 %v3987_v4  ;;  %v3985_v20 = vmul.f32 -1.442695, %v1699_v43 }
 0xcd1   : > { %4701 = vpow2.f32 %v3985_v20 }
 0xcd8   : > { %v4696_v45 = vpop.eup %4695 }
 0xcd9   : > { %v1716_v26 = vadd.f32 1.0, %v4696_v45 }
 0xcda   : > { %v4698_v46 = vpop.eup %4697 }
 0xcdb   : > { %v1714_v27 = vadd.f32 1.0, %v4698_v46 }
 0xcdc   : > { %v4700_v47 = vpop.eup %4699 }
 0xcdd   : > { %4703 = vrcp.f32 %v1714_v27  ;;  %v1717_v49 = vadd.f32 1.0, %v4700_v47  ;;  %v5440_v27 = vld [vmem:[%s5883_s5] ss:$0 sm:$0xff] }
 0xcde   : > { %v4702_v48 = vpop.eup %4701  ;;  %4705 = vrcp.f32 %v1716_v26 }
 0xcdf   : > { %v1715_v50 = vadd.f32 1.0, %v4702_v48 }
 0xce1   : > { %4707 = vrcp.f32 %v1715_v50 }
 0xce2   : > { %4709 = vrcp.f32 %v1717_v49 }
 0xcea   : > { %v4704_v52 = vpop.eup %4703 }
 0xceb   : > { %v1742_v53 = vmul.f32 %v4704_v52, %v1731_v51  ;;  %v4706_v54 = vpop.eup %4705  ;;  %v1770_v10 = vsub.f32 1.0, %v4704_v52  ;;  %v1794_v9 = vmul.f32 %v4704_v52, %v5344_v32 }
 0xcec   : > { %v1744_v29 = vmul.f32 %v4706_v54, %v1735_v19  ;;  %v1772_v23 = vsub.f32 1.0, %v4706_v54  ;;  %v1796_v40 = vmul.f32 %v4706_v54, %v5352_v44  ;;  %v5451_v54 = vld [vmem:[%s5886_s8 + $0x8] sm:$0xff]  }
 0xced   : > { %1750 = vrot.lane.b32.xlu0 %v1742_v53, %s4957_s30 }
 0xcee   : > { %v4708_v16 = vpop.eup %4707 }
 0xcef   : > { %v1743_v18 = vmul.f32 %v4708_v16, %v1733_v55  ;;  %v4710_v56 = vpop.eup %4709  ;;  %v1771_v17 = vsub.f32 1.0, %v4708_v16  ;;  %v5462_v55 = vld [vmem:[%s5886_s8] sm:$0xff]  }
 0xcf0   : > { %v1745_v58 = vmul.f32 %v4710_v56, %v1737_v57  ;;  %v1797_v3 = vmul.f32 %v4710_v56, %v5354_v13  ;;  %v5433_v13 = vld [vmem:[%s5128_s28] sm:$0xff]  }
 0xcf1   : > { %1752 = vrot.lane.b32.xlu1 %v1743_v18, %s4957_s30  ;;  %1754 = vrot.lane.b32.xlu0 %v1744_v29, %s4957_s30 }
 0xcf5   : > { %1756 = vrot.lane.b32.xlu1 %v1745_v58, %s4957_s30 }
 0xd5f   : > { %v1751_v59 = vpop.permute.xlu0 %1750 }
 0xd60   : > { %v1762_v11 = vadd.f32 %v1751_v59, %v1635_v24 }
 0xd62   : > { %4711 = vtanh.f32 %v1762_v11 }
 0xd63   : > { %v1753_v12 = vpop.permute.xlu1 %1752  ;;  %v1755_v61 = vpop.permute.xlu0 %1754 }
 0xd64   : > { %v1763_v62 = vadd.f32 %v1753_v12, %v1638_v42  ;;  %v1764_v63 = vadd.f32 %v1755_v61, %v1643_v21  ;;  %v1795_v21 = vmul.f32 %v4708_v16, %v5346_v33  ;;  %v5467_v16 = vld [vmem:[%s5128_s28 + $0x10] sm:$0xff]   ;;  %v5492_v61 = vld [vmem:[%s5887_s9] ss:$0 sm:$0xff] }
 0xd66   : > { %4713 = vtanh.f32 %v1763_v62 }
 0xd67   : > { %4715 = vtanh.f32 %v1764_v63  ;;  %v1757_v0 = vpop.permute.xlu1 %1756 }
 0xd68   : > { %v1765_v1 = vadd.f32 %v1757_v0, %v1646_v38  ;;  %v1773_v38 = vsub.f32 1.0, %v4710_v56 }
 0xd6a   : > { %4717 = vtanh.f32 %v1765_v1 }
 0xd6f   : > { %v4712_v2 = vpop.eup %4711 }
 0xd70   : > { %1778 = vrot.lane.b32.xlu0 %v4712_v2, %s4956_s29 }
 0xd73   : > { %v4714_v5 = vpop.eup %4713 }
 0xd74   : > { %v4716_v6 = vpop.eup %4715  ;;  %1780 = vrot.lane.b32.xlu1 %v4714_v5, %s4956_s29 }
 0xd75   : > { %1782 = vrot.lane.b32.xlu0 %v4716_v6, %s4956_s29 }
 0xd77   : > { %v4718_v7 = vpop.eup %4717 }
 0xd78   : > { %1784 = vrot.lane.b32.xlu1 %v4718_v7, %s4956_s29 }
 0xde2   : > { %v1779_v8 = vpop.permute.xlu0 %1778 }
 0xde3   : > { %v1790_v15 = vmul.f32 %v1779_v8, %v1770_v10 }
 0xde5   : > { %v5414_v25 = vadd.f32 %v1794_v9, %v1790_v15  ;;  %v5502_v15 = vld [vmem:[%s5882_s4] sm:$0xff]  }
 0xde6   : > { %v1781_v14 = vpop.permute.xlu1 %1780 }
 0xde7   : > { %v1791_v22 = vmul.f32 %v1781_v14, %v1771_v17  ;;  %v1783_v24 = vpop.permute.xlu0 %1782 }
 0xde8   : > { %v1792_v37 = vmul.f32 %v1783_v24, %v1772_v23 }
 0xde9   : > { %v5416_v28 = vadd.f32 %v1795_v21, %v1791_v22 }
 0xdea   : > { %v1785_v39 = vpop.permute.xlu1 %1784  ;;  %v5422_v33 = vadd.f32 %v1796_v40, %v1792_v37 }
 0xdeb   : > { %v1793_v42 = vmul.f32 %v1785_v39, %v1773_v38  ;;  %v1802_v32 = vpack.c.bf16 %v5416_v28, %v5414_v25 }
 0xded   : > { %v5424_v4 = vadd.f32 %v1797_v3, %v1793_v42  ;;  %1806 = vrot.lane.b32.xlu0 %v1802_v32, %s4956_s29  ;;  %v5512_v42 = vld [vmem:[%s5885_s7] ss:$0 sm:$0xff] }
 0xdef   : > { %v1803_v43 = vpack.c.bf16 %v5424_v4, %v5422_v33 }
 0xdf1   : > { %1808 = vrot.lane.b32.xlu1 %v1803_v43, %s4956_s29 }
 0xe5f   : > { %v1807_v20 = vpop.permute.xlu0 %1806 }
 0xe60   : > { %4366 = vmatprep.mubr.msk.bf16.mxu0 %vm594_vm1, %v1807_v20 }
 0xe63   : > { %v1809_v44 = vpop.permute.xlu1 %1808 }
 0xe64   : > { %4367 = vmatmul.mubr.msk.bf16.vlgmr.msra.gmra.mxu0 %vm594_vm1, %v1809_v44 }
 0xe65   : > { %4382 = vmatprep.mubr.msk.bf16.mxu0 %vm594_vm1, %v5433_v13 }
 0xf24   : > { %v4368_v45 = vpop.f32.mrf.mxu0 }
 0xf25   : > { %v1859_v47 = vadd.f32 %v5440_v27, %v4368_v45 }
 0xf26   : > { %v1850_v46 = vpop.f32.mrf.mxu0 }
 0xf27   : > { %v1851_v50 = vadd.f32 %v5440_v27, %v1850_v46 }
 0xf28   : > { %v4369_v26 = vpop.f32.mrf.mxu0 }
 0xf29   : > { %v1862_v48 = vadd.f32 %v5440_v27, %v4369_v26 }
 0xf2a   : > { %v1853_v49 = vpop.f32.mrf.mxu0 }
 0xf2b   : > { %v1866_v51 = vpack.c.bf16 %v1862_v48, %v1859_v47  ;;  %v1854_v52 = vadd.f32 %v5440_v27, %v1853_v49 }
 0xf2d   : > { %v1865_v53 = vpack.c.bf16 %v1854_v52, %v1851_v50  ;;  %1871 = vrot.lane.b32.xlu0 %v1866_v51, %s4956_s29  ;;  %4378 = vmatprep.subr.bf16.mxu0 %v1866_v51 }
 0xf2e   : > { %4379 = vmatpush3.bf16.msra.mxu0 %v1866_v51 }
 0xf2f   : > { %1869 = vrot.lane.b32.xlu1 %v1865_v53, %s4956_s29  ;;  %4380 = vmatprep.subr.bf16.mxu0 %v1865_v53 }
 0xf32   : > { %4381 = vmatpush3.bf16.msra.mxu0 %v1865_v53 }
 0xf33   : > { %4394 = vmatprep.subr.bf16.mxu0 %v5451_v54 }
 0xf35   : > { %4383 = vmatmul.mubr.msk.bf16.vlgmr.msra.gmra.mxu0 %vm594_vm1, %v5200_v30 }
 0xf36   : > { %4395 = vmatpush3.bf16.msra.mxu0 %v5451_v54  ;;  %4398 = vmatprep.mubr.msk.bf16.mxu0 %vm594_vm1, %v1807_v20 }
 0xf37   : > { %4396 = vmatprep.subr.bf16.mxu0 %v5206_v31  ;;  %v5480_v31 = vld [vmem:[%s5882_s4 + $0x8] sm:$0xff]  }
 0xf3a   : > { %4397 = vmatpush3.bf16.msra.mxu0 %v5462_v55 }
 0xf3d   : > { %4399 = vmatmul.mubr.msk.bf16.vlgmr.msra.gmra.mxu0 %vm594_vm1, %v1809_v44 }
 0xf3e   : > { %4414 = vmatprep.mubr.msk.bf16.mxu0 %vm594_vm1, %v5467_v16 }
 0xf9f   : > { %v1872_v30 = vpop.permute.xlu0 %1871 }
 0xfa0   : > { %4370 = vmatprep.subr.bf16.mxu1 %v1872_v30 }
 0xfa1   : > { %4371 = vmatpush3.bf16.msra.mxu1 %v1872_v30  ;;  %v1870_v19 = vpop.permute.xlu1 %1869 }
 0xfa2   : > { %4372 = vmatprep.subr.bf16.mxu1 %v1870_v19 }
 0xfa5   : > { %4373 = vmatpush3.bf16.msra.mxu1 %v1870_v19 }
 0xfa6   : > { %4386 = vmatprep.subr.bf16.mxu1 %v5225_v35 }
 0xfa8   : > { %4375 = vmatmul.mubr.msk.bf16.vlgmr.msra.gmra.mxu1 %vm594_vm1, %v5218_v34 }
 0xfa9   : > { %4387 = vmatpush3.bf16.msra.mxu1 %v5225_v35 }
 0xfaa   : > { %4388 = vmatprep.subr.bf16.mxu1 %v5232_v36 }
 0xfad   : > { %4389 = vmatpush3.bf16.msra.mxu1 %v5232_v36 }
 0xfae   : > { %4402 = vmatprep.subr.bf16.mxu1 %v5480_v31 }
 0xff5   : > { %v4384_v18 = vpop.f32.mrf.mxu0 }
 0xff7   : > { %v1958_v29 = vpop.f32.mrf.mxu0 }
 0xff9   : > { %v4385_v56 = vpop.f32.mrf.mxu0 }
 0xffb   : > { %v1961_v57 = vpop.f32.mrf.mxu0 }
 0xffd   : > { %v4400_v58 = vpop.f32.mrf.mxu0 }
 0xffe   : > { %v2073_v36 = vadd.f32 %v4400_v58, %v5240_v41 }
 0xfff   : > { %v2064_v59 = vpop.f32.mrf.mxu0 }
0x1000   : > { %v2065_v34 = vadd.f32 %v5240_v41, %v2064_v59 }
0x1001   : > { %v4401_v35 = vpop.f32.mrf.mxu0 }
0x1002   : > { %2111 = vrot.lane.b32.xlu0 %v2065_v34, %s4957_s30  ;;  %v2076_v62 = vadd.f32 %v5492_v61, %v4401_v35 }
0x1003   : > { %v2067_v11 = vpop.f32.mrf.mxu0 }
0x1004   : > { %v2068_v12 = vadd.f32 %v5240_v41, %v2067_v11 }
0x1006   : > { %2113 = vrot.lane.b32.xlu1 %v2068_v12, %s4957_s30  ;;  %2115 = vrot.lane.b32.xlu0 %v2073_v36, %s4957_s30 }
0x100a   : > { %2117 = vrot.lane.b32.xlu1 %v2076_v62, %s4957_s30 }
0x1068   : > { %v4376_v63 = vpop.f32.mrf.mxu1 }
0x1069   : > { %v1967_v7 = vadd.f32 %v4384_v18, %v4376_v63 }
0x106a   : > { %v1909_v0 = vpop.f32.mrf.mxu1 }
0x106b   : > { %v1959_v6 = vadd.f32 %v1958_v29, %v1909_v0 }
0x106c   : > { %v4377_v1 = vpop.f32.mrf.mxu1 }
0x106d   : > { %v1970_v2 = vadd.f32 %v4385_v56, %v4377_v1 }
0x106e   : > { %v1912_v5 = vpop.f32.mrf.mxu1 }
0x106f   : > { %v1962_v41 = vadd.f32 %v1961_v57, %v1912_v5  ;;  %v1974_v10 = vpack.c.bf16 %v1970_v2, %v1967_v7 }
0x1071   : > { %v1973_v8 = vpack.c.bf16 %v1962_v41, %v1959_v6 }
0x1073   : > { %4390 = vmatprep.mubr.msk.bf16.mxu1 %vm594_vm1, %v1973_v8 }
0x1074   : > { %4391 = vmatmul.mubr.msk.bf16.vlgmr.msra.gmra.mxu1 %vm594_vm1, %v1974_v10  ;;  %v2112_v51 = vpop.permute.xlu0 %2111 }
0x1075   : > { %4403 = vmatpush3.bf16.msra.mxu1 %v5480_v31 }
0x1076   : > { %4404 = vmatprep.subr.bf16.mxu1 %v5502_v15 }
0x1078   : > { %v2114_v19 = vpop.permute.xlu1 %2113  ;;  %v2116_v29 = vpop.permute.xlu0 %2115 }
0x1079   : > { %4405 = vmatpush3.bf16.msra.mxu1 %v5502_v15 }
0x107c   : > { %v2118_v59 = vpop.permute.xlu1 %2117 }
0x1134   : > { %v4392_v17 = vpop.f32.mrf.mxu1 }
0x1135   : > { %v2024_v14 = vadd.f32 %v4392_v17, %v5258_v60 }
0x1136   : > { %v2015_v9 = vpop.f32.mrf.mxu1 }
0x1137   : > { %v2081_v21 = vadd.f32 %v2073_v36, %v2024_v14  ;;  %v2016_v22 = vadd.f32 %v5258_v60, %v2015_v9 }
0x1138   : > { %v4393_v23 = vpop.f32.mrf.mxu1 }
0x1139   : > { %v4000_v24 = vmul.f32 -1.442695, %v2081_v21  ;;  %v2079_v37 = vadd.f32 %v2065_v34, %v2016_v22  ;;  %v2027_v38 = vadd.f32 %v4393_v23, %v5258_v60 }
0x113a   : > { %v2018_v39 = vpop.f32.mrf.mxu1 }
0x113b   : > { %4719 = vpow2.f32 %v4000_v24  ;;  %v3998_v40 = vmul.f32 -1.442695, %v2079_v37  ;;  %v2082_v3 = vadd.f32 %v2076_v62, %v2027_v38  ;;  %v2019_v32 = vadd.f32 %v5512_v42, %v2018_v39 }
0x113d   : > { %4721 = vpow2.f32 %v3998_v40  ;;  %v4001_v43 = vmul.f32 -1.442695, %v2082_v3  ;;  %v2080_v20 = vadd.f32 %v2068_v12, %v2019_v32 }
0x113f   : > { %4723 = vpow2.f32 %v4001_v43  ;;  %v3999_v44 = vmul.f32 -1.442695, %v2080_v20 }
0x1141   : > { %4725 = vpow2.f32 %v3999_v44 }
0x1148   : > { %v4720_v45 = vpop.eup %4719 }
0x1149   : > { %v2097_v60 = vadd.f32 1.0, %v4720_v45 }
0x114a   : > { %v4722_v46 = vpop.eup %4721 }
0x114b   : > { %v2095_v26 = vadd.f32 1.0, %v4722_v46 }
0x114c   : > { %v4724_v47 = vpop.eup %4723 }
0x114d   : > { %4727 = vrcp.f32 %v2095_v26  ;;  %v2098_v49 = vadd.f32 1.0, %v4724_v47 }
0x114e   : > { %v4726_v48 = vpop.eup %4725  ;;  %4729 = vrcp.f32 %v2097_v60 }
0x114f   : > { %v2096_v50 = vadd.f32 1.0, %v4726_v48 }
0x1151   : > { %4731 = vrcp.f32 %v2096_v50 }
0x1152   : > { %4733 = vrcp.f32 %v2098_v49 }
0x115a   : > { %v4728_v52 = vpop.eup %4727 }
0x115b   : > { %v2123_v53 = vmul.f32 %v4728_v52, %v2112_v51  ;;  %v4730_v30 = vpop.eup %4729  ;;  %v2151_v8 = vsub.f32 1.0, %v4728_v52  ;;  %v2175_v9 = vmul.f32 %v4728_v52, %v5414_v25 }
0x115c   : > { %v2125_v57 = vmul.f32 %v4730_v30, %v2116_v29  ;;  %v2153_v23 = vsub.f32 1.0, %v4730_v30  ;;  %v5567_v29 = vld [vmem:[%s5884_s6 + $0x8] sm:$0xff]  }
0x115d   : > { %2131 = vrot.lane.b32.xlu0 %v2123_v53, %s4957_s30 }
0x115e   : > { %v4732_v18 = vpop.eup %4731 }
0x115f   : > { %v2124_v56 = vmul.f32 %v4732_v18, %v2114_v19  ;;  %v4734_v58 = vpop.eup %4733  ;;  %v2152_v17 = vsub.f32 1.0, %v4732_v18  ;;  %v2176_v21 = vmul.f32 %v4732_v18, %v5416_v28 }
0x1160   : > { %v2126_v34 = vmul.f32 %v4734_v58, %v2118_v59  ;;  %v2154_v40 = vsub.f32 1.0, %v4734_v58  ;;  %v2178_v43 = vmul.f32 %v4734_v58, %v5424_v4 }
0x1161   : > { %2133 = vrot.lane.b32.xlu1 %v2124_v56, %s4957_s30  ;;  %2135 = vrot.lane.b32.xlu0 %v2125_v57, %s4957_s30  ;;  %v5571_v56 = vld [vmem:[%s5128_s28 + $0x18] sm:$0xff]   ;;  %v5579_v57 = vld [vmem:[%s5884_s6] sm:$0xff]  }
0x1165   : > { %2137 = vrot.lane.b32.xlu1 %v2126_v34, %s4957_s30 }
0x11cf   : > { %v2132_v35 = vpop.permute.xlu0 %2131 }
0x11d0   : > { %v2143_v11 = vadd.f32 %v2132_v35, %v2016_v22 }
0x11d2   : > { %4735 = vtanh.f32 %v2143_v11 }
0x11d3   : > { %v2134_v36 = vpop.permute.xlu1 %2133  ;;  %v2136_v12 = vpop.permute.xlu0 %2135 }
0x11d4   : > { %v2144_v62 = vadd.f32 %v2134_v36, %v2019_v32  ;;  %v2145_v63 = vadd.f32 %v2136_v12, %v2024_v14  ;;  %v2177_v32 = vmul.f32 %v4730_v30, %v5422_v33  ;;  %v5553_v30 = vld [vmem:[%s5128_s28 + $0x8] sm:$0xff]  }
0x11d6   : > { %4737 = vtanh.f32 %v2144_v62 }
0x11d7   : > { %4739 = vtanh.f32 %v2145_v63  ;;  %v2138_v0 = vpop.permute.xlu1 %2137 }
0x11d8   : > { %v2146_v1 = vadd.f32 %v2138_v0, %v2027_v38 }
0x11da   : > { %4741 = vtanh.f32 %v2146_v1 }
0x11df   : > { %v4736_v2 = vpop.eup %4735 }
0x11e0   : > { %2159 = vrot.lane.b32.xlu0 %v4736_v2, %s4956_s29 }
0x11e3   : > { %v4738_v5 = vpop.eup %4737 }
0x11e4   : > { %v4740_v6 = vpop.eup %4739  ;;  %2161 = vrot.lane.b32.xlu1 %v4738_v5, %s4956_s29 }
0x11e5   : > { %2163 = vrot.lane.b32.xlu0 %v4740_v6, %s4956_s29 }
0x11e7   : > { %v4742_v41 = vpop.eup %4741 }
0x11e8   : > { %2165 = vrot.lane.b32.xlu1 %v4742_v41, %s4956_s29 }
0x1252   : > { %v2160_v7 = vpop.permute.xlu0 %2159 }
0x1253   : > { %v2171_v10 = vmul.f32 %v2160_v7, %v2151_v8 }
0x1255   : > { %v5525_v37 = vadd.f32 %v2175_v9, %v2171_v10 }
0x1256   : > { %v2162_v14 = vpop.permute.xlu1 %2161 }
0x1257   : > { %v2172_v22 = vmul.f32 %v2162_v14, %v2152_v17  ;;  %v2164_v24 = vpop.permute.xlu0 %2163 }
0x1258   : > { %v2173_v39 = vmul.f32 %v2164_v24, %v2153_v23 }
0x1259   : > { %v5527_v38 = vadd.f32 %v2176_v21, %v2172_v22 }
0x125a   : > { %v2166_v3 = vpop.permute.xlu1 %2165  ;;  %v5533_v44 = vadd.f32 %v2177_v32, %v2173_v39 }
0x125b   : > { %v2174_v20 = vmul.f32 %v2166_v3, %v2154_v40  ;;  %v2183_v25 = vpack.c.bf16 %v5527_v38, %v5525_v37 }
0x125d   : > { %v5535_v28 = vadd.f32 %v2178_v43, %v2174_v20  ;;  %2187 = vrot.lane.b32.xlu0 %v2183_v25, %s4956_s29 }
0x125f   : > { %v2184_v45 = vpack.c.bf16 %v5535_v28, %v5533_v44 }
0x1261   : > { %2189 = vrot.lane.b32.xlu1 %v2184_v45, %s4956_s29 }
0x12cf   : > { %v2188_v46 = vpop.permute.xlu0 %2187 }
0x12d0   : > { %4406 = vmatprep.mubr.msk.bf16.mxu1 %vm594_vm1, %v2188_v46 }
0x12d3   : > { %v2190_v33 = vpop.permute.xlu1 %2189 }
0x12d4   : > { %4407 = vmatmul.mubr.msk.bf16.vlgmr.msra.gmra.mxu1 %vm594_vm1, %v2190_v33 }
0x12d5   : > { %4422 = vmatprep.mubr.msk.bf16.mxu1 %vm594_vm1, %v5433_v13 }
0x1394   : > { %v4408_v4 = vpop.f32.mrf.mxu1 }
0x1395   : > { %v2240_v47 = vadd.f32 %v5440_v27, %v4408_v4 }
0x1396   : > { %v2231_v60 = vpop.f32.mrf.mxu1 }
0x1397   : > { %v2232_v50 = vadd.f32 %v5440_v27, %v2231_v60 }
0x1398   : > { %v4409_v26 = vpop.f32.mrf.mxu1 }
0x1399   : > { %v2243_v48 = vadd.f32 %v5440_v27, %v4409_v26 }
0x139a   : > { %v2234_v49 = vpop.f32.mrf.mxu1 }
0x139b   : > { %v2247_v51 = vpack.c.bf16 %v2243_v48, %v2240_v47  ;;  %v2235_v52 = vadd.f32 %v5440_v27, %v2234_v49 }
0x139d   : > { %v2246_v53 = vpack.c.bf16 %v2235_v52, %v2232_v50  ;;  %2252 = vrot.lane.b32.xlu0 %v2247_v51, %s4956_s29  ;;  %4418 = vmatprep.subr.bf16.mxu1 %v2247_v51 }
0x139e   : > { %4419 = vmatpush3.bf16.msra.mxu1 %v2247_v51 }
0x139f   : > { %2250 = vrot.lane.b32.xlu1 %v2246_v53, %s4956_s29  ;;  %4420 = vmatprep.subr.bf16.mxu1 %v2246_v53 }
0x13a2   : > { %4421 = vmatpush3.bf16.msra.mxu1 %v2246_v53 }
0x13a3   : > { %4434 = vmatprep.subr.bf16.mxu1 %v5451_v54 }
0x13a5   : > { %4423 = vmatmul.mubr.msk.bf16.vlgmr.msra.gmra.mxu1 %vm594_vm1, %v5553_v30 }
0x13a6   : > { %4435 = vmatpush3.bf16.msra.mxu1 %v5451_v54  ;;  %4438 = vmatprep.mubr.msk.bf16.mxu1 %vm594_vm1, %v2188_v46 }
0x13a7   : > { %4436 = vmatprep.subr.bf16.mxu1 %v5462_v55 }
0x13aa   : > { %4437 = vmatpush3.bf16.msra.mxu1 %v5462_v55 }
0x13ad   : > { %4439 = vmatmul.mubr.msk.bf16.vlgmr.msra.gmra.mxu1 %vm594_vm1, %v2190_v33 }
0x13ae   : > { %4454 = vmatprep.mubr.msk.bf16.mxu1 %vm594_vm1, %v5467_v16 }
0x140f   : > { %v2253_v19 = vpop.permute.xlu0 %2252 }
0x1410   : > { %4410 = vmatprep.subr.bf16.mxu0 %v2253_v19 }
0x1411   : > { %4411 = vmatpush3.bf16.msra.mxu0 %v2253_v19  ;;  %v2251_v18 = vpop.permute.xlu1 %2250 }
0x1412   : > { %4412 = vmatprep.subr.bf16.mxu0 %v2251_v18 }
0x1415   : > { %4413 = vmatpush3.bf16.msra.mxu0 %v2251_v18 }
0x1416   : > { %4426 = vmatprep.subr.bf16.mxu0 %v5567_v29 }
0x1418   : > { %4415 = vmatmul.mubr.msk.bf16.vlgmr.msra.gmra.mxu0 %vm594_vm1, %v5571_v56 }
0x1419   : > { %4427 = vmatpush3.bf16.msra.mxu0 %v5567_v29 }
0x141a   : > { %4428 = vmatprep.subr.bf16.mxu0 %v5579_v57 }
0x141d   : > { %4429 = vmatpush3.bf16.msra.mxu0 %v5579_v57 }
0x141e   : > { %4442 = vmatprep.subr.bf16.mxu0 %v5480_v31 }
0x1465   : > { %v4424_v58 = vpop.f32.mrf.mxu1 }
0x1467   : > { %v2339_v59 = vpop.f32.mrf.mxu1 }
0x1469   : > { %v4425_v34 = vpop.f32.mrf.mxu1 }
0x146b   : > { %v2342_v35 = vpop.f32.mrf.mxu1 }
0x146d   : > { %v4440_v11 = vpop.f32.mrf.mxu1 }
0x146e   : > { %v2454_v0 = vadd.f32 %v5492_v61, %v4440_v11 }
0x146f   : > { %v2445_v36 = vpop.f32.mrf.mxu1 }
0x1470   : > { %v2446_v12 = vadd.f32 %v5492_v61, %v2445_v36 }
0x1471   : > { %v4441_v62 = vpop.f32.mrf.mxu1 }
0x1472   : > { %2492 = vrot.lane.b32.xlu0 %v2446_v12, %s4957_s30  ;;  %v2457_v2 = vadd.f32 %v5492_v61, %v4441_v62 }
0x1473   : > { %v2448_v63 = vpop.f32.mrf.mxu1 }
0x1474   : > { %v2449_v1 = vadd.f32 %v5492_v61, %v2448_v63 }
0x1476   : > { %2494 = vrot.lane.b32.xlu1 %v2449_v1, %s4957_s30  ;;  %2496 = vrot.lane.b32.xlu0 %v2454_v0, %s4957_s30 }
0x147a   : > { %2498 = vrot.lane.b32.xlu1 %v2457_v2, %s4957_s30 }
0x14d8   : > { %v4416_v5 = vpop.f32.mrf.mxu0 }
0x14d9   : > { %v2348_v14 = vadd.f32 %v4424_v58, %v4416_v5 }
0x14da   : > { %v2290_v6 = vpop.f32.mrf.mxu0 }
0x14db   : > { %v2340_v10 = vadd.f32 %v2339_v59, %v2290_v6 }
0x14dc   : > { %v4417_v41 = vpop.f32.mrf.mxu0 }
0x14dd   : > { %v2351_v7 = vadd.f32 %v4425_v34, %v4417_v41 }
0x14de   : > { %v2293_v8 = vpop.f32.mrf.mxu0 }
0x14df   : > { %v2343_v17 = vadd.f32 %v2342_v35, %v2293_v8  ;;  %v2355_v21 = vpack.c.bf16 %v2351_v7, %v2348_v14 }
0x14e1   : > { %v2354_v9 = vpack.c.bf16 %v2343_v17, %v2340_v10 }
0x14e3   : > { %4430 = vmatprep.mubr.msk.bf16.mxu0 %vm594_vm1, %v2354_v9 }
0x14e4   : > { %4431 = vmatmul.mubr.msk.bf16.vlgmr.msra.gmra.mxu0 %vm594_vm1, %v2355_v21  ;;  %v2493_v18 = vpop.permute.xlu0 %2492 }
0x14e5   : > { %4443 = vmatpush3.bf16.msra.mxu0 %v5480_v31 }
0x14e6   : > { %4444 = vmatprep.subr.bf16.mxu0 %v5502_v15 }
0x14e8   : > { %v2495_v35 = vpop.permute.xlu1 %2494  ;;  %v2497_v36 = vpop.permute.xlu0 %2496 }
0x14e9   : > { %4445 = vmatpush3.bf16.msra.mxu0 %v5502_v15 }
0x15a4   : > { %v4432_v22 = vpop.f32.mrf.mxu0 }
0x15a5   : > { %v2405_v23 = vadd.f32 %v5512_v42, %v4432_v22 }
0x15a6   : > { %v2396_v24 = vpop.f32.mrf.mxu0 }
0x15a7   : > { %v2462_v39 = vadd.f32 %v2454_v0, %v2405_v23  ;;  %v2397_v40 = vadd.f32 %v5512_v42, %v2396_v24  ;;  %v2499_v0 = vpop.permute.xlu1 %2498 }
0x15a8   : > { %v4433_v3 = vpop.f32.mrf.mxu0 }
0x15a9   : > { %v4014_v32 = vmul.f32 -1.442695, %v2462_v39  ;;  %v2460_v43 = vadd.f32 %v2446_v12, %v2397_v40  ;;  %v2408_v20 = vadd.f32 %v5512_v42, %v4433_v3 }
0x15aa   : > { %v2399_v25 = vpop.f32.mrf.mxu0 }
0x15ab   : > { %4743 = vpow2.f32 %v4014_v32  ;;  %v4012_v45 = vmul.f32 -1.442695, %v2460_v43  ;;  %v2463_v46 = vadd.f32 %v2457_v2, %v2408_v20  ;;  %v2400_v33 = vadd.f32 %v5512_v42, %v2399_v25 }
0x15ad   : > { %4745 = vpow2.f32 %v4012_v45  ;;  %v4015_v4 = vmul.f32 -1.442695, %v2463_v46  ;;  %v2461_v60 = vadd.f32 %v2449_v1, %v2400_v33 }
0x15af   : > { %4747 = vpow2.f32 %v4015_v4  ;;  %v4013_v26 = vmul.f32 -1.442695, %v2461_v60 }
0x15b1   : > { %4749 = vpow2.f32 %v4013_v26 }
0x15b8   : > { %v4744_v47 = vpop.eup %4743 }
0x15b9   : > { %v2478_v49 = vadd.f32 1.0, %v4744_v47 }
0x15ba   : > { %v4746_v48 = vpop.eup %4745 }
0x15bb   : > { %v2476_v50 = vadd.f32 1.0, %v4746_v48 }
0x15bc   : > { %v4748_v51 = vpop.eup %4747 }
0x15bd   : > { %4751 = vrcp.f32 %v2476_v50  ;;  %v2479_v53 = vadd.f32 1.0, %v4748_v51 }
0x15be   : > { %v4750_v52 = vpop.eup %4749  ;;  %4753 = vrcp.f32 %v2478_v49 }
0x15bf   : > { %v2477_v19 = vadd.f32 1.0, %v4750_v52 }
0x15c1   : > { %4755 = vrcp.f32 %v2477_v19 }
0x15c2   : > { %4757 = vrcp.f32 %v2479_v53 }
0x15ca   : > { %v4752_v58 = vpop.eup %4751 }
0x15cb   : > { %v2504_v59 = vmul.f32 %v4752_v58, %v2493_v18  ;;  %v4754_v34 = vpop.eup %4753  ;;  %v2532_v39 = vsub.f32 1.0, %v4752_v58  ;;  %v2556_v32 = vmul.f32 %v4752_v58, %v5525_v37 }
0x15cc   : > { %v2506_v62 = vmul.f32 %v4754_v34, %v2497_v36  ;;  %v2534_v25 = vsub.f32 1.0, %v4754_v34  ;;  %v2558_v47 = vmul.f32 %v4754_v34, %v5533_v44 }
0x15cd   : > { %2512 = vrot.lane.b32.xlu0 %v2504_v59, %s4957_s30 }
0x15ce   : > { %v4756_v11 = vpop.eup %4755 }
0x15cf   : > { %v2505_v12 = vmul.f32 %v4756_v11, %v2495_v35  ;;  %v4758_v63 = vpop.eup %4757  ;;  %v2557_v43 = vmul.f32 %v4756_v11, %v5527_v38 }
0x15d0   : > { %v2507_v1 = vmul.f32 %v4758_v63, %v2499_v0  ;;  %v2535_v60 = vsub.f32 1.0, %v4758_v63  ;;  %v2559_v48 = vmul.f32 %v4758_v63, %v5535_v28 }
0x15d1   : > { %2514 = vrot.lane.b32.xlu1 %v2505_v12, %s4957_s30  ;;  %2516 = vrot.lane.b32.xlu0 %v2506_v62, %s4957_s30 }
0x15d5   : > { %2518 = vrot.lane.b32.xlu1 %v2507_v1, %s4957_s30 }
0x163f   : > { %v2513_v2 = vpop.permute.xlu0 %2512 }
0x1640   : > { %v2524_v5 = vadd.f32 %v2513_v2, %v2397_v40  ;;  %v2533_v40 = vsub.f32 1.0, %v4756_v11 }
0x1642   : > { %4759 = vtanh.f32 %v2524_v5 }
0x1643   : > { %v2515_v6 = vpop.permute.xlu1 %2514  ;;  %v2517_v41 = vpop.permute.xlu0 %2516 }
0x1644   : > { %v2525_v7 = vadd.f32 %v2515_v6, %v2400_v33  ;;  %v2526_v8 = vadd.f32 %v2517_v41, %v2405_v23 }
0x1646   : > { %4761 = vtanh.f32 %v2525_v7 }
0x1647   : > { %4763 = vtanh.f32 %v2526_v8  ;;  %v2519_v10 = vpop.permute.xlu1 %2518 }
0x1648   : > { %v2527_v17 = vadd.f32 %v2519_v10, %v2408_v20 }
0x164a   : > { %4765 = vtanh.f32 %v2527_v17 }
0x164f   : > { %v4760_v14 = vpop.eup %4759 }
0x1650   : > { %2540 = vrot.lane.b32.xlu0 %v4760_v14, %s4956_s29 }
0x1653   : > { %v4762_v9 = vpop.eup %4761 }
0x1654   : > { %v4764_v21 = vpop.eup %4763  ;;  %2542 = vrot.lane.b32.xlu1 %v4762_v9, %s4956_s29 }
0x1655   : > { %2544 = vrot.lane.b32.xlu0 %v4764_v21, %s4956_s29 }
0x1657   : > { %v4766_v22 = vpop.eup %4765 }
0x1658   : > { %2546 = vrot.lane.b32.xlu1 %v4766_v22, %s4956_s29 }
0x16c2   : > { %v2541_v24 = vpop.permute.xlu0 %2540 }
0x16c3   : > { %v2552_v23 = vmul.f32 %v2541_v24, %v2532_v39 }
0x16c5   : > { %v5611_v46 = vadd.f32 %v2556_v32, %v2552_v23 }
0x16c6   : > { %v2543_v3 = vpop.permute.xlu1 %2542 }
0x16c7   : > { %v2553_v20 = vmul.f32 %v2543_v3, %v2533_v40  ;;  %v2545_v45 = vpop.permute.xlu0 %2544 }
0x16c8   : > { %v2554_v4 = vmul.f32 %v2545_v45, %v2534_v25 }
0x16c9   : > { %v5613_v33 = vadd.f32 %v2557_v43, %v2553_v20 }
0x16ca   : > { %v2547_v26 = vpop.permute.xlu1 %2546  ;;  %v5619_v50 = vadd.f32 %v2558_v47, %v2554_v4 }
0x16cb   : > { %v2555_v49 = vmul.f32 %v2547_v26, %v2535_v60  ;;  %v2564_v37 = vpack.c.bf16 %v5613_v33, %v5611_v46 }
0x16cd   : > { %v5621_v38 = vadd.f32 %v2559_v48, %v2555_v49  ;;  %2568 = vrot.lane.b32.xlu0 %v2564_v37, %s4956_s29 }
0x16cf   : > { %v2565_v51 = vpack.c.bf16 %v5621_v38, %v5619_v50 }
0x16d1   : > { %2570 = vrot.lane.b32.xlu1 %v2565_v51, %s4956_s29 }
0x173f   : > { %v2569_v52 = vpop.permute.xlu0 %2568 }
0x1740   : > { %4446 = vmatprep.mubr.msk.bf16.mxu0 %vm594_vm1, %v2569_v52 }
0x1743   : > { %v2571_v44 = vpop.permute.xlu1 %2570 }
0x1744   : > { %4447 = vmatmul.mubr.msk.bf16.vlgmr.msra.gmra.mxu0 %vm594_vm1, %v2571_v44 }
0x1745   : > { %4462 = vmatprep.mubr.msk.bf16.mxu0 %vm594_vm1, %v5433_v13 }
0x1804   : > { %v4448_v28 = vpop.f32.mrf.mxu0 }
0x1805   : > { %v2621_v18 = vadd.f32 %v5440_v27, %v4448_v28 }
0x1806   : > { %v2612_v53 = vpop.f32.mrf.mxu0 }
0x1807   : > { %v2613_v34 = vadd.f32 %v5440_v27, %v2612_v53 }
0x1808   : > { %v4449_v19 = vpop.f32.mrf.mxu0 }
0x1809   : > { %v2624_v58 = vadd.f32 %v5440_v27, %v4449_v19 }
0x180a   : > { %v2615_v59 = vpop.f32.mrf.mxu0 }
0x180b   : > { %v2628_v35 = vpack.c.bf16 %v2624_v58, %v2621_v18  ;;  %v2616_v11 = vadd.f32 %v5440_v27, %v2615_v59 }
0x180d   : > { %v2627_v36 = vpack.c.bf16 %v2616_v11, %v2613_v34  ;;  %2633 = vrot.lane.b32.xlu0 %v2628_v35, %s4956_s29  ;;  %4458 = vmatprep.subr.bf16.mxu0 %v2628_v35 }
0x180e   : > { %4459 = vmatpush3.bf16.msra.mxu0 %v2628_v35 }
0x180f   : > { %2631 = vrot.lane.b32.xlu1 %v2627_v36, %s4956_s29  ;;  %4460 = vmatprep.subr.bf16.mxu0 %v2627_v36 }
0x1812   : > { %4461 = vmatpush3.bf16.msra.mxu0 %v2627_v36 }
0x1813   : > { %4474 = vmatprep.subr.bf16.mxu0 %v5451_v54 }
0x1815   : > { %4463 = vmatmul.mubr.msk.bf16.vlgmr.msra.gmra.mxu0 %vm594_vm1, %v5553_v30 }
0x1816   : > { %4475 = vmatpush3.bf16.msra.mxu0 %v5451_v54  ;;  %4478 = vmatprep.mubr.msk.bf16.mxu0 %vm594_vm1, %v2569_v52 }
0x1817   : > { %4476 = vmatprep.subr.bf16.mxu0 %v5462_v55 }
0x181a   : > { %4477 = vmatpush3.bf16.msra.mxu0 %v5462_v55 }
0x181d   : > { %4479 = vmatmul.mubr.msk.bf16.vlgmr.msra.gmra.mxu0 %vm594_vm1, %v2571_v44 }
0x181e   : > { %4494 = vmatprep.mubr.msk.bf16.mxu0 %vm594_vm1, %v5467_v16 }
0x187f   : > { %v2634_v12 = vpop.permute.xlu0 %2633 }
0x1880   : > { %4450 = vmatprep.subr.bf16.mxu1 %v2634_v12 }
0x1881   : > { %4451 = vmatpush3.bf16.msra.mxu1 %v2634_v12  ;;  %v2632_v62 = vpop.permute.xlu1 %2631 }
0x1882   : > { %4452 = vmatprep.subr.bf16.mxu1 %v2632_v62 }
0x1885   : > { %4453 = vmatpush3.bf16.msra.mxu1 %v2632_v62 }
0x1886   : > { %4466 = vmatprep.subr.bf16.mxu1 %v5567_v29 }
0x1888   : > { %4455 = vmatmul.mubr.msk.bf16.vlgmr.msra.gmra.mxu1 %vm594_vm1, %v5571_v56 }
0x1889   : > { %4467 = vmatpush3.bf16.msra.mxu1 %v5567_v29 }
0x188a   : > { %4468 = vmatprep.subr.bf16.mxu1 %v5579_v57 }
0x188d   : > { %4469 = vmatpush3.bf16.msra.mxu1 %v5579_v57 }
0x188e   : > { %4482 = vmatprep.subr.bf16.mxu1 %v5480_v31 }
0x18d5   : > { %v4464_v63 = vpop.f32.mrf.mxu0 }
0x18d7   : > { %v2720_v0 = vpop.f32.mrf.mxu0 }
0x18d9   : > { %v4465_v1 = vpop.f32.mrf.mxu0 }
0x18db   : > { %v2723_v2 = vpop.f32.mrf.mxu0 }
0x18dd   : > { %v4480_v5 = vpop.f32.mrf.mxu0 }
0x18de   : > { %v2835_v10 = vadd.f32 %v5492_v61, %v4480_v5 }
0x18df   : > { %v2826_v6 = vpop.f32.mrf.mxu0 }
0x18e0   : > { %v2827_v41 = vadd.f32 %v5492_v61, %v2826_v6 }
0x18e1   : > { %v4481_v7 = vpop.f32.mrf.mxu0 }
0x18e2   : > { %2873 = vrot.lane.b32.xlu0 %v2827_v41, %s4957_s30  ;;  %v2838_v14 = vadd.f32 %v5492_v61, %v4481_v7 }
0x18e3   : > { %v2829_v8 = vpop.f32.mrf.mxu0 }
0x18e4   : > { %v2830_v17 = vadd.f32 %v5492_v61, %v2829_v8 }
0x18e6   : > { %2875 = vrot.lane.b32.xlu1 %v2830_v17, %s4957_s30  ;;  %2877 = vrot.lane.b32.xlu0 %v2835_v10, %s4957_s30 }
0x18ea   : > { %2879 = vrot.lane.b32.xlu1 %v2838_v14, %s4957_s30 }
0x1948   : > { %v4456_v9 = vpop.f32.mrf.mxu1 }
0x1949   : > { %v2729_v3 = vadd.f32 %v4464_v63, %v4456_v9 }
0x194a   : > { %v2671_v21 = vpop.f32.mrf.mxu1 }
0x194b   : > { %v2721_v23 = vadd.f32 %v2720_v0, %v2671_v21 }
0x194c   : > { %v4457_v22 = vpop.f32.mrf.mxu1 }
0x194d   : > { %v2732_v24 = vadd.f32 %v4465_v1, %v4457_v22 }
0x194e   : > { %v2674_v39 = vpop.f32.mrf.mxu1 }
0x194f   : > { %v2724_v40 = vadd.f32 %v2723_v2, %v2674_v39  ;;  %v2736_v43 = vpack.c.bf16 %v2732_v24, %v2729_v3 }
0x1951   : > { %v2735_v32 = vpack.c.bf16 %v2724_v40, %v2721_v23 }
0x1953   : > { %4470 = vmatprep.mubr.msk.bf16.mxu1 %vm594_vm1, %v2735_v32 }
0x1954   : > { %4471 = vmatmul.mubr.msk.bf16.vlgmr.msra.gmra.mxu1 %vm594_vm1, %v2736_v43  ;;  %v2874_v62 = vpop.permute.xlu0 %2873 }
0x1955   : > { %4483 = vmatpush3.bf16.msra.mxu1 %v5480_v31 }
0x1956   : > { %4484 = vmatprep.subr.bf16.mxu1 %v5502_v15 }
0x1958   : > { %v2876_v2 = vpop.permute.xlu1 %2875  ;;  %v2878_v6 = vpop.permute.xlu0 %2877 }
0x1959   : > { %4485 = vmatpush3.bf16.msra.mxu1 %v5502_v15 }
0x1a14   : > { %v4472_v20 = vpop.f32.mrf.mxu1 }
0x1a15   : > { %v2786_v25 = vadd.f32 %v5512_v42, %v4472_v20 }
0x1a16   : > { %v2777_v45 = vpop.f32.mrf.mxu1 }
0x1a17   : > { %v2843_v4 = vadd.f32 %v2835_v10, %v2786_v25  ;;  %v2778_v60 = vadd.f32 %v5512_v42, %v2777_v45  ;;  %v2880_v10 = vpop.permute.xlu1 %2879 }
0x1a18   : > { %v4473_v26 = vpop.f32.mrf.mxu1 }
0x1a19   : > { %v4028_v47 = vmul.f32 -1.442695, %v2843_v4  ;;  %v2841_v48 = vadd.f32 %v2827_v41, %v2778_v60  ;;  %v2789_v49 = vadd.f32 %v5512_v42, %v4473_v26 }
0x1a1a   : > { %v2780_v37 = vpop.f32.mrf.mxu1 }
0x1a1b   : > { %4767 = vpow2.f32 %v4028_v47  ;;  %v4026_v51 = vmul.f32 -1.442695, %v2841_v48  ;;  %v2844_v52 = vadd.f32 %v2838_v14, %v2789_v49  ;;  %v2781_v44 = vadd.f32 %v5512_v42, %v2780_v37 }
0x1a1d   : > { %4769 = vpow2.f32 %v4026_v51  ;;  %v4029_v28 = vmul.f32 -1.442695, %v2844_v52  ;;  %v2842_v53 = vadd.f32 %v2830_v17, %v2781_v44 }
0x1a1f   : > { %4771 = vpow2.f32 %v4029_v28  ;;  %v4027_v19 = vmul.f32 -1.442695, %v2842_v53 }
0x1a21   : > { %4773 = vpow2.f32 %v4027_v19 }
0x1a28   : > { %v4768_v18 = vpop.eup %4767 }
0x1a29   : > { %v2859_v59 = vadd.f32 1.0, %v4768_v18 }
0x1a2a   : > { %v4770_v58 = vpop.eup %4769 }
0x1a2b   : > { %v2857_v34 = vadd.f32 1.0, %v4770_v58 }
0x1a2c   : > { %v4772_v35 = vpop.eup %4771 }
0x1a2d   : > { %4775 = vrcp.f32 %v2857_v34  ;;  %v2860_v36 = vadd.f32 1.0, %v4772_v35 }
0x1a2e   : > { %v4774_v11 = vpop.eup %4773  ;;  %4777 = vrcp.f32 %v2859_v59 }
0x1a2f   : > { %v2858_v12 = vadd.f32 1.0, %v4774_v11 }
0x1a31   : > { %4779 = vrcp.f32 %v2858_v12 }
0x1a32   : > { %4781 = vrcp.f32 %v2860_v36 }
0x1a3a   : > { %v4776_v63 = vpop.eup %4775 }
0x1a3b   : > { %v2885_v0 = vmul.f32 %v4776_v63, %v2874_v62  ;;  %v4778_v1 = vpop.eup %4777  ;;  %v2913_v4 = vsub.f32 1.0, %v4776_v63  ;;  %v2937_v47 = vmul.f32 %v4776_v63, %v5611_v46 }
0x1a3c   : > { %v2887_v7 = vmul.f32 %v4778_v1, %v2878_v6  ;;  %v2915_v37 = vsub.f32 1.0, %v4778_v1  ;;  %v2939_v58 = vmul.f32 %v4778_v1, %v5619_v50 }
0x1a3d   : > { %2893 = vrot.lane.b32.xlu0 %v2885_v0, %s4957_s30 }
0x1a3e   : > { %v4780_v5 = vpop.eup %4779 }
0x1a3f   : > { %v2886_v41 = vmul.f32 %v4780_v5, %v2876_v2  ;;  %v4782_v8 = vpop.eup %4781  ;;  %v2938_v48 = vmul.f32 %v4780_v5, %v5613_v33 }
0x1a40   : > { %v2888_v17 = vmul.f32 %v4782_v8, %v2880_v10  ;;  %v2916_v53 = vsub.f32 1.0, %v4782_v8  ;;  %v2940_v59 = vmul.f32 %v4782_v8, %v5621_v38 }
0x1a41   : > { %2895 = vrot.lane.b32.xlu1 %v2886_v41, %s4957_s30  ;;  %2897 = vrot.lane.b32.xlu0 %v2887_v7, %s4957_s30 }
0x1a45   : > { %2899 = vrot.lane.b32.xlu1 %v2888_v17, %s4957_s30 }
0x1aaf   : > { %v2894_v14 = vpop.permute.xlu0 %2893 }
0x1ab0   : > { %v2905_v9 = vadd.f32 %v2894_v14, %v2778_v60  ;;  %v2914_v60 = vsub.f32 1.0, %v4780_v5 }
0x1ab2   : > { %4783 = vtanh.f32 %v2905_v9 }
0x1ab3   : > { %v2896_v21 = vpop.permute.xlu1 %2895  ;;  %v2898_v22 = vpop.permute.xlu0 %2897 }
0x1ab4   : > { %v2906_v24 = vadd.f32 %v2896_v21, %v2781_v44  ;;  %v2907_v39 = vadd.f32 %v2898_v22, %v2786_v25 }
0x1ab6   : > { %4785 = vtanh.f32 %v2906_v24 }
0x1ab7   : > { %4787 = vtanh.f32 %v2907_v39  ;;  %v2900_v23 = vpop.permute.xlu1 %2899 }
0x1ab8   : > { %v2908_v40 = vadd.f32 %v2900_v23, %v2789_v49 }
0x1aba   : > { %4789 = vtanh.f32 %v2908_v40 }
0x1abf   : > { %v4784_v3 = vpop.eup %4783 }
0x1ac0   : > { %2921 = vrot.lane.b32.xlu0 %v4784_v3, %s4956_s29 }
0x1ac3   : > { %v4786_v32 = vpop.eup %4785 }
0x1ac4   : > { %v4788_v43 = vpop.eup %4787  ;;  %2923 = vrot.lane.b32.xlu1 %v4786_v32, %s4956_s29 }
0x1ac5   : > { %2925 = vrot.lane.b32.xlu0 %v4788_v43, %s4956_s29 }
0x1ac7   : > { %v4790_v20 = vpop.eup %4789 }
0x1ac8   : > { %2927 = vrot.lane.b32.xlu1 %v4790_v20, %s4956_s29 }
0x1b32   : > { %v2922_v45 = vpop.permute.xlu0 %2921 }
0x1b33   : > { %v2933_v25 = vmul.f32 %v2922_v45, %v2913_v4 }
0x1b35   : > { %v5681_v52 = vadd.f32 %v2937_v47, %v2933_v25 }
0x1b36   : > { %v2924_v26 = vpop.permute.xlu1 %2923 }
0x1b37   : > { %v2934_v49 = vmul.f32 %v2924_v26, %v2914_v60  ;;  %v2926_v51 = vpop.permute.xlu0 %2925 }
0x1b38   : > { %v2935_v28 = vmul.f32 %v2926_v51, %v2915_v37 }
0x1b39   : > { %v5683_v44 = vadd.f32 %v2938_v48, %v2934_v49 }
0x1b3a   : > { %v2928_v19 = vpop.permute.xlu1 %2927  ;;  %v5689_v34 = vadd.f32 %v2939_v58, %v2935_v28 }
0x1b3b   : > { %v2945_v18 = vpack.c.bf16 %v5683_v44, %v5681_v52  ;;  %v2936_v46 = vmul.f32 %v2928_v19, %v2916_v53 }
0x1b3d   : > { %v5691_v33 = vadd.f32 %v2940_v59, %v2936_v46  ;;  %2949 = vrot.lane.b32.xlu0 %v2945_v18, %s4956_s29 }
0x1b3f   : > { %v2946_v35 = vpack.c.bf16 %v5691_v33, %v5689_v34 }
0x1b41   : > { %2951 = vrot.lane.b32.xlu1 %v2946_v35, %s4956_s29 }
0x1baf   : > { %v2950_v11 = vpop.permute.xlu0 %2949 }
0x1bb0   : > { %4486 = vmatprep.mubr.msk.bf16.mxu1 %vm594_vm1, %v2950_v11 }
0x1bb3   : > { %v2952_v36 = vpop.permute.xlu1 %2951 }
0x1bb4   : > { %4487 = vmatmul.mubr.msk.bf16.vlgmr.msra.gmra.mxu1 %vm594_vm1, %v2952_v36 }
0x1bb5   : > { %4502 = vmatprep.mubr.msk.bf16.mxu1 %vm594_vm1, %v5433_v13 }
0x1c74   : > { %v4488_v50 = vpop.f32.mrf.mxu1 }
0x1c75   : > { %v3002_v62 = vadd.f32 %v5440_v27, %v4488_v50 }
0x1c76   : > { %v2993_v38 = vpop.f32.mrf.mxu1 }
0x1c77   : > { %v2994_v1 = vadd.f32 %v5440_v27, %v2993_v38 }
0x1c78   : > { %v4489_v12 = vpop.f32.mrf.mxu1 }
0x1c79   : > { %v3005_v63 = vadd.f32 %v5440_v27, %v4489_v12 }
0x1c7a   : > { %v2996_v0 = vpop.f32.mrf.mxu1 }
0x1c7b   : > { %v3009_v2 = vpack.c.bf16 %v3005_v63, %v3002_v62  ;;  %v2997_v5 = vadd.f32 %v5440_v27, %v2996_v0 }
0x1c7d   : > { %v3008_v6 = vpack.c.bf16 %v2997_v5, %v2994_v1  ;;  %3014 = vrot.lane.b32.xlu0 %v3009_v2, %s4956_s29  ;;  %4498 = vmatprep.subr.bf16.mxu1 %v3009_v2 }
0x1c7e   : > { %4499 = vmatpush3.bf16.msra.mxu1 %v3009_v2 }
0x1c7f   : > { %3012 = vrot.lane.b32.xlu1 %v3008_v6, %s4956_s29  ;;  %4500 = vmatprep.subr.bf16.mxu1 %v3008_v6 }
0x1c82   : > { %4501 = vmatpush3.bf16.msra.mxu1 %v3008_v6 }
0x1c83   : > { %4514 = vmatprep.subr.bf16.mxu1 %v5451_v54 }
0x1c85   : > { %4503 = vmatmul.mubr.msk.bf16.vlgmr.msra.gmra.mxu1 %vm594_vm1, %v5553_v30 }
0x1c86   : > { %4515 = vmatpush3.bf16.msra.mxu1 %v5451_v54  ;;  %4518 = vmatprep.mubr.msk.bf16.mxu1 %vm594_vm1, %v2950_v11 }
0x1c87   : > { %4516 = vmatprep.subr.bf16.mxu1 %v5462_v55 }
0x1c8a   : > { %4517 = vmatpush3.bf16.msra.mxu1 %v5462_v55 }
0x1c8d   : > { %4519 = vmatmul.mubr.msk.bf16.vlgmr.msra.gmra.mxu1 %vm594_vm1, %v2952_v36 }
0x1c8e   : > { %4534 = vmatprep.mubr.msk.bf16.mxu1 %vm594_vm1, %v5467_v16 }
0x1cef   : > { %v3015_v13 = vpop.permute.xlu0 %3014 }
0x1cf0   : > { %4490 = vmatprep.subr.bf16.mxu0 %v3015_v13 }
0x1cf1   : > { %4491 = vmatpush3.bf16.msra.mxu0 %v3015_v13  ;;  %v3013_v27 = vpop.permute.xlu1 %3012 }
0x1cf2   : > { %4492 = vmatprep.subr.bf16.mxu0 %v3013_v27 }
0x1cf5   : > { %4493 = vmatpush3.bf16.msra.mxu0 %v3013_v27 }
0x1cf6   : > { %4506 = vmatprep.subr.bf16.mxu0 %v5567_v29 }
0x1cf8   : > { %4495 = vmatmul.mubr.msk.bf16.vlgmr.msra.gmra.mxu0 %vm594_vm1, %v5571_v56 }
0x1cf9   : > { %4507 = vmatpush3.bf16.msra.mxu0 %v5567_v29 }
0x1cfa   : > { %4508 = vmatprep.subr.bf16.mxu0 %v5579_v57 }
0x1cfd   : > { %4509 = vmatpush3.bf16.msra.mxu0 %v5579_v57 }
0x1cfe   : > { %4522 = vmatprep.subr.bf16.mxu0 %v5480_v31 }
0x1d45   : > { %v4504_v54 = vpop.f32.mrf.mxu1 }
0x1d47   : > { %v3101_v55 = vpop.f32.mrf.mxu1 }
0x1d49   : > { %v4505_v16 = vpop.f32.mrf.mxu1 }
0x1d4b   : > { %v3104_v41 = vpop.f32.mrf.mxu1 }
0x1d4d   : > { %v4520_v7 = vpop.f32.mrf.mxu1 }
0x1d4e   : > { %v3216_v9 = vadd.f32 %v5492_v61, %v4520_v7 }
0x1d4f   : > { %v3207_v8 = vpop.f32.mrf.mxu1 }
0x1d50   : > { %v3208_v10 = vadd.f32 %v5492_v61, %v3207_v8 }
0x1d51   : > { %v4521_v17 = vpop.f32.mrf.mxu1 }
0x1d52   : > { %3254 = vrot.lane.b32.xlu0 %v3208_v10, %s4957_s30  ;;  %v3219_v31 = vadd.f32 %v5492_v61, %v4521_v17 }
0x1d53   : > { %v3210_v14 = vpop.f32.mrf.mxu1 }
0x1d54   : > { %v3211_v21 = vadd.f32 %v5492_v61, %v3210_v14  ;;  %v4852_v61 = vld [vmem:[%s5882_s4 + $0x8] sm:$0xff]  }
0x1d56   : > { %3256 = vrot.lane.b32.xlu1 %v3211_v21, %s4957_s30  ;;  %3258 = vrot.lane.b32.xlu0 %v3216_v9, %s4957_s30 }
0x1d5a   : > { %3260 = vrot.lane.b32.xlu1 %v3219_v31, %s4957_s30 }
0x1db8   : > { %v4496_v22 = vpop.f32.mrf.mxu0 }
0x1db9   : > { %v3110_v43 = vadd.f32 %v4504_v54, %v4496_v22 }
0x1dba   : > { %v3052_v24 = vpop.f32.mrf.mxu0 }
0x1dbb   : > { %v3102_v3 = vadd.f32 %v3101_v55, %v3052_v24 }
0x1dbc   : > { %v4497_v39 = vpop.f32.mrf.mxu0 }
0x1dbd   : > { %v3113_v23 = vadd.f32 %v4505_v16, %v4497_v39 }
0x1dbe   : > { %v3055_v40 = vpop.f32.mrf.mxu0 }
0x1dbf   : > { %v3105_v32 = vadd.f32 %v3104_v41, %v3055_v40  ;;  %v3117_v45 = vpack.c.bf16 %v3113_v23, %v3110_v43 }
0x1dc1   : > { %v3116_v20 = vpack.c.bf16 %v3105_v32, %v3102_v3 }
0x1dc3   : > { %4510 = vmatprep.mubr.msk.bf16.mxu0 %vm594_vm1, %v3116_v20 }
0x1dc4   : > { %4511 = vmatmul.mubr.msk.bf16.vlgmr.msra.gmra.mxu0 %vm594_vm1, %v3117_v45  ;;  %v3255_v63 = vpop.permute.xlu0 %3254 }
0x1dc5   : > { %4523 = vmatpush3.bf16.msra.mxu0 %v4852_v61 }
0x1dc6   : > { %4524 = vmatprep.subr.bf16.mxu0 %v5502_v15 }
0x1dc8   : > { %v3257_v2 = vpop.permute.xlu1 %3256  ;;  %v3259_v6 = vpop.permute.xlu0 %3258 }
0x1dc9   : > { %4525 = vmatpush3.bf16.msra.mxu0 %v5502_v15 }
0x1dcc   : > { %v3261_v55 = vpop.permute.xlu1 %3260 }
0x1e84   : > { %v4512_v4 = vpop.f32.mrf.mxu0 }
0x1e85   : > { %v3167_v25 = vadd.f32 %v5512_v42, %v4512_v4 }
0x1e86   : > { %v3158_v60 = vpop.f32.mrf.mxu0 }
0x1e87   : > { %v3224_v26 = vadd.f32 %v3216_v9, %v3167_v25  ;;  %v3159_v47 = vadd.f32 %v5512_v42, %v3158_v60 }
0x1e88   : > { %v4513_v48 = vpop.f32.mrf.mxu0 }
0x1e89   : > { %v4042_v49 = vmul.f32 -1.442695, %v3224_v26  ;;  %v3222_v37 = vadd.f32 %v3208_v10, %v3159_v47  ;;  %v3170_v51 = vadd.f32 %v5512_v42, %v4513_v48 }
0x1e8a   : > { %v3161_v28 = vpop.f32.mrf.mxu0 }
0x1e8b   : > { %4791 = vpow2.f32 %v4042_v49  ;;  %v4040_v53 = vmul.f32 -1.442695, %v3222_v37  ;;  %v3225_v19 = vadd.f32 %v3219_v31, %v3170_v51  ;;  %v3162_v18 = vadd.f32 %v5512_v42, %v3161_v28 }
0x1e8d   : > { %4793 = vpow2.f32 %v4040_v53  ;;  %v4043_v15 = vmul.f32 -1.442695, %v3225_v19  ;;  %v3223_v58 = vadd.f32 %v3211_v21, %v3162_v18 }
0x1e8f   : > { %4795 = vpow2.f32 %v4043_v15  ;;  %v4041_v59 = vmul.f32 -1.442695, %v3223_v58 }
0x1e91   : > { %4797 = vpow2.f32 %v4041_v59 }
0x1e98   : > { %v4792_v46 = vpop.eup %4791 }
0x1e99   : > { %v3240_v11 = vadd.f32 1.0, %v4792_v46  ;;  %v4854_v46 = vld [vmem:[%s5883_s5] ss:$0 sm:$0xff] }
0x1e9a   : > { %v4794_v35 = vpop.eup %4793 }
0x1e9b   : > { %v3238_v36 = vadd.f32 1.0, %v4794_v35 }
0x1e9c   : > { %v4796_v50 = vpop.eup %4795 }
0x1e9d   : > { %4799 = vrcp.f32 %v3238_v36  ;;  %v3241_v12 = vadd.f32 1.0, %v4796_v50 }
0x1e9e   : > { %v4798_v38 = vpop.eup %4797  ;;  %4801 = vrcp.f32 %v3240_v11 }
0x1e9f   : > { %v3239_v62 = vadd.f32 1.0, %v4798_v38 }
0x1ea1   : > { %4803 = vrcp.f32 %v3239_v62 }
0x1ea2   : > { %4805 = vrcp.f32 %v3241_v12 }
0x1eaa   : > { %v4800_v42 = vpop.eup %4799 }
0x1eab   : > { %v3266_v0 = vmul.f32 %v4800_v42, %v3255_v63  ;;  %v4802_v1 = vpop.eup %4801  ;;  %v3294_v40 = vsub.f32 1.0, %v4800_v42  ;;  %v3318_v20 = vmul.f32 %v4800_v42, %v5681_v52  ;;  %v4855_v63 = vld [vmem:[%s5886_s8 + $0x8] sm:$0xff]   ;;  %v4856_v42 = vld [vmem:[%s5886_s8] sm:$0xff]  }
0x1eac   : > { %v3268_v27 = vmul.f32 %v4802_v1, %v3259_v6  ;;  %v3296_v4 = vsub.f32 1.0, %v4802_v1 }
0x1ead   : > { %3274 = vrot.lane.b32.xlu0 %v3266_v0, %s4957_s30 }
0x1eae   : > { %v4804_v5 = vpop.eup %4803 }
0x1eaf   : > { %v3267_v13 = vmul.f32 %v4804_v5, %v3257_v2  ;;  %v4806_v54 = vpop.eup %4805  ;;  %v3295_v32 = vsub.f32 1.0, %v4804_v5  ;;  %v3319_v45 = vmul.f32 %v4804_v5, %v5683_v44 }
0x1eb0   : > { %v3269_v16 = vmul.f32 %v4806_v54, %v3261_v55  ;;  %v3297_v48 = vsub.f32 1.0, %v4806_v54  ;;  %v3321_v52 = vmul.f32 %v4806_v54, %v5691_v33 }
0x1eb1   : > { %3276 = vrot.lane.b32.xlu1 %v3267_v13, %s4957_s30  ;;  %3278 = vrot.lane.b32.xlu0 %v3268_v27, %s4957_s30  ;;  %v4857_v27 = vld [vmem:[%s5887_s9] ss:$0 sm:$0xff] }
0x1eb5   : > { %3280 = vrot.lane.b32.xlu1 %v3269_v16, %s4957_s30 }
0x1f1f   : > { %v3275_v41 = vpop.permute.xlu0 %3274 }
0x1f20   : > { %v3286_v7 = vadd.f32 %v3275_v41, %v3159_v47 }
0x1f22   : > { %4807 = vtanh.f32 %v3286_v7 }
0x1f23   : > { %v3277_v8 = vpop.permute.xlu1 %3276  ;;  %v3279_v10 = vpop.permute.xlu0 %3278 }
0x1f24   : > { %v3287_v17 = vadd.f32 %v3277_v8, %v3162_v18  ;;  %v3288_v14 = vadd.f32 %v3279_v10, %v3167_v25 }
0x1f26   : > { %4809 = vtanh.f32 %v3287_v17 }
0x1f27   : > { %4811 = vtanh.f32 %v3288_v14  ;;  %v3281_v9 = vpop.permute.xlu1 %3280 }
0x1f28   : > { %v3289_v21 = vadd.f32 %v3281_v9, %v3170_v51  ;;  %v3320_v51 = vmul.f32 %v4802_v1, %v5689_v34  ;;  %v4853_v34 = vld [vmem:[%s5128_s28] sm:$0xff]  }
0x1f2a   : > { %4813 = vtanh.f32 %v3289_v21 }
0x1f2f   : > { %v4808_v31 = vpop.eup %4807 }
0x1f30   : > { %3302 = vrot.lane.b32.xlu0 %v4808_v31, %s4956_s29 }
0x1f33   : > { %v4810_v22 = vpop.eup %4809 }
0x1f34   : > { %v4812_v24 = vpop.eup %4811  ;;  %3304 = vrot.lane.b32.xlu1 %v4810_v22, %s4956_s29 }
0x1f35   : > { %3306 = vrot.lane.b32.xlu0 %v4812_v24, %s4956_s29 }
0x1f37   : > { %v4814_v39 = vpop.eup %4813 }
0x1f38   : > { %3308 = vrot.lane.b32.xlu1 %v4814_v39, %s4956_s29 }
0x1fa2   : > { %v3303_v23 = vpop.permute.xlu0 %3302 }
0x1fa3   : > { %v3314_v3 = vmul.f32 %v3303_v23, %v3294_v40  ;;  %v4858_v23 = vld [vmem:[%s5885_s7] ss:$0 sm:$0xff] }
0x1fa5   : > { %v5753_v60 = vadd.f32 %v3318_v20, %v3314_v3 }
0x1fa6   : > { %v3305_v43 = vpop.permute.xlu1 %3304 }
0x1fa7   : > { %v3315_v61 = vmul.f32 %v3305_v43, %v3295_v32  ;;  %v3307_v25 = vpop.permute.xlu0 %3306 }
0x1fa8   : > { %v3316_v47 = vmul.f32 %v3307_v25, %v3296_v4 }
0x1fa9   : > { %v5755_v26 = vadd.f32 %v3319_v45, %v3315_v61 }
0x1faa   : > { %v3309_v49 = vpop.permute.xlu1 %3308  ;;  %v5761_v44 = vadd.f32 %v3320_v51, %v3316_v47 }
0x1fab   : > { %v3326_v37 = vpack.c.bf16 %v5755_v26, %v5753_v60  ;;  %v3317_v28 = vmul.f32 %v3309_v49, %v3297_v48 }
0x1fad   : > { %v5763_v53 = vadd.f32 %v3321_v52, %v3317_v28  ;;  %3330 = vrot.lane.b32.xlu0 %v3326_v37, %s4956_s29 }
0x1faf   : > { %v3327_v19 = vpack.c.bf16 %v5763_v53, %v5761_v44 }
0x1fb1   : > { %3332 = vrot.lane.b32.xlu1 %v3327_v19, %s4956_s29 }
0x201f   : > { %v3331_v18 = vpop.permute.xlu0 %3330 }
0x2020   : > { %4526 = vmatprep.mubr.msk.bf16.mxu0 %vm594_vm1, %v3331_v18 }
0x2023   : > { %v3333_v15 = vpop.permute.xlu1 %3332 }
0x2024   : > { %4527 = vmatmul.mubr.msk.bf16.vlgmr.msra.gmra.mxu0 %vm594_vm1, %v3333_v15 }
0x2025   : > { %4542 = vmatprep.mubr.msk.bf16.mxu0 %vm594_vm1, %v4853_v34 }
0x20e4   : > { %v4528_v33 = vpop.f32.mrf.mxu0 }
0x20e5   : > { %v3383_v35 = vadd.f32 %v4854_v46, %v4528_v33 }
0x20e6   : > { %v3374_v58 = vpop.f32.mrf.mxu0 }
0x20e7   : > { %v3375_v50 = vadd.f32 %v4854_v46, %v3374_v58 }
0x20e8   : > { %v4529_v59 = vpop.f32.mrf.mxu0 }
0x20e9   : > { %v3386_v11 = vadd.f32 %v4854_v46, %v4529_v59 }
0x20ea   : > { %v3377_v36 = vpop.f32.mrf.mxu0 }
0x20eb   : > { %v3390_v38 = vpack.c.bf16 %v3386_v11, %v3383_v35  ;;  %v3378_v12 = vadd.f32 %v4854_v46, %v3377_v36 }
0x20ed   : > { %v3389_v62 = vpack.c.bf16 %v3378_v12, %v3375_v50  ;;  %3395 = vrot.lane.b32.xlu0 %v3390_v38, %s4956_s29  ;;  %4538 = vmatprep.subr.bf16.mxu0 %v3390_v38 }
0x20ee   : > { %4539 = vmatpush3.bf16.msra.mxu0 %v3390_v38 }
0x20ef   : > { %3393 = vrot.lane.b32.xlu1 %v3389_v62, %s4956_s29  ;;  %4540 = vmatprep.subr.bf16.mxu0 %v3389_v62 }
0x20f2   : > { %4541 = vmatpush3.bf16.msra.mxu0 %v3389_v62 }
0x20f3   : > { %4554 = vmatprep.subr.bf16.mxu0 %v4855_v63 }
0x20f5   : > { %4543 = vmatmul.mubr.msk.bf16.vlgmr.msra.gmra.mxu0 %vm594_vm1, %v5553_v30 }
0x20f6   : > { %4555 = vmatpush3.bf16.msra.mxu0 %v4855_v63  ;;  %4558 = vmatprep.mubr.msk.bf16.mxu0 %vm594_vm1, %v3331_v18 }
0x20f7   : > { %4556 = vmatprep.subr.bf16.mxu0 %v4856_v42 }
0x20fa   : > { %4557 = vmatpush3.bf16.msra.mxu0 %v4856_v42 }
0x20fd   : > { %4559 = vmatmul.mubr.msk.bf16.vlgmr.msra.gmra.mxu0 %vm594_vm1, %v3333_v15 }
0x215f   : > { %v3396_v0 = vpop.permute.xlu0 %3395 }
0x2160   : > { %4530 = vmatprep.subr.bf16.mxu1 %v3396_v0 }
0x2161   : > { %4531 = vmatpush3.bf16.msra.mxu1 %v3396_v0  ;;  %v3394_v1 = vpop.permute.xlu1 %3393 }
0x2162   : > { %4532 = vmatprep.subr.bf16.mxu1 %v3394_v1 }
0x2165   : > { %4533 = vmatpush3.bf16.msra.mxu1 %v3394_v1 }
0x2166   : > { %4546 = vmatprep.subr.bf16.mxu1 %v5567_v29 }
0x2168   : > { %4535 = vmatmul.mubr.msk.bf16.vlgmr.msra.gmra.mxu1 %vm594_vm1, %v5571_v56 }
0x2169   : > { %4547 = vmatpush3.bf16.msra.mxu1 %v5567_v29 }
0x216a   : > { %4548 = vmatprep.subr.bf16.mxu1 %v5579_v57 }
0x216d   : > { %4549 = vmatpush3.bf16.msra.mxu1 %v5579_v57 }
0x21b5   : > { %v4544_v30 = vpop.f32.mrf.mxu0 }
0x21b7   : > { %v3482_v2 = vpop.f32.mrf.mxu0 }
0x21b9   : > { %v4545_v5 = vpop.f32.mrf.mxu0 }
0x21bb   : > { %v3485_v6 = vpop.f32.mrf.mxu0 }
0x21bd   : > { %v4560_v13 = vpop.f32.mrf.mxu0 }
0x21be   : > { %v3597_v54 = vadd.f32 %v4857_v27, %v4560_v13 }
0x21bf   : > { %v3588_v55 = vpop.f32.mrf.mxu0 }
0x21c0   : > { %3639 = vrot.lane.b32.xlu0 %v3597_v54, %s4957_s30  ;;  %v3589_v16 = vadd.f32 %v4857_v27, %v3588_v55 }
0x21c1   : > { %v4561_v56 = vpop.f32.mrf.mxu0 }
0x21c2   : > { %v3600_v29 = vadd.f32 %v4857_v27, %v4561_v56 }
0x21c3   : > { %v3591_v41 = vpop.f32.mrf.mxu0 }
0x21c4   : > { %3641 = vrot.lane.b32.xlu1 %v3600_v29, %s4957_s30  ;;  %3635 = vrot.lane.b32.xlu0 %v3589_v16, %s4957_s30  ;;  %v3592_v57 = vadd.f32 %v4857_v27, %v3591_v41 }
0x21c8   : > { %3637 = vrot.lane.b32.xlu1 %v3592_v57, %s4957_s30 }
0x2228   : > { %v4536_v7 = vpop.f32.mrf.mxu1 }
0x2229   : > { %v3491_v31 = vadd.f32 %v4544_v30, %v4536_v7 }
0x222a   : > { %v3433_v8 = vpop.f32.mrf.mxu1 }
0x222b   : > { %v3483_v9 = vadd.f32 %v3482_v2, %v3433_v8 }
0x222c   : > { %v4537_v10 = vpop.f32.mrf.mxu1 }
0x222d   : > { %v3494_v17 = vadd.f32 %v4545_v5, %v4537_v10 }
0x222e   : > { %v3436_v14 = vpop.f32.mrf.mxu1 }
0x222f   : > { %v3486_v21 = vadd.f32 %v3485_v6, %v3436_v14  ;;  %v3498_v24 = vpack.c.bf16 %v3494_v17, %v3491_v31 }
0x2231   : > { %v3497_v22 = vpack.c.bf16 %v3486_v21, %v3483_v9 }
0x2232   : > { %v3640_v46 = vpop.permute.xlu0 %3639 }
0x2233   : > { %4550 = vmatprep.mubr.msk.bf16.mxu1 %vm594_vm1, %v3497_v22 }
0x2234   : > { %4551 = vmatmul.mubr.msk.bf16.vlgmr.msra.gmra.mxu1 %vm594_vm1, %v3498_v24 }
0x2236   : > { %v3642_v50 = vpop.permute.xlu1 %3641  ;;  %v3636_v12 = vpop.permute.xlu0 %3635 }
0x223a   : > { %v3638_v0 = vpop.permute.xlu1 %3637 }
0x22f4   : > { %v4552_v39 = vpop.f32.mrf.mxu1 }
0x22f5   : > { %v3548_v40 = vadd.f32 %v4858_v23, %v4552_v39  ;;  %v4645_v39 = vld [vmem:[%s5888_s10 + $0x8] sm:$0xff]  }
0x22f6   : > { %v3539_v3 = vpop.f32.mrf.mxu1 }
0x22f7   : > { %v3605_v32 = vadd.f32 %v3597_v54, %v3548_v40  ;;  %v3540_v43 = vadd.f32 %v4858_v23, %v3539_v3 }
0x22f8   : > { %v4553_v20 = vpop.f32.mrf.mxu1 }
0x22f9   : > { %v4056_v45 = vmul.f32 -1.442695, %v3605_v32  ;;  %v3603_v61 = vadd.f32 %v3589_v16, %v3540_v43  ;;  %v3551_v4 = vadd.f32 %v4858_v23, %v4553_v20  ;;  %v4959_v16 = vmov 0.0  }
0x22fa   : > { %v3542_v25 = vpop.f32.mrf.mxu1  ;;  %4562 = vmatprep.subr.bf16.mxu1 %v4959_v16  ;;  %4570 = vmatprep.subr.bf16.mxu0 %v4959_v16 }
0x22fb   : > { %4815 = vpow2.f32 %v4056_v45  ;;  %v4054_v47 = vmul.f32 -1.442695, %v3603_v61  ;;  %v3606_v48 = vadd.f32 %v3600_v29, %v3551_v4  ;;  %v3543_v49 = vadd.f32 %v4858_v23, %v3542_v25  ;;  %4566 = vmatprep.mubr.msk.bf16.mxu1 %vm4960_vm2, %v4959_v16  ;;  %4574 = vmatprep.mubr.msk.bf16.mxu0 %vm4960_vm2, %v4959_v16 }
0x22fc   : > { %4571 = vmatpush3.bf16.msra.mxu0 %v4645_v39 }
0x22fd   : > { %4817 = vpow2.f32 %v4054_v47  ;;  %v4057_v37 = vmul.f32 -1.442695, %v3606_v48  ;;  %v3604_v51 = vadd.f32 %v3592_v57, %v3543_v49  ;;  %4572 = vmatprep.subr.bf16.mxu0 %v4959_v16 }
0x22ff   : > { %4819 = vpow2.f32 %v4057_v37  ;;  %v4055_v52 = vmul.f32 -1.442695, %v3604_v51 }
0x2301   : > { %4821 = vpow2.f32 %v4055_v52 }
0x2308   : > { %v4816_v28 = vpop.eup %4815 }
0x2309   : > { %v3621_v19 = vadd.f32 1.0, %v4816_v28 }
0x230a   : > { %v4818_v18 = vpop.eup %4817 }
0x230b   : > { %4823 = vrcp.f32 %v3621_v19  ;;  %v3619_v15 = vadd.f32 1.0, %v4818_v18  ;;  %v3765_v19 = vld [vmem:[%s5889_s11] sm:$0x1] }
0x230c   : > { %v4820_v34 = vpop.eup %4819 }
0x230d   : > { %4825 = vrcp.f32 %v3619_v15  ;;  %v3622_v33 = vadd.f32 1.0, %v4820_v34 }
0x230e   : > { %v4822_v58 = vpop.eup %4821 }
0x230f   : > { %4827 = vrcp.f32 %v3622_v33  ;;  %v3620_v59 = vadd.f32 1.0, %v4822_v58 }
0x2311   : > { %4829 = vrcp.f32 %v3620_v59 }
0x2318   : > { %v4824_v35 = vpop.eup %4823 }
0x2319   : > { %v3649_v11 = vmul.f32 %v4824_v35, %v3640_v46  ;;  %v3677_v8 = vsub.f32 1.0, %v4824_v35  ;;  %v3701_v9 = vmul.f32 %v4824_v35, %v5761_v44 }
0x231a   : > { %v4826_v36 = vpop.eup %4825 }
0x231b   : > { %3659 = vrot.lane.b32.xlu0 %v3649_v11, %s4957_s30  ;;  %v3647_v63 = vmul.f32 %v4826_v36, %v3636_v12  ;;  %v3675_v22 = vsub.f32 1.0, %v4826_v36  ;;  %v3699_v45 = vmul.f32 %v4826_v36, %v5753_v60  ;;  %v4646_v60 = vld [vmem:[%s5888_s10] sm:$0xff]  }
0x231c   : > { %v4828_v38 = vpop.eup %4827  ;;  %4573 = vmatpush3.bf16.msra.mxu0 %v4646_v60 }
0x231d   : > { %v3650_v62 = vmul.f32 %v4828_v38, %v3642_v50  ;;  %v3678_v17 = vsub.f32 1.0, %v4828_v38  ;;  %v3702_v21 = vmul.f32 %v4828_v38, %v5763_v53 }
0x231e   : > { %v4830_v42 = vpop.eup %4829 }
0x231f   : > { %3661 = vrot.lane.b32.xlu1 %v3650_v62, %s4957_s30  ;;  %3655 = vrot.lane.b32.xlu0 %v3647_v63, %s4957_s30  ;;  %v3648_v1 = vmul.f32 %v4830_v42, %v3638_v0  ;;  %v3676_v32 = vsub.f32 1.0, %v4830_v42  ;;  %v3700_v44 = vmul.f32 %v4830_v42, %v5755_v26 }
0x2323   : > { %3657 = vrot.lane.b32.xlu1 %v3648_v1, %s4957_s30  ;;  %s4887_s30 = scalar_lea.vmem %s5838_s13, 16 }
0x2324   : > { %p4888_p11 = scmp.ne.s32.totalorder %s5838_s13, %s4887_s30  ;;  %p4895_p8 = scmp.lt.s32.totalorder %s4893_s14, %s4887_s30 }
0x2326   : > { %p4889_p4 = pnand %p4888_p11, %p5909_p12  ;;  %p4896_p9 = por %p4895_p8, %p4894_p7 }
0x2328   : > { %p4890_p5 = pneg %p4889_p4 }
0x232a   : > { %p4897_p13 = pnand %p4896_p9, %p4890_p5 }
0x238d   : > { %v3660_v30 = vpop.permute.xlu0 %3659 }
0x238e   : > { %v3669_v2 = vadd.f32 %v3660_v30, %v3548_v40 }
0x2390   : > { %4831 = vtanh.f32 %v3669_v2 }
0x2391   : > { %v3662_v5 = vpop.permute.xlu1 %3661  ;;  %v3656_v6 = vpop.permute.xlu0 %3655 }
0x2392   : > { %v3670_v13 = vadd.f32 %v3662_v5, %v3551_v4  ;;  %v3667_v27 = vadd.f32 %v3656_v6, %v3540_v43 }
0x2394   : > { %4833 = vtanh.f32 %v3670_v13 }
0x2395   : > { %4835 = vtanh.f32 %v3667_v27  ;;  %v3658_v54 = vpop.permute.xlu1 %3657 }
0x2396   : > { %v3668_v55 = vadd.f32 %v3658_v54, %v3543_v49  ;;  %v4961_v49 = vmov 1065369472  }
0x2398   : > { %4837 = vtanh.f32 %v3668_v55 }
0x239d   : > { %v4832_v56 = vpop.eup %4831 }
0x239e   : > { %3687 = vrot.lane.b32.xlu0 %v4832_v56, %s4956_s29 }
0x23a1   : > { %v4834_v29 = vpop.eup %4833 }
0x23a2   : > { %v4836_v41 = vpop.eup %4835  ;;  %3689 = vrot.lane.b32.xlu1 %v4834_v29, %s4956_s29 }
0x23a3   : > { %3683 = vrot.lane.b32.xlu0 %v4836_v41, %s4956_s29 }
0x23a5   : > { %v4838_v57 = vpop.eup %4837 }
0x23a6   : > { %3685 = vrot.lane.b32.xlu1 %v4838_v57, %s4956_s29 }
0x2410   : > { %v3688_v7 = vpop.permute.xlu0 %3687 }
0x2411   : > { %v3697_v10 = vmul.f32 %v3688_v7, %v3677_v8 }
0x2413   : > { %v3705_v23 = vadd.f32 %v3701_v9, %v3697_v10 }
0x2414   : > { %v3690_v14 = vpop.permute.xlu1 %3689 }
0x2415   : > { %v3698_v31 = vmul.f32 %v3690_v14, %v3678_v17  ;;  %v3684_v24 = vpop.permute.xlu0 %3683 }
0x2416   : > { %v3695_v3 = vmul.f32 %v3684_v24, %v3675_v22 }
0x2417   : > { %v3706_v40 = vadd.f32 %v3702_v21, %v3698_v31 }
0x2418   : > { %v3686_v43 = vpop.permute.xlu1 %3685  ;;  %v3703_v61 = vadd.f32 %v3699_v45, %v3695_v3 }
0x2419   : > { %v3708_v20 = vpack.c.bf16 %v3706_v40, %v3705_v23  ;;  %v3696_v53 = vmul.f32 %v3686_v43, %v3676_v32 }
0x241b   : > { %v3704_v4 = vadd.f32 %v3700_v44, %v3696_v53  ;;  %3713 = vrot.lane.b32.xlu0 %v3708_v20, %s4956_s29 }
0x241d   : > { %v3707_v25 = vpack.c.bf16 %v3704_v4, %v3703_v61 }
0x241f   : > { %3711 = vrot.lane.b32.xlu1 %v3707_v25, %s4956_s29 }
0x248d   : > { %v3714_v47 = vpop.permute.xlu0 %3713 }
0x248e   : > { %4563 = vmatpush3.bf16.msra.mxu1 %v3714_v47 }
0x248f   : > { %4564 = vmatprep.subr.bf16.mxu1 %v4959_v16 }
0x2491   : > { %v3712_v48 = vpop.permute.xlu1 %3711 }
0x2492   : > { %4565 = vmatpush3.bf16.msra.mxu1 %v3712_v48 }
0x2495   : > { %4567 = vmatmul.mubr.msk.bf16.vlgmr.msra.gmra.mxu1 %vm594_vm1, %v4961_v49 }
0x2555   : > { %v3754_v26 = vpop.f32.mrf.mxu1 }
0x2556   : > { %v3760_v37 = vpack.c.bf16 %v3754_v26, %v3754_v26 }
0x2557   : > { %v4568_v51 = vpop.f32.mrf.mxu1 }
0x2558   : > { %4575 = vmatmul.mubr.msk.bf16.vlgmr.msra.gmra.mxu0 %vm594_vm1, %v3760_v37 }
0x2559   : > { %v3757_v52 = vpop.f32.mrf.mxu1 }
0x255b   : > { %v4569_v28 = vpop.f32.mrf.mxu1 }
0x2618   : > { %v3815_v18 = vpop.f32.mrf.mxu0 }
0x2619   : > { %v3816_v15 = vadd.f32 %v3815_v18, %v3765_v19 }
0x261a   : > { %v4576_v34 = vpop.f32.mrf.mxu0 }
0x261b   : > { %3821 = vst [vmem:[%s445_s19] sm:$0x1] %v3816_v15 }
0x261c   : > { %v3818_v33 = vpop.f32.mrf.mxu0 }
0x261d   : > { %4900 = shalt.err (!%p4897_p13)
}
0x261e   : > { %s4901_s16 = scalar_lea.hbm %s5836_s17, 16  ;;  %s4905_s28 = scalar_lea.hbm %s5890_s12, 64 }
0x261f   : > { %p4902_p1 = scmp.ne.s32.totalorder %s5836_s17, %s4901_s16  ;;  %p4906_p3 = scmp.lt.s32.totalorder %s5836_s17, %s5890_s12 }
0x2620   : > { %p4907_p6 = scmp.lt.s32.totalorder %s4905_s28, %s4901_s16 }
0x2621   : > { %p4903_p0 = pnand %p4902_p1, %p5909_p12 }
0x2622   : > { %p4908_p10 = por %p4907_p6, %p4906_p3 }
0x2623   : > { %p4904_p2 = pneg %p4903_p0 }
0x2625   : > { %p4909_p11 = pnand %p4908_p10, %p4904_p2 }
0x2627   : > { %4912 = shalt.err (!%p4909_p11)
}
0x2628   : > { %4580 = dma.vmem_to_hbm [thread:$0]  (%p5909_p12), %s5838_s13, 16, %s5836_s17, %s3823_s26   ;;  %v4577_v58 = vpop.f32.mrf.mxu0 }
0x2629 PF: > { %s5910_s23 = sld [smem:[#allocation8_spill]]  ;;  %p4591_p4 = scmp.ge.s32.totalorder %s4951_s24, 2 }
0x262a   : > { %s5911_s27 = sld [smem:[#allocation12_spill]] }
0x262f   : > { %s3847_s30 = sand.u32 1, %s5910_s23  }
0x2630   : > { %p5912_p5 = scmp.ne.s32.totalorder %s5911_s27, 0  ;;  %s3848_s25 = scalar_lea.sflag [#allocation4], %s3847_s30 }
0x2632   : > { %p4587_p7 = pnand %p4591_p4, %p5912_p5 }
0x2634   : > { %p4588_p8 = pneg %p4587_p7 }
0x2636   : > { %4934 = dma.done.wait (%p4588_p8), %s3848_s25, 16  }
0x2637   : > { %4936 = vsyncadd (%p4588_p8), %s3848_s25, 4294967280  ;;  %s5913_s24 = sld [smem:[#allocation10_spill]]  ;;  %s5916_s21 = smov %s4943_s22 }
0x2638   : > { %s5914_s18 = sld [smem:[#allocation9_spill]] }
0x2639   : > { %s5915_s23 = sld [smem:[#allocation11_spill]] }
0x263d   : > { %p25_p9 = scmp.ge.s32.totalorder %s5913_s24, 6  }
0x263e   : > { %s5917_s22 = smov %s5914_s18 }
0x263f   :  { %27 = sbr.rel (!%p25_p9) target bundleno = 5 (0x5), region = 117 }
0x2644   :  { %3852 = vsyncpa [#allocation3], 1 }
0x2645   :  { %3854 = vsyncpa [#allocation3 + $0x1], 1 }
0x2646   :  { %3855 = vsyncpa [#allocation4], 1 }
0x2647   :  { %3857 = vsyncpa [#allocation4 + $0x1], 1 }

</bundles_post_ra>
